<compile_context>
chip_gen: v5e
topology: v5e:2x2
jax: 0.10.0
libtpu: 0.0.40
codegen_flags: <defaults>
</compile_context>

<pallas_src>
import functools
import math

import jax
import jax.numpy as jnp
from jax.experimental import pallas as pl
from jax.experimental.pallas import tpu as pltpu

NEG_INF = -1e9


# ----------------------------------------------------------------------------
# In-kernel helpers (operate on values, not refs)
# ----------------------------------------------------------------------------
def _split_heads(x, n_head):
    """(L, D) -> (H, L, hd)."""
    L, D = x.shape
    hd = D // n_head
    return jnp.transpose(x.reshape(L, n_head, hd), (1, 0, 2))


def _merge_heads(x):
    """(H, L, hd) -> (L, H*hd)."""
    H, L, hd = x.shape
    return jnp.transpose(x, (1, 0, 2)).reshape(L, H * hd)


def _mm(x, w, dtype):
    """x @ w with optional operand cast (weights are pre-transposed)."""
    return jnp.dot(x.astype(dtype), w.astype(dtype),
                   preferred_element_type=jnp.float32)


def _attention(x_q, x_kv, w_refs, bias, n_head, dtype):
    """nn.MultiheadAttention semantics; returns (out, head-averaged attn map)."""
    wq_t, wk_t, wv_t, wo_t, bq, bk, bv, bo = w_refs
    D = x_q.shape[-1]
    hd = D // n_head
    scale = 1.0 / math.sqrt(hd)

    # Scale folded into the Q projection once (PyTorch scales q after bias add).
    q = (_mm(x_q, wq_t[...], dtype) + bq[...]) * scale
    k = _mm(x_kv, wk_t[...], dtype) + bk[...]
    v = _mm(x_kv, wv_t[...], dtype) + bv[...]

    qh = _split_heads(q, n_head)      # (H, Lq, hd)
    kh = _split_heads(k, n_head)      # (H, Lk, hd)
    vh = _split_heads(v, n_head)      # (H, Lk, hd)

    s = jnp.einsum("hqd,hkd->hqk", qh.astype(dtype), kh.astype(dtype),
                   preferred_element_type=jnp.float32)
    s = s + bias[None, :, :]                       # additive mask, bcast over heads
    s = s - jnp.max(s, axis=-1, keepdims=True)
    p = jnp.exp(s)
    p = p * pl.reciprocal(jnp.sum(p, axis=-1, keepdims=True), approx=True)

    attn_mean = jnp.mean(p, axis=0)                # (Lq, Lk) averaged over heads

    ctx = jnp.einsum("hqk,hkd->hqd", p.astype(dtype), vh.astype(dtype),
                     preferred_element_type=jnp.float32)
    ctx = _merge_heads(ctx)                        # (Lq, D)
    out = _mm(ctx, wo_t[...], dtype) + bo[...]     # single fused output projection
    return out, attn_mean


def _add_ln(x, r, g_ref, b_ref):
    """Residual add + LayerNorm (eps=1e-5, biased variance)."""
    y = x + r
    mean = jnp.mean(y, axis=-1, keepdims=True)
    yc = y - mean
    var = jnp.mean(yc * yc, axis=-1, keepdims=True)
    return yc * jax.lax.rsqrt(var + 1e-5) * g_ref[...] + b_ref[...]


# ----------------------------------------------------------------------------
# Fused block kernel (one grid step per batch element)
# ----------------------------------------------------------------------------
def _hoi_block_kernel(*refs, n_head, matmul_dtype):
    hoi_ref, img_ref, feat_ref, parse_ref, kp_ref = refs[:5]
    sa = refs[5:13]           # self-attn:   wq_t, wk_t, wv_t, wo_t, bq, bk, bv, bo
    ca = refs[13:21]          # cross-attn
    cd = refs[21:29]          # cross-attn_d
    ln1_g, ln1_b, ln2_g, ln2_b, lnd_g, lnd_b, ln3_g, ln3_b = refs[29:37]
    w1_t, b1, w2_t, b2 = refs[37:41]
    hoi_out_ref, attn_ref, attn_d_ref = refs[41:44]

    hoi = hoi_ref[0].astype(jnp.float32)       # (L_hoi, D)
    img = img_ref[0].astype(jnp.float32)       # (L_img, D)
    feat = feat_ref[0].astype(jnp.float32)     # (L_img, D)
    parse_bias = parse_ref[...]                # (L_hoi, L_hoi)
    kp_bias = kp_ref[0]                        # (1, L_img)

    # [HOI] x [HOI] self-attention (parse mask) + residual + LN   (dropout = id)
    sa_out, _ = _attention(hoi, hoi, sa, parse_bias, n_head, matmul_dtype)
    hoi = _add_ln(hoi, sa_out, ln1_g, ln1_b)

    # [HOI] x [PATCH] cross-attention (key padding mask) + residual + LN
    ca_out, attn = _attention(hoi, img, ca, kp_bias, n_head, matmul_dtype)
    hoi = _add_ln(hoi, ca_out, ln2_g, ln2_b)

    # two_feat: [HOI] x [FEATURE] cross-attention + residual + LN
    cd_out, attn_d = _attention(hoi, feat, cd, kp_bias, n_head, matmul_dtype)
    hoi = _add_ln(hoi, cd_out, lnd_g, lnd_b)

    # MLP: c_fc -> QuickGELU -> c_proj, then residual + LN
    h = _mm(hoi, w1_t[...], matmul_dtype) + b1[...]
    h = h * jax.nn.sigmoid(1.702 * h)
    ff = _mm(h, w2_t[...], matmul_dtype) + b2[...]
    hoi = _add_ln(hoi, ff, ln3_g, ln3_b)

    hoi_out_ref[0] = hoi.astype(hoi_out_ref.dtype)
    attn_ref[0] = attn.astype(attn_ref.dtype)
    attn_d_ref[0] = attn_d.astype(attn_d_ref.dtype)


# ----------------------------------------------------------------------------
# Wrapper
# ----------------------------------------------------------------------------
def hoi_residual_attention_block(params, image, hoi, feature, key_padding_mask,
                                 parse_attn_mask, n_head,
                                 matmul_dtype=jnp.float32):
    """Mirrors HOIResidualAttentionBlock.forward (two_feat=True, eval mode).
    image/hoi/feature follow PyTorch layout (seq, batch, d_model)."""
    L_hoi, B, D = hoi.shape
    L_img = image.shape[0]

    # One (L,B,D)->(B,L,D) transpose per activation at block entry.
    hoi_b = jnp.transpose(hoi, (1, 0, 2))
    img_b = jnp.transpose(image, (1, 0, 2))
    feat_b = jnp.transpose(feature, (1, 0, 2))

    # Un-broadcast masks; applied inside the kernel (no (B,Lq,Lk) HBM array).
    parse_bias = parse_attn_mask[1:, 1:].astype(jnp.float32)        # (L_hoi, L_hoi)
    kp_bias = jnp.where(key_padding_mask, NEG_INF, 0.0).astype(jnp.float32)
    kp_bias = kp_bias[:, None, :]                                   # (B, 1, L_img)

    def mha_flat(p):  # pre-transpose once, outside the grid loop: x @ W^T == x @ w_t
        return [p["wq"].T, p["wk"].T, p["wv"].T, p["wo"].T,
                p["bq"], p["bk"], p["bv"], p["bo"]]

    weights = (mha_flat(params["hoi_self_attn"])
               + mha_flat(params["hoi_cross_attn"])
               + mha_flat(params["hoi_cross_attn_d"])
               + [params["hoi_ln1"]["g"], params["hoi_ln1"]["b"],
                  params["hoi_ln2"]["g"], params["hoi_ln2"]["b"],
                  params["hoi_ln_d"]["g"], params["hoi_ln_d"]["b"],
                  params["hoi_ln3"]["g"], params["hoi_ln3"]["b"],
                  params["mlp"]["w1"].T, params["mlp"]["b1"],
                  params["mlp"]["w2"].T, params["mlp"]["b2"]])

    in_specs = ([pl.BlockSpec((1, L_hoi, D), lambda b: (b, 0, 0)),
                 pl.BlockSpec((1, L_img, D), lambda b: (b, 0, 0)),
                 pl.BlockSpec((1, L_img, D), lambda b: (b, 0, 0)),
                 pl.BlockSpec((L_hoi, L_hoi), lambda b: (0, 0)),
                 pl.BlockSpec((1, 1, L_img), lambda b: (b, 0, 0))]
                + [pl.BlockSpec(w.shape, lambda b: (0, 0)) for w in weights])

    out_shape = (jax.ShapeDtypeStruct((B, L_hoi, D), hoi.dtype),
                 jax.ShapeDtypeStruct((B, L_hoi, L_img), jnp.float32),
                 jax.ShapeDtypeStruct((B, L_hoi, L_img), jnp.float32))
    out_specs = (pl.BlockSpec((1, L_hoi, D), lambda b: (b, 0, 0)),
                 pl.BlockSpec((1, L_hoi, L_img), lambda b: (b, 0, 0)),
                 pl.BlockSpec((1, L_hoi, L_img), lambda b: (b, 0, 0)))

    hoi_out, attn_map, attn_map_d = pl.pallas_call(
        functools.partial(_hoi_block_kernel, n_head=n_head,
                          matmul_dtype=matmul_dtype),
        out_shape=out_shape,
        grid=(B,),
        in_specs=in_specs,
        out_specs=out_specs,
        compiler_params=pltpu.CompilerParams(
            dimension_semantics=("parallel",)),   # v7x: shard B over both TCs
    )(hoi_b, img_b, feat_b, parse_bias, kp_bias, *weights)

    return image, feature, jnp.transpose(hoi_out, (1, 0, 2)), attn_map, attn_map_d


# ----------------------------------------------------------------------------
# Deterministic parameter init (synthetic, PyTorch weight convention)
# ----------------------------------------------------------------------------
def init_params(key, d_model):
    def mha_p(k):
        ks = jax.random.split(k, 8)
        return {
            "wq": 0.02 * jax.random.normal(ks[0], (d_model, d_model), jnp.float32),
            "wk": 0.02 * jax.random.normal(ks[1], (d_model, d_model), jnp.float32),
            "wv": 0.02 * jax.random.normal(ks[2], (d_model, d_model), jnp.float32),
            "wo": 0.02 * jax.random.normal(ks[3], (d_model, d_model), jnp.float32),
            "bq": 0.01 * jax.random.normal(ks[4], (1, d_model), jnp.float32),
            "bk": 0.01 * jax.random.normal(ks[5], (1, d_model), jnp.float32),
            "bv": 0.01 * jax.random.normal(ks[6], (1, d_model), jnp.float32),
            "bo": 0.01 * jax.random.normal(ks[7], (1, d_model), jnp.float32),
        }

    def ln_p(k):
        k1, k2 = jax.random.split(k)
        return {"g": 1.0 + 0.01 * jax.random.normal(k1, (1, d_model), jnp.float32),
                "b": 0.01 * jax.random.normal(k2, (1, d_model), jnp.float32)}

    keys = jax.random.split(key, 9)
    k_mlp = jax.random.split(keys[8], 4)
    return {
        "hoi_self_attn": mha_p(keys[0]),
        "hoi_cross_attn": mha_p(keys[1]),
        "hoi_cross_attn_d": mha_p(keys[2]),
        "hoi_ln1": ln_p(keys[3]),
        "hoi_ln2": ln_p(keys[4]),
        "hoi_ln_d": ln_p(keys[5]),
        "hoi_ln3": ln_p(keys[6]),
        "mlp": {
            "w1": 0.02 * jax.random.normal(k_mlp[0], (4 * d_model, d_model), jnp.float32),
            "b1": 0.01 * jax.random.normal(k_mlp[1], (1, 4 * d_model), jnp.float32),
            "w2": 0.02 * jax.random.normal(k_mlp[2], (d_model, 4 * d_model), jnp.float32),
            "b2": 0.01 * jax.random.normal(k_mlp[3], (1, d_model), jnp.float32),
        },
    }


# ----------------------------------------------------------------------------
# Pure-JAX reference (numerical sanity check)
# ----------------------------------------------------------------------------
def _ref_mha(q, kv, bias, p, n_head):
    Lq, B, D = q.shape
    Lk = kv.shape[0]
    hd = D // n_head
    qb = jnp.transpose(q, (1, 0, 2))
    kvb = jnp.transpose(kv, (1, 0, 2))
    qp = qb @ p["wq"].T + p["bq"][0]
    kp = kvb @ p["wk"].T + p["bk"][0]
    vp = kvb @ p["wv"].T + p["bv"][0]
    qh = qp.reshape(B, Lq, n_head, hd).transpose(0, 2, 1, 3)
    kh = kp.reshape(B, Lk, n_head, hd).transpose(0, 2, 1, 3)
    vh = vp.reshape(B, Lk, n_head, hd).transpose(0, 2, 1, 3)
    s = jnp.einsum("bhqd,bhkd->bhqk", qh, kh) / math.sqrt(hd) + bias[:, None]
    w = jax.nn.softmax(s, axis=-1)
    o = jnp.einsum("bhqk,bhkd->bhqd", w, vh).transpose(0, 2, 1, 3).reshape(B, Lq, D)
    out = o @ p["wo"].T + p["bo"][0]
    return jnp.transpose(out, (1, 0, 2)), w.mean(axis=1)


def _ref_ln(x, p):
    mean = x.mean(-1, keepdims=True)
    var = ((x - mean) ** 2).mean(-1, keepdims=True)
    return (x - mean) * jax.lax.rsqrt(var + 1e-5) * p["g"][0] + p["b"][0]


def _ref_block(params, image, hoi, feature, kpm, parse_mask, n_head):
    B, L_hoi, L_img = hoi.shape[1], hoi.shape[0], image.shape[0]
    self_bias = jnp.broadcast_to(parse_mask[1:, 1:][None], (B, L_hoi, L_hoi))
    sa, _ = _ref_mha(hoi, hoi, self_bias, params["hoi_self_attn"], n_head)
    h = _ref_ln(hoi + sa, params["hoi_ln1"])
    cross_bias = jnp.broadcast_to(jnp.where(kpm, NEG_INF, 0.0)[:, None, :],
                                  (B, L_hoi, L_img))
    ca, am = _ref_mha(h, image, cross_bias, params["hoi_cross_attn"], n_head)
    h = _ref_ln(h + ca, params["hoi_ln2"])
    cad, amd = _ref_mha(h, feature, cross_bias, params["hoi_cross_attn_d"], n_head)
    h = _ref_ln(h + cad, params["hoi_ln_d"])
    mid = h @ params["mlp"]["w1"].T + params["mlp"]["b1"][0]
    mid = mid * jax.nn.sigmoid(1.702 * mid)
    ff = mid @ params["mlp"]["w2"].T + params["mlp"]["b2"][0]
    h = _ref_ln(h + ff, params["hoi_ln3"])
    return h, am, amd


# ----------------------------------------------------------------------------
if __name__ == "__main__":
    d_model, n_head = 32, 4
    B, L_img, L_hoi = 2, 16, 8

    key = jax.random.PRNGKey(0)
    k_par, k_img, k_hoi, k_feat = jax.random.split(key, 4)
    params = init_params(k_par, d_model)

    image = jax.random.normal(k_img, (L_img, B, d_model), jnp.float32)
    hoi = jax.random.normal(k_hoi, (L_hoi, B, d_model), jnp.float32)
    feature = jax.random.normal(k_feat, (L_img, B, d_model), jnp.float32)

    # key_padding_mask: True = ignore that key; pad last 3 keys of batch 1.
    kpm = jnp.zeros((B, L_img), jnp.bool_).at[1, -3:].set(True)
    # parse_attn_mask over [CLS]+[HOI] tokens: causal sequential-parsing mask.
    tri = jnp.tril(jnp.ones((L_hoi + 1, L_hoi + 1), jnp.bool_))
    parse_mask = jnp.where(tri, 0.0, NEG_INF).astype(jnp.float32)

    img_o, feat_o, hoi_o, attn_map, attn_map_d = jax.block_until_ready(
        hoi_residual_attention_block(params, image, hoi, feature, kpm,
                                     parse_mask, n_head))

    ref_hoi, ref_am, ref_amd = _ref_block(params, image, hoi, feature, kpm,
                                          parse_mask, n_head)
    assert jnp.allclose(hoi_o, ref_hoi, atol=2e-2, rtol=2e-2)
    assert jnp.allclose(attn_map, ref_am, atol=2e-2, rtol=2e-2)
    assert jnp.allclose(attn_map_d, ref_amd, atol=2e-2, rtol=2e-2)

    print("KERNEL_OK")
</pallas_src>

<mosaic_0001>
module attributes {stable_mosaic.version = 11 : i64} {
  func.func @_hoi_block_kernel(%arg0: i32, %arg1: memref<1x8x32xf32, #tpu.memory_space<vmem>>, %arg2: memref<1x16x32xf32, #tpu.memory_space<vmem>>, %arg3: memref<1x16x32xf32, #tpu.memory_space<vmem>>, %arg4: memref<8x8xf32, #tpu.memory_space<vmem>>, %arg5: memref<1x1x16xf32, #tpu.memory_space<vmem>>, %arg6: memref<32x32xf32, #tpu.memory_space<vmem>>, %arg7: memref<32x32xf32, #tpu.memory_space<vmem>>, %arg8: memref<32x32xf32, #tpu.memory_space<vmem>>, %arg9: memref<32x32xf32, #tpu.memory_space<vmem>>, %arg10: memref<1x32xf32, #tpu.memory_space<vmem>>, %arg11: memref<1x32xf32, #tpu.memory_space<vmem>>, %arg12: memref<1x32xf32, #tpu.memory_space<vmem>>, %arg13: memref<1x32xf32, #tpu.memory_space<vmem>>, %arg14: memref<32x32xf32, #tpu.memory_space<vmem>>, %arg15: memref<32x32xf32, #tpu.memory_space<vmem>>, %arg16: memref<32x32xf32, #tpu.memory_space<vmem>>, %arg17: memref<32x32xf32, #tpu.memory_space<vmem>>, %arg18: memref<1x32xf32, #tpu.memory_space<vmem>>, %arg19: memref<1x32xf32, #tpu.memory_space<vmem>>, %arg20: memref<1x32xf32, #tpu.memory_space<vmem>>, %arg21: memref<1x32xf32, #tpu.memory_space<vmem>>, %arg22: memref<32x32xf32, #tpu.memory_space<vmem>>, %arg23: memref<32x32xf32, #tpu.memory_space<vmem>>, %arg24: memref<32x32xf32, #tpu.memory_space<vmem>>, %arg25: memref<32x32xf32, #tpu.memory_space<vmem>>, %arg26: memref<1x32xf32, #tpu.memory_space<vmem>>, %arg27: memref<1x32xf32, #tpu.memory_space<vmem>>, %arg28: memref<1x32xf32, #tpu.memory_space<vmem>>, %arg29: memref<1x32xf32, #tpu.memory_space<vmem>>, %arg30: memref<1x32xf32, #tpu.memory_space<vmem>>, %arg31: memref<1x32xf32, #tpu.memory_space<vmem>>, %arg32: memref<1x32xf32, #tpu.memory_space<vmem>>, %arg33: memref<1x32xf32, #tpu.memory_space<vmem>>, %arg34: memref<1x32xf32, #tpu.memory_space<vmem>>, %arg35: memref<1x32xf32, #tpu.memory_space<vmem>>, %arg36: memref<1x32xf32, #tpu.memory_space<vmem>>, %arg37: memref<1x32xf32, #tpu.memory_space<vmem>>, %arg38: memref<32x128xf32, #tpu.memory_space<vmem>>, %arg39: memref<1x128xf32, #tpu.memory_space<vmem>>, %arg40: memref<128x32xf32, #tpu.memory_space<vmem>>, %arg41: memref<1x32xf32, #tpu.memory_space<vmem>>, %arg42: memref<1x8x32xf32, #tpu.memory_space<vmem>>, %arg43: memref<1x8x16xf32, #tpu.memory_space<vmem>>, %arg44: memref<1x8x16xf32, #tpu.memory_space<vmem>>) attributes {dimension_semantics = [#tpu.dimension_semantics<parallel>], iteration_bounds = array<i64: 2>, scalar_prefetch = 0 : i64, scratch_operands = 0 : i64, tpu.core_type = #tpu.core_type<tc>, window_params = [{transform_indices = @transform_0, window_bounds = array<i64: 1, 8, 32>}, {transform_indices = @transform_1, window_bounds = array<i64: 1, 16, 32>}, {transform_indices = @transform_2, window_bounds = array<i64: 1, 16, 32>}, {pipeline_mode = #tpu.pipeline_mode<synchronous>, transform_indices = @transform_3, window_bounds = array<i64: 8, 8>}, {transform_indices = @transform_4, window_bounds = array<i64: 1, 1, 16>}, {pipeline_mode = #tpu.pipeline_mode<synchronous>, transform_indices = @transform_5, window_bounds = array<i64: 32, 32>}, {pipeline_mode = #tpu.pipeline_mode<synchronous>, transform_indices = @transform_6, window_bounds = array<i64: 32, 32>}, {pipeline_mode = #tpu.pipeline_mode<synchronous>, transform_indices = @transform_7, window_bounds = array<i64: 32, 32>}, {pipeline_mode = #tpu.pipeline_mode<synchronous>, transform_indices = @transform_8, window_bounds = array<i64: 32, 32>}, {pipeline_mode = #tpu.pipeline_mode<synchronous>, transform_indices = @transform_9, window_bounds = array<i64: 1, 32>}, {pipeline_mode = #tpu.pipeline_mode<synchronous>, transform_indices = @transform_10, window_bounds = array<i64: 1, 32>}, {pipeline_mode = #tpu.pipeline_mode<synchronous>, transform_indices = @transform_11, window_bounds = array<i64: 1, 32>}, {pipeline_mode = #tpu.pipeline_mode<synchronous>, transform_indices = @transform_12, window_bounds = array<i64: 1, 32>}, {pipeline_mode = #tpu.pipeline_mode<synchronous>, transform_indices = @transform_13, window_bounds = array<i64: 32, 32>}, {pipeline_mode = #tpu.pipeline_mode<synchronous>, transform_indices = @transform_14, window_bounds = array<i64: 32, 32>}, {pipeline_mode = #tpu.pipeline_mode<synchronous>, transform_indices = @transform_15, window_bounds = array<i64: 32, 32>}, {pipeline_mode = #tpu.pipeline_mode<synchronous>, transform_indices = @transform_16, window_bounds = array<i64: 32, 32>}, {pipeline_mode = #tpu.pipeline_mode<synchronous>, transform_indices = @transform_17, window_bounds = array<i64: 1, 32>}, {pipeline_mode = #tpu.pipeline_mode<synchronous>, transform_indices = @transform_18, window_bounds = array<i64: 1, 32>}, {pipeline_mode = #tpu.pipeline_mode<synchronous>, transform_indices = @transform_19, window_bounds = array<i64: 1, 32>}, {pipeline_mode = #tpu.pipeline_mode<synchronous>, transform_indices = @transform_20, window_bounds = array<i64: 1, 32>}, {pipeline_mode = #tpu.pipeline_mode<synchronous>, transform_indices = @transform_21, window_bounds = array<i64: 32, 32>}, {pipeline_mode = #tpu.pipeline_mode<synchronous>, transform_indices = @transform_22, window_bounds = array<i64: 32, 32>}, {pipeline_mode = #tpu.pipeline_mode<synchronous>, transform_indices = @transform_23, window_bounds = array<i64: 32, 32>}, {pipeline_mode = #tpu.pipeline_mode<synchronous>, transform_indices = @transform_24, window_bounds = array<i64: 32, 32>}, {pipeline_mode = #tpu.pipeline_mode<synchronous>, transform_indices = @transform_25, window_bounds = array<i64: 1, 32>}, {pipeline_mode = #tpu.pipeline_mode<synchronous>, transform_indices = @transform_26, window_bounds = array<i64: 1, 32>}, {pipeline_mode = #tpu.pipeline_mode<synchronous>, transform_indices = @transform_27, window_bounds = array<i64: 1, 32>}, {pipeline_mode = #tpu.pipeline_mode<synchronous>, transform_indices = @transform_28, window_bounds = array<i64: 1, 32>}, {pipeline_mode = #tpu.pipeline_mode<synchronous>, transform_indices = @transform_29, window_bounds = array<i64: 1, 32>}, {pipeline_mode = #tpu.pipeline_mode<synchronous>, transform_indices = @transform_30, window_bounds = array<i64: 1, 32>}, {pipeline_mode = #tpu.pipeline_mode<synchronous>, transform_indices = @transform_31, window_bounds = array<i64: 1, 32>}, {pipeline_mode = #tpu.pipeline_mode<synchronous>, transform_indices = @transform_32, window_bounds = array<i64: 1, 32>}, {pipeline_mode = #tpu.pipeline_mode<synchronous>, transform_indices = @transform_33, window_bounds = array<i64: 1, 32>}, {pipeline_mode = #tpu.pipeline_mode<synchronous>, transform_indices = @transform_34, window_bounds = array<i64: 1, 32>}, {pipeline_mode = #tpu.pipeline_mode<synchronous>, transform_indices = @transform_35, window_bounds = array<i64: 1, 32>}, {pipeline_mode = #tpu.pipeline_mode<synchronous>, transform_indices = @transform_36, window_bounds = array<i64: 1, 32>}, {pipeline_mode = #tpu.pipeline_mode<synchronous>, transform_indices = @transform_37, window_bounds = array<i64: 32, 128>}, {pipeline_mode = #tpu.pipeline_mode<synchronous>, transform_indices = @transform_38, window_bounds = array<i64: 1, 128>}, {pipeline_mode = #tpu.pipeline_mode<synchronous>, transform_indices = @transform_39, window_bounds = array<i64: 128, 32>}, {pipeline_mode = #tpu.pipeline_mode<synchronous>, transform_indices = @transform_40, window_bounds = array<i64: 1, 32>}, {transform_indices = @transform_41, window_bounds = array<i64: 1, 8, 32>}, {transform_indices = @transform_42, window_bounds = array<i64: 1, 8, 16>}, {transform_indices = @transform_43, window_bounds = array<i64: 1, 8, 16>}]} {
    %c0 = arith.constant 0 : index
    %c0_0 = arith.constant 0 : index
    %c0_1 = arith.constant 0 : index
    %0 = vector.load %arg1[%c0, %c0_0, %c0_1] : memref<1x8x32xf32, #tpu.memory_space<vmem>>, vector<1x8x32xf32>
    %1 = vector.shape_cast %0 : vector<1x8x32xf32> to vector<8x32xf32>
    %c0_2 = arith.constant 0 : index
    %c0_3 = arith.constant 0 : index
    %c0_4 = arith.constant 0 : index
    %2 = vector.load %arg2[%c0_2, %c0_3, %c0_4] : memref<1x16x32xf32, #tpu.memory_space<vmem>>, vector<1x16x32xf32>
    %3 = vector.shape_cast %2 : vector<1x16x32xf32> to vector<16x32xf32>
    %c0_5 = arith.constant 0 : index
    %c0_6 = arith.constant 0 : index
    %c0_7 = arith.constant 0 : index
    %4 = vector.load %arg3[%c0_5, %c0_6, %c0_7] : memref<1x16x32xf32, #tpu.memory_space<vmem>>, vector<1x16x32xf32>
    %5 = vector.shape_cast %4 : vector<1x16x32xf32> to vector<16x32xf32>
    %c0_8 = arith.constant 0 : index
    %c0_9 = arith.constant 0 : index
    %6 = vector.load %arg4[%c0_8, %c0_9] : memref<8x8xf32, #tpu.memory_space<vmem>>, vector<8x8xf32>
    %c0_10 = arith.constant 0 : index
    %c0_11 = arith.constant 0 : index
    %c0_12 = arith.constant 0 : index
    %7 = vector.load %arg5[%c0_10, %c0_11, %c0_12] : memref<1x1x16xf32, #tpu.memory_space<vmem>>, vector<1x1x16xf32>
    %8 = vector.shape_cast %7 : vector<1x1x16xf32> to vector<1x16xf32>
    %c0_13 = arith.constant 0 : index
    %c0_14 = arith.constant 0 : index
    %9 = vector.load %arg6[%c0_13, %c0_14] : memref<32x32xf32, #tpu.memory_space<vmem>>, vector<32x32xf32>
    %cst = arith.constant dense<0.000000e+00> : vector<8x32xf32>
    %10 = tpu.matmul %1, %9, %cst {dimension_numbers = #tpu.dot_dimension_numbers<[1], [0], [0], [1], [0, 0, 1, 1], [], []>} : vector<8x32xf32>, vector<32x32xf32>, vector<8x32xf32> -> vector<8x32xf32>
    %c0_15 = arith.constant 0 : index
    %c0_16 = arith.constant 0 : index
    %11 = vector.load %arg10[%c0_15, %c0_16] : memref<1x32xf32, #tpu.memory_space<vmem>>, vector<1x32xf32>
    %12 = vector.broadcast %11 : vector<1x32xf32> to vector<8x32xf32>
    %13 = arith.addf %10, %12 : vector<8x32xf32>
    %cst_17 = arith.constant 0.353553385 : f32
    %14 = vector.broadcast %cst_17 : f32 to vector<8x32xf32>
    %15 = arith.mulf %13, %14 : vector<8x32xf32>
    %c0_18 = arith.constant 0 : index
    %c0_19 = arith.constant 0 : index
    %16 = vector.load %arg7[%c0_18, %c0_19] : memref<32x32xf32, #tpu.memory_space<vmem>>, vector<32x32xf32>
    %cst_20 = arith.constant dense<0.000000e+00> : vector<8x32xf32>
    %17 = tpu.matmul %1, %16, %cst_20 {dimension_numbers = #tpu.dot_dimension_numbers<[1], [0], [0], [1], [0, 0, 1, 1], [], []>} : vector<8x32xf32>, vector<32x32xf32>, vector<8x32xf32> -> vector<8x32xf32>
    %c0_21 = arith.constant 0 : index
    %c0_22 = arith.constant 0 : index
    %18 = vector.load %arg11[%c0_21, %c0_22] : memref<1x32xf32, #tpu.memory_space<vmem>>, vector<1x32xf32>
    %19 = vector.broadcast %18 : vector<1x32xf32> to vector<8x32xf32>
    %20 = arith.addf %17, %19 : vector<8x32xf32>
    %c0_23 = arith.constant 0 : index
    %c0_24 = arith.constant 0 : index
    %21 = vector.load %arg8[%c0_23, %c0_24] : memref<32x32xf32, #tpu.memory_space<vmem>>, vector<32x32xf32>
    %cst_25 = arith.constant dense<0.000000e+00> : vector<8x32xf32>
    %22 = tpu.matmul %1, %21, %cst_25 {dimension_numbers = #tpu.dot_dimension_numbers<[1], [0], [0], [1], [0, 0, 1, 1], [], []>} : vector<8x32xf32>, vector<32x32xf32>, vector<8x32xf32> -> vector<8x32xf32>
    %c0_26 = arith.constant 0 : index
    %c0_27 = arith.constant 0 : index
    %23 = vector.load %arg12[%c0_26, %c0_27] : memref<1x32xf32, #tpu.memory_space<vmem>>, vector<1x32xf32>
    %24 = vector.broadcast %23 : vector<1x32xf32> to vector<8x32xf32>
    %25 = arith.addf %22, %24 : vector<8x32xf32>
    %26 = vector.shape_cast %15 : vector<8x32xf32> to vector<8x4x8xf32>
    %27 = tpu.transpose %26, [1, 0, 2] : vector<8x4x8xf32> -> vector<4x8x8xf32>
    %28 = vector.shape_cast %20 : vector<8x32xf32> to vector<8x4x8xf32>
    %29 = tpu.transpose %28, [1, 0, 2] : vector<8x4x8xf32> -> vector<4x8x8xf32>
    %30 = vector.shape_cast %25 : vector<8x32xf32> to vector<8x4x8xf32>
    %31 = tpu.transpose %30, [1, 0, 2] : vector<8x4x8xf32> -> vector<4x8x8xf32>
    "tpu.trace_start"() <{level = 10 : i32, message = "hqd,hkd->hqk"}> : () -> ()
    %cst_28 = arith.constant dense<0.000000e+00> : vector<4x8x8xf32>
    %32 = tpu.matmul %27, %29, %cst_28 {dimension_numbers = #tpu.dot_dimension_numbers<[2], [2], [1], [1], [0, 0, 0, 1, 1, 1], [0], [0]>} : vector<4x8x8xf32>, vector<4x8x8xf32>, vector<4x8x8xf32> -> vector<4x8x8xf32>
    "tpu.trace_stop"() : () -> ()
    %33 = vector.shape_cast %6 : vector<8x8xf32> to vector<1x8x8xf32>
    %34 = vector.broadcast %33 : vector<1x8x8xf32> to vector<4x8x8xf32>
    %35 = arith.addf %32, %34 : vector<4x8x8xf32>
    %cst_29 = arith.constant dense<0xFF800000> : vector<4x8xf32>
    %36 = vector.multi_reduction <maximumf>, %35, %cst_29 [2] : vector<4x8x8xf32> to vector<4x8xf32>
    %37 = vector.shape_cast %36 : vector<4x8xf32> to vector<4x8x1xf32>
    %38 = vector.broadcast %37 : vector<4x8x1xf32> to vector<4x8x8xf32>
    %39 = arith.subf %35, %38 : vector<4x8x8xf32>
    %40 = math.exp %39 : vector<4x8x8xf32>
    %cst_30 = arith.constant dense<0.000000e+00> : vector<4x8xf32>
    %41 = vector.multi_reduction <add>, %40, %cst_30 [2] : vector<4x8x8xf32> to vector<4x8xf32>
    %42 = vector.shape_cast %41 : vector<4x8xf32> to vector<4x8x1xf32>
    %43 = tpu.reciprocal %42 {approx = true} : vector<4x8x1xf32> -> vector<4x8x1xf32>
    %44 = vector.broadcast %43 : vector<4x8x1xf32> to vector<4x8x8xf32>
    %45 = arith.mulf %40, %44 : vector<4x8x8xf32>
    "tpu.trace_start"() <{level = 10 : i32, message = "hqk,hkd->hqd"}> : () -> ()
    %cst_31 = arith.constant dense<0.000000e+00> : vector<4x8x8xf32>
    %46 = tpu.matmul %45, %31, %cst_31 {dimension_numbers = #tpu.dot_dimension_numbers<[2], [1], [1], [2], [0, 0, 0, 1, 1, 2], [0], [0]>} : vector<4x8x8xf32>, vector<4x8x8xf32>, vector<4x8x8xf32> -> vector<4x8x8xf32>
    "tpu.trace_stop"() : () -> ()
    %47 = tpu.transpose %46, [1, 0, 2] : vector<4x8x8xf32> -> vector<8x4x8xf32>
    %48 = vector.shape_cast %47 : vector<8x4x8xf32> to vector<8x32xf32>
    %c0_32 = arith.constant 0 : index
    %c0_33 = arith.constant 0 : index
    %49 = vector.load %arg9[%c0_32, %c0_33] : memref<32x32xf32, #tpu.memory_space<vmem>>, vector<32x32xf32>
    %cst_34 = arith.constant dense<0.000000e+00> : vector<8x32xf32>
    %50 = tpu.matmul %48, %49, %cst_34 {dimension_numbers = #tpu.dot_dimension_numbers<[1], [0], [0], [1], [0, 0, 1, 1], [], []>} : vector<8x32xf32>, vector<32x32xf32>, vector<8x32xf32> -> vector<8x32xf32>
    %c0_35 = arith.constant 0 : index
    %c0_36 = arith.constant 0 : index
    %51 = vector.load %arg13[%c0_35, %c0_36] : memref<1x32xf32, #tpu.memory_space<vmem>>, vector<1x32xf32>
    %52 = vector.broadcast %51 : vector<1x32xf32> to vector<8x32xf32>
    %53 = arith.addf %50, %52 : vector<8x32xf32>
    %54 = arith.addf %1, %53 : vector<8x32xf32>
    %cst_37 = arith.constant dense<0.000000e+00> : vector<8xf32>
    %55 = vector.multi_reduction <add>, %54, %cst_37 [1] : vector<8x32xf32> to vector<8xf32>
    %56 = vector.shape_cast %55 : vector<8xf32> to vector<8x1xf32>
    %cst_38 = arith.constant 3.200000e+01 : f32
    %57 = vector.broadcast %cst_38 : f32 to vector<8x1xf32>
    %58 = arith.divf %56, %57 : vector<8x1xf32>
    %59 = vector.broadcast %58 : vector<8x1xf32> to vector<8x32xf32>
    %60 = arith.subf %54, %59 : vector<8x32xf32>
    %61 = arith.mulf %60, %60 : vector<8x32xf32>
    %cst_39 = arith.constant dense<0.000000e+00> : vector<8xf32>
    %62 = vector.multi_reduction <add>, %61, %cst_39 [1] : vector<8x32xf32> to vector<8xf32>
    %63 = vector.shape_cast %62 : vector<8xf32> to vector<8x1xf32>
    %cst_40 = arith.constant 3.200000e+01 : f32
    %64 = vector.broadcast %cst_40 : f32 to vector<8x1xf32>
    %65 = arith.divf %63, %64 : vector<8x1xf32>
    %cst_41 = arith.constant 9.99999974E-6 : f32
    %66 = vector.broadcast %cst_41 : f32 to vector<8x1xf32>
    %67 = arith.addf %65, %66 : vector<8x1xf32>
    %68 = math.rsqrt %67 : vector<8x1xf32>
    %69 = vector.broadcast %68 : vector<8x1xf32> to vector<8x32xf32>
    %70 = arith.mulf %60, %69 : vector<8x32xf32>
    %c0_42 = arith.constant 0 : index
    %c0_43 = arith.constant 0 : index
    %71 = vector.load %arg30[%c0_42, %c0_43] : memref<1x32xf32, #tpu.memory_space<vmem>>, vector<1x32xf32>
    %72 = vector.broadcast %71 : vector<1x32xf32> to vector<8x32xf32>
    %73 = arith.mulf %70, %72 : vector<8x32xf32>
    %c0_44 = arith.constant 0 : index
    %c0_45 = arith.constant 0 : index
    %74 = vector.load %arg31[%c0_44, %c0_45] : memref<1x32xf32, #tpu.memory_space<vmem>>, vector<1x32xf32>
    %75 = vector.broadcast %74 : vector<1x32xf32> to vector<8x32xf32>
    %76 = arith.addf %73, %75 : vector<8x32xf32>
    %c0_46 = arith.constant 0 : index
    %c0_47 = arith.constant 0 : index
    %77 = vector.load %arg14[%c0_46, %c0_47] : memref<32x32xf32, #tpu.memory_space<vmem>>, vector<32x32xf32>
    %cst_48 = arith.constant dense<0.000000e+00> : vector<8x32xf32>
    %78 = tpu.matmul %76, %77, %cst_48 {dimension_numbers = #tpu.dot_dimension_numbers<[1], [0], [0], [1], [0, 0, 1, 1], [], []>} : vector<8x32xf32>, vector<32x32xf32>, vector<8x32xf32> -> vector<8x32xf32>
    %c0_49 = arith.constant 0 : index
    %c0_50 = arith.constant 0 : index
    %79 = vector.load %arg18[%c0_49, %c0_50] : memref<1x32xf32, #tpu.memory_space<vmem>>, vector<1x32xf32>
    %80 = vector.broadcast %79 : vector<1x32xf32> to vector<8x32xf32>
    %81 = arith.addf %78, %80 : vector<8x32xf32>
    %cst_51 = arith.constant 0.353553385 : f32
    %82 = vector.broadcast %cst_51 : f32 to vector<8x32xf32>
    %83 = arith.mulf %81, %82 : vector<8x32xf32>
    %c0_52 = arith.constant 0 : index
    %c0_53 = arith.constant 0 : index
    %84 = vector.load %arg15[%c0_52, %c0_53] : memref<32x32xf32, #tpu.memory_space<vmem>>, vector<32x32xf32>
    %cst_54 = arith.constant dense<0.000000e+00> : vector<16x32xf32>
    %85 = tpu.matmul %3, %84, %cst_54 {dimension_numbers = #tpu.dot_dimension_numbers<[1], [0], [0], [1], [0, 0, 1, 1], [], []>} : vector<16x32xf32>, vector<32x32xf32>, vector<16x32xf32> -> vector<16x32xf32>
    %c0_55 = arith.constant 0 : index
    %c0_56 = arith.constant 0 : index
    %86 = vector.load %arg19[%c0_55, %c0_56] : memref<1x32xf32, #tpu.memory_space<vmem>>, vector<1x32xf32>
    %87 = vector.broadcast %86 : vector<1x32xf32> to vector<16x32xf32>
    %88 = arith.addf %85, %87 : vector<16x32xf32>
    %c0_57 = arith.constant 0 : index
    %c0_58 = arith.constant 0 : index
    %89 = vector.load %arg16[%c0_57, %c0_58] : memref<32x32xf32, #tpu.memory_space<vmem>>, vector<32x32xf32>
    %cst_59 = arith.constant dense<0.000000e+00> : vector<16x32xf32>
    %90 = tpu.matmul %3, %89, %cst_59 {dimension_numbers = #tpu.dot_dimension_numbers<[1], [0], [0], [1], [0, 0, 1, 1], [], []>} : vector<16x32xf32>, vector<32x32xf32>, vector<16x32xf32> -> vector<16x32xf32>
    %c0_60 = arith.constant 0 : index
    %c0_61 = arith.constant 0 : index
    %91 = vector.load %arg20[%c0_60, %c0_61] : memref<1x32xf32, #tpu.memory_space<vmem>>, vector<1x32xf32>
    %92 = vector.broadcast %91 : vector<1x32xf32> to vector<16x32xf32>
    %93 = arith.addf %90, %92 : vector<16x32xf32>
    %94 = vector.shape_cast %83 : vector<8x32xf32> to vector<8x4x8xf32>
    %95 = tpu.transpose %94, [1, 0, 2] : vector<8x4x8xf32> -> vector<4x8x8xf32>
    %96 = vector.shape_cast %88 : vector<16x32xf32> to vector<16x4x8xf32>
    %97 = tpu.transpose %96, [1, 0, 2] : vector<16x4x8xf32> -> vector<4x16x8xf32>
    %98 = vector.shape_cast %93 : vector<16x32xf32> to vector<16x4x8xf32>
    %99 = tpu.transpose %98, [1, 0, 2] : vector<16x4x8xf32> -> vector<4x16x8xf32>
    "tpu.trace_start"() <{level = 10 : i32, message = "hqd,hkd->hqk"}> : () -> ()
    %cst_62 = arith.constant dense<0.000000e+00> : vector<4x8x16xf32>
    %100 = tpu.matmul %95, %97, %cst_62 {dimension_numbers = #tpu.dot_dimension_numbers<[2], [2], [1], [1], [0, 0, 0, 1, 1, 1], [0], [0]>} : vector<4x8x8xf32>, vector<4x16x8xf32>, vector<4x8x16xf32> -> vector<4x8x16xf32>
    "tpu.trace_stop"() : () -> ()
    %101 = vector.shape_cast %8 : vector<1x16xf32> to vector<1x1x16xf32>
    %102 = vector.broadcast %101 : vector<1x1x16xf32> to vector<4x8x16xf32>
    %103 = arith.addf %100, %102 : vector<4x8x16xf32>
    %cst_63 = arith.constant dense<0xFF800000> : vector<4x8xf32>
    %104 = vector.multi_reduction <maximumf>, %103, %cst_63 [2] : vector<4x8x16xf32> to vector<4x8xf32>
    %105 = vector.shape_cast %104 : vector<4x8xf32> to vector<4x8x1xf32>
    %106 = vector.broadcast %105 : vector<4x8x1xf32> to vector<4x8x16xf32>
    %107 = arith.subf %103, %106 : vector<4x8x16xf32>
    %108 = math.exp %107 : vector<4x8x16xf32>
    %cst_64 = arith.constant dense<0.000000e+00> : vector<4x8xf32>
    %109 = vector.multi_reduction <add>, %108, %cst_64 [2] : vector<4x8x16xf32> to vector<4x8xf32>
    %110 = vector.shape_cast %109 : vector<4x8xf32> to vector<4x8x1xf32>
    %111 = tpu.reciprocal %110 {approx = true} : vector<4x8x1xf32> -> vector<4x8x1xf32>
    %112 = vector.broadcast %111 : vector<4x8x1xf32> to vector<4x8x16xf32>
    %113 = arith.mulf %108, %112 : vector<4x8x16xf32>
    %cst_65 = arith.constant dense<0.000000e+00> : vector<8x16xf32>
    %114 = vector.multi_reduction <add>, %113, %cst_65 [0] : vector<4x8x16xf32> to vector<8x16xf32>
    %cst_66 = arith.constant 4.000000e+00 : f32
    %115 = vector.broadcast %cst_66 : f32 to vector<8x16xf32>
    %116 = arith.divf %114, %115 : vector<8x16xf32>
    "tpu.trace_start"() <{level = 10 : i32, message = "hqk,hkd->hqd"}> : () -> ()
    %cst_67 = arith.constant dense<0.000000e+00> : vector<4x8x8xf32>
    %117 = tpu.matmul %113, %99, %cst_67 {dimension_numbers = #tpu.dot_dimension_numbers<[2], [1], [1], [2], [0, 0, 0, 1, 1, 2], [0], [0]>} : vector<4x8x16xf32>, vector<4x16x8xf32>, vector<4x8x8xf32> -> vector<4x8x8xf32>
    "tpu.trace_stop"() : () -> ()
    %118 = tpu.transpose %117, [1, 0, 2] : vector<4x8x8xf32> -> vector<8x4x8xf32>
    %119 = vector.shape_cast %118 : vector<8x4x8xf32> to vector<8x32xf32>
    %c0_68 = arith.constant 0 : index
    %c0_69 = arith.constant 0 : index
    %120 = vector.load %arg17[%c0_68, %c0_69] : memref<32x32xf32, #tpu.memory_space<vmem>>, vector<32x32xf32>
    %cst_70 = arith.constant dense<0.000000e+00> : vector<8x32xf32>
    %121 = tpu.matmul %119, %120, %cst_70 {dimension_numbers = #tpu.dot_dimension_numbers<[1], [0], [0], [1], [0, 0, 1, 1], [], []>} : vector<8x32xf32>, vector<32x32xf32>, vector<8x32xf32> -> vector<8x32xf32>
    %c0_71 = arith.constant 0 : index
    %c0_72 = arith.constant 0 : index
    %122 = vector.load %arg21[%c0_71, %c0_72] : memref<1x32xf32, #tpu.memory_space<vmem>>, vector<1x32xf32>
    %123 = vector.broadcast %122 : vector<1x32xf32> to vector<8x32xf32>
    %124 = arith.addf %121, %123 : vector<8x32xf32>
    %125 = arith.addf %76, %124 : vector<8x32xf32>
    %cst_73 = arith.constant dense<0.000000e+00> : vector<8xf32>
    %126 = vector.multi_reduction <add>, %125, %cst_73 [1] : vector<8x32xf32> to vector<8xf32>
    %127 = vector.shape_cast %126 : vector<8xf32> to vector<8x1xf32>
    %cst_74 = arith.constant 3.200000e+01 : f32
    %128 = vector.broadcast %cst_74 : f32 to vector<8x1xf32>
    %129 = arith.divf %127, %128 : vector<8x1xf32>
    %130 = vector.broadcast %129 : vector<8x1xf32> to vector<8x32xf32>
    %131 = arith.subf %125, %130 : vector<8x32xf32>
    %132 = arith.mulf %131, %131 : vector<8x32xf32>
    %cst_75 = arith.constant dense<0.000000e+00> : vector<8xf32>
    %133 = vector.multi_reduction <add>, %132, %cst_75 [1] : vector<8x32xf32> to vector<8xf32>
    %134 = vector.shape_cast %133 : vector<8xf32> to vector<8x1xf32>
    %cst_76 = arith.constant 3.200000e+01 : f32
    %135 = vector.broadcast %cst_76 : f32 to vector<8x1xf32>
    %136 = arith.divf %134, %135 : vector<8x1xf32>
    %cst_77 = arith.constant 9.99999974E-6 : f32
    %137 = vector.broadcast %cst_77 : f32 to vector<8x1xf32>
    %138 = arith.addf %136, %137 : vector<8x1xf32>
    %139 = math.rsqrt %138 : vector<8x1xf32>
    %140 = vector.broadcast %139 : vector<8x1xf32> to vector<8x32xf32>
    %141 = arith.mulf %131, %140 : vector<8x32xf32>
    %c0_78 = arith.constant 0 : index
    %c0_79 = arith.constant 0 : index
    %142 = vector.load %arg32[%c0_78, %c0_79] : memref<1x32xf32, #tpu.memory_space<vmem>>, vector<1x32xf32>
    %143 = vector.broadcast %142 : vector<1x32xf32> to vector<8x32xf32>
    %144 = arith.mulf %141, %143 : vector<8x32xf32>
    %c0_80 = arith.constant 0 : index
    %c0_81 = arith.constant 0 : index
    %145 = vector.load %arg33[%c0_80, %c0_81] : memref<1x32xf32, #tpu.memory_space<vmem>>, vector<1x32xf32>
    %146 = vector.broadcast %145 : vector<1x32xf32> to vector<8x32xf32>
    %147 = arith.addf %144, %146 : vector<8x32xf32>
    %c0_82 = arith.constant 0 : index
    %c0_83 = arith.constant 0 : index
    %148 = vector.load %arg22[%c0_82, %c0_83] : memref<32x32xf32, #tpu.memory_space<vmem>>, vector<32x32xf32>
    %cst_84 = arith.constant dense<0.000000e+00> : vector<8x32xf32>
    %149 = tpu.matmul %147, %148, %cst_84 {dimension_numbers = #tpu.dot_dimension_numbers<[1], [0], [0], [1], [0, 0, 1, 1], [], []>} : vector<8x32xf32>, vector<32x32xf32>, vector<8x32xf32> -> vector<8x32xf32>
    %c0_85 = arith.constant 0 : index
    %c0_86 = arith.constant 0 : index
    %150 = vector.load %arg26[%c0_85, %c0_86] : memref<1x32xf32, #tpu.memory_space<vmem>>, vector<1x32xf32>
    %151 = vector.broadcast %150 : vector<1x32xf32> to vector<8x32xf32>
    %152 = arith.addf %149, %151 : vector<8x32xf32>
    %cst_87 = arith.constant 0.353553385 : f32
    %153 = vector.broadcast %cst_87 : f32 to vector<8x32xf32>
    %154 = arith.mulf %152, %153 : vector<8x32xf32>
    %c0_88 = arith.constant 0 : index
    %c0_89 = arith.constant 0 : index
    %155 = vector.load %arg23[%c0_88, %c0_89] : memref<32x32xf32, #tpu.memory_space<vmem>>, vector<32x32xf32>
    %cst_90 = arith.constant dense<0.000000e+00> : vector<16x32xf32>
    %156 = tpu.matmul %5, %155, %cst_90 {dimension_numbers = #tpu.dot_dimension_numbers<[1], [0], [0], [1], [0, 0, 1, 1], [], []>} : vector<16x32xf32>, vector<32x32xf32>, vector<16x32xf32> -> vector<16x32xf32>
    %c0_91 = arith.constant 0 : index
    %c0_92 = arith.constant 0 : index
    %157 = vector.load %arg27[%c0_91, %c0_92] : memref<1x32xf32, #tpu.memory_space<vmem>>, vector<1x32xf32>
    %158 = vector.broadcast %157 : vector<1x32xf32> to vector<16x32xf32>
    %159 = arith.addf %156, %158 : vector<16x32xf32>
    %c0_93 = arith.constant 0 : index
    %c0_94 = arith.constant 0 : index
    %160 = vector.load %arg24[%c0_93, %c0_94] : memref<32x32xf32, #tpu.memory_space<vmem>>, vector<32x32xf32>
    %cst_95 = arith.constant dense<0.000000e+00> : vector<16x32xf32>
    %161 = tpu.matmul %5, %160, %cst_95 {dimension_numbers = #tpu.dot_dimension_numbers<[1], [0], [0], [1], [0, 0, 1, 1], [], []>} : vector<16x32xf32>, vector<32x32xf32>, vector<16x32xf32> -> vector<16x32xf32>
    %c0_96 = arith.constant 0 : index
    %c0_97 = arith.constant 0 : index
    %162 = vector.load %arg28[%c0_96, %c0_97] : memref<1x32xf32, #tpu.memory_space<vmem>>, vector<1x32xf32>
    %163 = vector.broadcast %162 : vector<1x32xf32> to vector<16x32xf32>
    %164 = arith.addf %161, %163 : vector<16x32xf32>
    %165 = vector.shape_cast %154 : vector<8x32xf32> to vector<8x4x8xf32>
    %166 = tpu.transpose %165, [1, 0, 2] : vector<8x4x8xf32> -> vector<4x8x8xf32>
    %167 = vector.shape_cast %159 : vector<16x32xf32> to vector<16x4x8xf32>
    %168 = tpu.transpose %167, [1, 0, 2] : vector<16x4x8xf32> -> vector<4x16x8xf32>
    %169 = vector.shape_cast %164 : vector<16x32xf32> to vector<16x4x8xf32>
    %170 = tpu.transpose %169, [1, 0, 2] : vector<16x4x8xf32> -> vector<4x16x8xf32>
    "tpu.trace_start"() <{level = 10 : i32, message = "hqd,hkd->hqk"}> : () -> ()
    %cst_98 = arith.constant dense<0.000000e+00> : vector<4x8x16xf32>
    %171 = tpu.matmul %166, %168, %cst_98 {dimension_numbers = #tpu.dot_dimension_numbers<[2], [2], [1], [1], [0, 0, 0, 1, 1, 1], [0], [0]>} : vector<4x8x8xf32>, vector<4x16x8xf32>, vector<4x8x16xf32> -> vector<4x8x16xf32>
    "tpu.trace_stop"() : () -> ()
    %172 = vector.shape_cast %8 : vector<1x16xf32> to vector<1x1x16xf32>
    %173 = vector.broadcast %172 : vector<1x1x16xf32> to vector<4x8x16xf32>
    %174 = arith.addf %171, %173 : vector<4x8x16xf32>
    %cst_99 = arith.constant dense<0xFF800000> : vector<4x8xf32>
    %175 = vector.multi_reduction <maximumf>, %174, %cst_99 [2] : vector<4x8x16xf32> to vector<4x8xf32>
    %176 = vector.shape_cast %175 : vector<4x8xf32> to vector<4x8x1xf32>
    %177 = vector.broadcast %176 : vector<4x8x1xf32> to vector<4x8x16xf32>
    %178 = arith.subf %174, %177 : vector<4x8x16xf32>
    %179 = math.exp %178 : vector<4x8x16xf32>
    %cst_100 = arith.constant dense<0.000000e+00> : vector<4x8xf32>
    %180 = vector.multi_reduction <add>, %179, %cst_100 [2] : vector<4x8x16xf32> to vector<4x8xf32>
    %181 = vector.shape_cast %180 : vector<4x8xf32> to vector<4x8x1xf32>
    %182 = tpu.reciprocal %181 {approx = true} : vector<4x8x1xf32> -> vector<4x8x1xf32>
    %183 = vector.broadcast %182 : vector<4x8x1xf32> to vector<4x8x16xf32>
    %184 = arith.mulf %179, %183 : vector<4x8x16xf32>
    %cst_101 = arith.constant dense<0.000000e+00> : vector<8x16xf32>
    %185 = vector.multi_reduction <add>, %184, %cst_101 [0] : vector<4x8x16xf32> to vector<8x16xf32>
    %cst_102 = arith.constant 4.000000e+00 : f32
    %186 = vector.broadcast %cst_102 : f32 to vector<8x16xf32>
    %187 = arith.divf %185, %186 : vector<8x16xf32>
    "tpu.trace_start"() <{level = 10 : i32, message = "hqk,hkd->hqd"}> : () -> ()
    %cst_103 = arith.constant dense<0.000000e+00> : vector<4x8x8xf32>
    %188 = tpu.matmul %184, %170, %cst_103 {dimension_numbers = #tpu.dot_dimension_numbers<[2], [1], [1], [2], [0, 0, 0, 1, 1, 2], [0], [0]>} : vector<4x8x16xf32>, vector<4x16x8xf32>, vector<4x8x8xf32> -> vector<4x8x8xf32>
    "tpu.trace_stop"() : () -> ()
    %189 = tpu.transpose %188, [1, 0, 2] : vector<4x8x8xf32> -> vector<8x4x8xf32>
    %190 = vector.shape_cast %189 : vector<8x4x8xf32> to vector<8x32xf32>
    %c0_104 = arith.constant 0 : index
    %c0_105 = arith.constant 0 : index
    %191 = vector.load %arg25[%c0_104, %c0_105] : memref<32x32xf32, #tpu.memory_space<vmem>>, vector<32x32xf32>
    %cst_106 = arith.constant dense<0.000000e+00> : vector<8x32xf32>
    %192 = tpu.matmul %190, %191, %cst_106 {dimension_numbers = #tpu.dot_dimension_numbers<[1], [0], [0], [1], [0, 0, 1, 1], [], []>} : vector<8x32xf32>, vector<32x32xf32>, vector<8x32xf32> -> vector<8x32xf32>
    %c0_107 = arith.constant 0 : index
    %c0_108 = arith.constant 0 : index
    %193 = vector.load %arg29[%c0_107, %c0_108] : memref<1x32xf32, #tpu.memory_space<vmem>>, vector<1x32xf32>
    %194 = vector.broadcast %193 : vector<1x32xf32> to vector<8x32xf32>
    %195 = arith.addf %192, %194 : vector<8x32xf32>
    %196 = arith.addf %147, %195 : vector<8x32xf32>
    %cst_109 = arith.constant dense<0.000000e+00> : vector<8xf32>
    %197 = vector.multi_reduction <add>, %196, %cst_109 [1] : vector<8x32xf32> to vector<8xf32>
    %198 = vector.shape_cast %197 : vector<8xf32> to vector<8x1xf32>
    %cst_110 = arith.constant 3.200000e+01 : f32
    %199 = vector.broadcast %cst_110 : f32 to vector<8x1xf32>
    %200 = arith.divf %198, %199 : vector<8x1xf32>
    %201 = vector.broadcast %200 : vector<8x1xf32> to vector<8x32xf32>
    %202 = arith.subf %196, %201 : vector<8x32xf32>
    %203 = arith.mulf %202, %202 : vector<8x32xf32>
    %cst_111 = arith.constant dense<0.000000e+00> : vector<8xf32>
    %204 = vector.multi_reduction <add>, %203, %cst_111 [1] : vector<8x32xf32> to vector<8xf32>
    %205 = vector.shape_cast %204 : vector<8xf32> to vector<8x1xf32>
    %cst_112 = arith.constant 3.200000e+01 : f32
    %206 = vector.broadcast %cst_112 : f32 to vector<8x1xf32>
    %207 = arith.divf %205, %206 : vector<8x1xf32>
    %cst_113 = arith.constant 9.99999974E-6 : f32
    %208 = vector.broadcast %cst_113 : f32 to vector<8x1xf32>
    %209 = arith.addf %207, %208 : vector<8x1xf32>
    %210 = math.rsqrt %209 : vector<8x1xf32>
    %211 = vector.broadcast %210 : vector<8x1xf32> to vector<8x32xf32>
    %212 = arith.mulf %202, %211 : vector<8x32xf32>
    %c0_114 = arith.constant 0 : index
    %c0_115 = arith.constant 0 : index
    %213 = vector.load %arg34[%c0_114, %c0_115] : memref<1x32xf32, #tpu.memory_space<vmem>>, vector<1x32xf32>
    %214 = vector.broadcast %213 : vector<1x32xf32> to vector<8x32xf32>
    %215 = arith.mulf %212, %214 : vector<8x32xf32>
    %c0_116 = arith.constant 0 : index
    %c0_117 = arith.constant 0 : index
    %216 = vector.load %arg35[%c0_116, %c0_117] : memref<1x32xf32, #tpu.memory_space<vmem>>, vector<1x32xf32>
    %217 = vector.broadcast %216 : vector<1x32xf32> to vector<8x32xf32>
    %218 = arith.addf %215, %217 : vector<8x32xf32>
    %c0_118 = arith.constant 0 : index
    %c0_119 = arith.constant 0 : index
    %219 = vector.load %arg38[%c0_118, %c0_119] : memref<32x128xf32, #tpu.memory_space<vmem>>, vector<32x128xf32>
    %cst_120 = arith.constant dense<0.000000e+00> : vector<8x128xf32>
    %220 = tpu.matmul %218, %219, %cst_120 {dimension_numbers = #tpu.dot_dimension_numbers<[1], [0], [0], [1], [0, 0, 1, 1], [], []>} : vector<8x32xf32>, vector<32x128xf32>, vector<8x128xf32> -> vector<8x128xf32>
    %c0_121 = arith.constant 0 : index
    %c0_122 = arith.constant 0 : index
    %221 = vector.load %arg39[%c0_121, %c0_122] : memref<1x128xf32, #tpu.memory_space<vmem>>, vector<1x128xf32>
    %222 = vector.broadcast %221 : vector<1x128xf32> to vector<8x128xf32>
    %223 = arith.addf %220, %222 : vector<8x128xf32>
    %cst_123 = arith.constant 1.702000e+00 : f32
    %224 = vector.broadcast %cst_123 : f32 to vector<8x128xf32>
    %225 = arith.mulf %224, %223 : vector<8x128xf32>
    %226 = arith.negf %225 : vector<8x128xf32>
    %227 = math.exp %226 : vector<8x128xf32>
    %cst_124 = arith.constant 1.000000e+00 : f32
    %228 = vector.broadcast %cst_124 : f32 to vector<8x128xf32>
    %229 = arith.addf %228, %227 : vector<8x128xf32>
    %230 = arith.divf %228, %229 : vector<8x128xf32>
    %231 = arith.mulf %223, %230 : vector<8x128xf32>
    %c0_125 = arith.constant 0 : index
    %c0_126 = arith.constant 0 : index
    %232 = vector.load %arg40[%c0_125, %c0_126] : memref<128x32xf32, #tpu.memory_space<vmem>>, vector<128x32xf32>
    %cst_127 = arith.constant dense<0.000000e+00> : vector<8x32xf32>
    %233 = tpu.matmul %231, %232, %cst_127 {dimension_numbers = #tpu.dot_dimension_numbers<[1], [0], [0], [1], [0, 0, 1, 1], [], []>} : vector<8x128xf32>, vector<128x32xf32>, vector<8x32xf32> -> vector<8x32xf32>
    %c0_128 = arith.constant 0 : index
    %c0_129 = arith.constant 0 : index
    %234 = vector.load %arg41[%c0_128, %c0_129] : memref<1x32xf32, #tpu.memory_space<vmem>>, vector<1x32xf32>
    %235 = vector.broadcast %234 : vector<1x32xf32> to vector<8x32xf32>
    %236 = arith.addf %233, %235 : vector<8x32xf32>
    %237 = arith.addf %218, %236 : vector<8x32xf32>
    %cst_130 = arith.constant dense<0.000000e+00> : vector<8xf32>
    %238 = vector.multi_reduction <add>, %237, %cst_130 [1] : vector<8x32xf32> to vector<8xf32>
    %239 = vector.shape_cast %238 : vector<8xf32> to vector<8x1xf32>
    %cst_131 = arith.constant 3.200000e+01 : f32
    %240 = vector.broadcast %cst_131 : f32 to vector<8x1xf32>
    %241 = arith.divf %239, %240 : vector<8x1xf32>
    %242 = vector.broadcast %241 : vector<8x1xf32> to vector<8x32xf32>
    %243 = arith.subf %237, %242 : vector<8x32xf32>
    %244 = arith.mulf %243, %243 : vector<8x32xf32>
    %cst_132 = arith.constant dense<0.000000e+00> : vector<8xf32>
    %245 = vector.multi_reduction <add>, %244, %cst_132 [1] : vector<8x32xf32> to vector<8xf32>
    %246 = vector.shape_cast %245 : vector<8xf32> to vector<8x1xf32>
    %cst_133 = arith.constant 3.200000e+01 : f32
    %247 = vector.broadcast %cst_133 : f32 to vector<8x1xf32>
    %248 = arith.divf %246, %247 : vector<8x1xf32>
    %cst_134 = arith.constant 9.99999974E-6 : f32
    %249 = vector.broadcast %cst_134 : f32 to vector<8x1xf32>
    %250 = arith.addf %248, %249 : vector<8x1xf32>
    %251 = math.rsqrt %250 : vector<8x1xf32>
    %252 = vector.broadcast %251 : vector<8x1xf32> to vector<8x32xf32>
    %253 = arith.mulf %243, %252 : vector<8x32xf32>
    %c0_135 = arith.constant 0 : index
    %c0_136 = arith.constant 0 : index
    %254 = vector.load %arg36[%c0_135, %c0_136] : memref<1x32xf32, #tpu.memory_space<vmem>>, vector<1x32xf32>
    %255 = vector.broadcast %254 : vector<1x32xf32> to vector<8x32xf32>
    %256 = arith.mulf %253, %255 : vector<8x32xf32>
    %c0_137 = arith.constant 0 : index
    %c0_138 = arith.constant 0 : index
    %257 = vector.load %arg37[%c0_137, %c0_138] : memref<1x32xf32, #tpu.memory_space<vmem>>, vector<1x32xf32>
    %258 = vector.broadcast %257 : vector<1x32xf32> to vector<8x32xf32>
    %259 = arith.addf %256, %258 : vector<8x32xf32>
    %c0_139 = arith.constant 0 : index
    %c0_140 = arith.constant 0 : index
    %c0_141 = arith.constant 0 : index
    %260 = vector.load %arg42[%c0_139, %c0_140, %c0_141] : memref<1x8x32xf32, #tpu.memory_space<vmem>>, vector<1x8x32xf32>
    %261 = vector.shape_cast %260 : vector<1x8x32xf32> to vector<8x32xf32>
    %262 = vector.shape_cast %259 : vector<8x32xf32> to vector<1x8x32xf32>
    tpu.vector_store %arg42[%c0_139, %c0_140, %c0_141], %262 {strides = array<i32>} : memref<1x8x32xf32, #tpu.memory_space<vmem>>, vector<1x8x32xf32>,
    %c0_142 = arith.constant 0 : index
    %c0_143 = arith.constant 0 : index
    %c0_144 = arith.constant 0 : index
    %263 = vector.load %arg43[%c0_142, %c0_143, %c0_144] : memref<1x8x16xf32, #tpu.memory_space<vmem>>, vector<1x8x16xf32>
    %264 = vector.shape_cast %263 : vector<1x8x16xf32> to vector<8x16xf32>
    %265 = vector.shape_cast %116 : vector<8x16xf32> to vector<1x8x16xf32>
    tpu.vector_store %arg43[%c0_142, %c0_143, %c0_144], %265 {strides = array<i32>} : memref<1x8x16xf32, #tpu.memory_space<vmem>>, vector<1x8x16xf32>,
    %c0_145 = arith.constant 0 : index
    %c0_146 = arith.constant 0 : index
    %c0_147 = arith.constant 0 : index
    %266 = vector.load %arg44[%c0_145, %c0_146, %c0_147] : memref<1x8x16xf32, #tpu.memory_space<vmem>>, vector<1x8x16xf32>
    %267 = vector.shape_cast %266 : vector<1x8x16xf32> to vector<8x16xf32>
    %268 = vector.shape_cast %187 : vector<8x16xf32> to vector<1x8x16xf32>
    tpu.vector_store %arg44[%c0_145, %c0_146, %c0_147], %268 {strides = array<i32>} : memref<1x8x16xf32, #tpu.memory_space<vmem>>, vector<1x8x16xf32>,
    return
  }
  func.func @transform_0(%arg0: i32) -> (i32, i32, i32) {
    %c0_i32 = arith.constant 0 : i32
    %c0_i32_0 = arith.constant 0 : i32
    %c0_i32_1 = arith.constant 0 : i32
    return %arg0, %c0_i32, %c0_i32_0 : i32, i32, i32
  }
  func.func @transform_1(%arg0: i32) -> (i32, i32, i32) {
    %c0_i32 = arith.constant 0 : i32
    %c0_i32_0 = arith.constant 0 : i32
    %c0_i32_1 = arith.constant 0 : i32
    return %arg0, %c0_i32, %c0_i32_0 : i32, i32, i32
  }
  func.func @transform_2(%arg0: i32) -> (i32, i32, i32) {
    %c0_i32 = arith.constant 0 : i32
    %c0_i32_0 = arith.constant 0 : i32
    %c0_i32_1 = arith.constant 0 : i32
    return %arg0, %c0_i32, %c0_i32_0 : i32, i32, i32
  }
  func.func @transform_3(%arg0: i32) -> (i32, i32) {
    %c0_i32 = arith.constant 0 : i32
    %c0_i32_0 = arith.constant 0 : i32
    %c0_i32_1 = arith.constant 0 : i32
    return %c0_i32, %c0_i32_0 : i32, i32
  }
  func.func @transform_4(%arg0: i32) -> (i32, i32, i32) {
    %c0_i32 = arith.constant 0 : i32
    %c0_i32_0 = arith.constant 0 : i32
    %c0_i32_1 = arith.constant 0 : i32
    return %arg0, %c0_i32, %c0_i32_0 : i32, i32, i32
  }
  func.func @transform_5(%arg0: i32) -> (i32, i32) {
    %c0_i32 = arith.constant 0 : i32
    %c0_i32_0 = arith.constant 0 : i32
    %c0_i32_1 = arith.constant 0 : i32
    return %c0_i32, %c0_i32_0 : i32, i32
  }
  func.func @transform_6(%arg0: i32) -> (i32, i32) {
    %c0_i32 = arith.constant 0 : i32
    %c0_i32_0 = arith.constant 0 : i32
    %c0_i32_1 = arith.constant 0 : i32
    return %c0_i32, %c0_i32_0 : i32, i32
  }
  func.func @transform_7(%arg0: i32) -> (i32, i32) {
    %c0_i32 = arith.constant 0 : i32
    %c0_i32_0 = arith.constant 0 : i32
    %c0_i32_1 = arith.constant 0 : i32
    return %c0_i32, %c0_i32_0 : i32, i32
  }
  func.func @transform_8(%arg0: i32) -> (i32, i32) {
    %c0_i32 = arith.constant 0 : i32
    %c0_i32_0 = arith.constant 0 : i32
    %c0_i32_1 = arith.constant 0 : i32
    return %c0_i32, %c0_i32_0 : i32, i32
  }
  func.func @transform_9(%arg0: i32) -> (i32, i32) {
    %c0_i32 = arith.constant 0 : i32
    %c0_i32_0 = arith.constant 0 : i32
    %c0_i32_1 = arith.constant 0 : i32
    return %c0_i32, %c0_i32_0 : i32, i32
  }
  func.func @transform_10(%arg0: i32) -> (i32, i32) {
    %c0_i32 = arith.constant 0 : i32
    %c0_i32_0 = arith.constant 0 : i32
    %c0_i32_1 = arith.constant 0 : i32
    return %c0_i32, %c0_i32_0 : i32, i32
  }
  func.func @transform_11(%arg0: i32) -> (i32, i32) {
    %c0_i32 = arith.constant 0 : i32
    %c0_i32_0 = arith.constant 0 : i32
    %c0_i32_1 = arith.constant 0 : i32
    return %c0_i32, %c0_i32_0 : i32, i32
  }
  func.func @transform_12(%arg0: i32) -> (i32, i32) {
    %c0_i32 = arith.constant 0 : i32
    %c0_i32_0 = arith.constant 0 : i32
    %c0_i32_1 = arith.constant 0 : i32
    return %c0_i32, %c0_i32_0 : i32, i32
  }
  func.func @transform_13(%arg0: i32) -> (i32, i32) {
    %c0_i32 = arith.constant 0 : i32
    %c0_i32_0 = arith.constant 0 : i32
    %c0_i32_1 = arith.constant 0 : i32
    return %c0_i32, %c0_i32_0 : i32, i32
  }
  func.func @transform_14(%arg0: i32) -> (i32, i32) {
    %c0_i32 = arith.constant 0 : i32
    %c0_i32_0 = arith.constant 0 : i32
    %c0_i32_1 = arith.constant 0 : i32
    return %c0_i32, %c0_i32_0 : i32, i32
  }
  func.func @transform_15(%arg0: i32) -> (i32, i32) {
    %c0_i32 = arith.constant 0 : i32
    %c0_i32_0 = arith.constant 0 : i32
    %c0_i32_1 = arith.constant 0 : i32
    return %c0_i32, %c0_i32_0 : i32, i32
  }
  func.func @transform_16(%arg0: i32) -> (i32, i32) {
    %c0_i32 = arith.constant 0 : i32
    %c0_i32_0 = arith.constant 0 : i32
    %c0_i32_1 = arith.constant 0 : i32
    return %c0_i32, %c0_i32_0 : i32, i32
  }
  func.func @transform_17(%arg0: i32) -> (i32, i32) {
    %c0_i32 = arith.constant 0 : i32
    %c0_i32_0 = arith.constant 0 : i32
    %c0_i32_1 = arith.constant 0 : i32
    return %c0_i32, %c0_i32_0 : i32, i32
  }
  func.func @transform_18(%arg0: i32) -> (i32, i32) {
    %c0_i32 = arith.constant 0 : i32
    %c0_i32_0 = arith.constant 0 : i32
    %c0_i32_1 = arith.constant 0 : i32
    return %c0_i32, %c0_i32_0 : i32, i32
  }
  func.func @transform_19(%arg0: i32) -> (i32, i32) {
    %c0_i32 = arith.constant 0 : i32
    %c0_i32_0 = arith.constant 0 : i32
    %c0_i32_1 = arith.constant 0 : i32
    return %c0_i32, %c0_i32_0 : i32, i32
  }
  func.func @transform_20(%arg0: i32) -> (i32, i32) {
    %c0_i32 = arith.constant 0 : i32
    %c0_i32_0 = arith.constant 0 : i32
    %c0_i32_1 = arith.constant 0 : i32
    return %c0_i32, %c0_i32_0 : i32, i32
  }
  func.func @transform_21(%arg0: i32) -> (i32, i32) {
    %c0_i32 = arith.constant 0 : i32
    %c0_i32_0 = arith.constant 0 : i32
    %c0_i32_1 = arith.constant 0 : i32
    return %c0_i32, %c0_i32_0 : i32, i32
  }
  func.func @transform_22(%arg0: i32) -> (i32, i32) {
    %c0_i32 = arith.constant 0 : i32
    %c0_i32_0 = arith.constant 0 : i32
    %c0_i32_1 = arith.constant 0 : i32
    return %c0_i32, %c0_i32_0 : i32, i32
  }
  func.func @transform_23(%arg0: i32) -> (i32, i32) {
    %c0_i32 = arith.constant 0 : i32
    %c0_i32_0 = arith.constant 0 : i32
    %c0_i32_1 = arith.constant 0 : i32
    return %c0_i32, %c0_i32_0 : i32, i32
  }
  func.func @transform_24(%arg0: i32) -> (i32, i32) {
    %c0_i32 = arith.constant 0 : i32
    %c0_i32_0 = arith.constant 0 : i32
    %c0_i32_1 = arith.constant 0 : i32
    return %c0_i32, %c0_i32_0 : i32, i32
  }
  func.func @transform_25(%arg0: i32) -> (i32, i32) {
    %c0_i32 = arith.constant 0 : i32
    %c0_i32_0 = arith.constant 0 : i32
    %c0_i32_1 = arith.constant 0 : i32
    return %c0_i32, %c0_i32_0 : i32, i32
  }
  func.func @transform_26(%arg0: i32) -> (i32, i32) {
    %c0_i32 = arith.constant 0 : i32
    %c0_i32_0 = arith.constant 0 : i32
    %c0_i32_1 = arith.constant 0 : i32
    return %c0_i32, %c0_i32_0 : i32, i32
  }
  func.func @transform_27(%arg0: i32) -> (i32, i32) {
    %c0_i32 = arith.constant 0 : i32
    %c0_i32_0 = arith.constant 0 : i32
    %c0_i32_1 = arith.constant 0 : i32
    return %c0_i32, %c0_i32_0 : i32, i32
  }
  func.func @transform_28(%arg0: i32) -> (i32, i32) {
    %c0_i32 = arith.constant 0 : i32
    %c0_i32_0 = arith.constant 0 : i32
    %c0_i32_1 = arith.constant 0 : i32
    return %c0_i32, %c0_i32_0 : i32, i32
  }
  func.func @transform_29(%arg0: i32) -> (i32, i32) {
    %c0_i32 = arith.constant 0 : i32
    %c0_i32_0 = arith.constant 0 : i32
    %c0_i32_1 = arith.constant 0 : i32
    return %c0_i32, %c0_i32_0 : i32, i32
  }
  func.func @transform_30(%arg0: i32) -> (i32, i32) {
    %c0_i32 = arith.constant 0 : i32
    %c0_i32_0 = arith.constant 0 : i32
    %c0_i32_1 = arith.constant 0 : i32
    return %c0_i32, %c0_i32_0 : i32, i32
  }
  func.func @transform_31(%arg0: i32) -> (i32, i32) {
    %c0_i32 = arith.constant 0 : i32
    %c0_i32_0 = arith.constant 0 : i32
    %c0_i32_1 = arith.constant 0 : i32
    return %c0_i32, %c0_i32_0 : i32, i32
  }
  func.func @transform_32(%arg0: i32) -> (i32, i32) {
    %c0_i32 = arith.constant 0 : i32
    %c0_i32_0 = arith.constant 0 : i32
    %c0_i32_1 = arith.constant 0 : i32
    return %c0_i32, %c0_i32_0 : i32, i32
  }
  func.func @transform_33(%arg0: i32) -> (i32, i32) {
    %c0_i32 = arith.constant 0 : i32
    %c0_i32_0 = arith.constant 0 : i32
    %c0_i32_1 = arith.constant 0 : i32
    return %c0_i32, %c0_i32_0 : i32, i32
  }
  func.func @transform_34(%arg0: i32) -> (i32, i32) {
    %c0_i32 = arith.constant 0 : i32
    %c0_i32_0 = arith.constant 0 : i32
    %c0_i32_1 = arith.constant 0 : i32
    return %c0_i32, %c0_i32_0 : i32, i32
  }
  func.func @transform_35(%arg0: i32) -> (i32, i32) {
    %c0_i32 = arith.constant 0 : i32
    %c0_i32_0 = arith.constant 0 : i32
    %c0_i32_1 = arith.constant 0 : i32
    return %c0_i32, %c0_i32_0 : i32, i32
  }
  func.func @transform_36(%arg0: i32) -> (i32, i32) {
    %c0_i32 = arith.constant 0 : i32
    %c0_i32_0 = arith.constant 0 : i32
    %c0_i32_1 = arith.constant 0 : i32
    return %c0_i32, %c0_i32_0 : i32, i32
  }
  func.func @transform_37(%arg0: i32) -> (i32, i32) {
    %c0_i32 = arith.constant 0 : i32
    %c0_i32_0 = arith.constant 0 : i32
    %c0_i32_1 = arith.constant 0 : i32
    return %c0_i32, %c0_i32_0 : i32, i32
  }
  func.func @transform_38(%arg0: i32) -> (i32, i32) {
    %c0_i32 = arith.constant 0 : i32
    %c0_i32_0 = arith.constant 0 : i32
    %c0_i32_1 = arith.constant 0 : i32
    return %c0_i32, %c0_i32_0 : i32, i32
  }
  func.func @transform_39(%arg0: i32) -> (i32, i32) {
    %c0_i32 = arith.constant 0 : i32
    %c0_i32_0 = arith.constant 0 : i32
    %c0_i32_1 = arith.constant 0 : i32
    return %c0_i32, %c0_i32_0 : i32, i32
  }
  func.func @transform_40(%arg0: i32) -> (i32, i32) {
    %c0_i32 = arith.constant 0 : i32
    %c0_i32_0 = arith.constant 0 : i32
    %c0_i32_1 = arith.constant 0 : i32
    return %c0_i32, %c0_i32_0 : i32, i32
  }
  func.func @transform_41(%arg0: i32) -> (i32, i32, i32) {
    %c0_i32 = arith.constant 0 : i32
    %c0_i32_0 = arith.constant 0 : i32
    %c0_i32_1 = arith.constant 0 : i32
    return %arg0, %c0_i32, %c0_i32_0 : i32, i32, i32
  }
  func.func @transform_42(%arg0: i32) -> (i32, i32, i32) {
    %c0_i32 = arith.constant 0 : i32
    %c0_i32_0 = arith.constant 0 : i32
    %c0_i32_1 = arith.constant 0 : i32
    return %arg0, %c0_i32, %c0_i32_0 : i32, i32, i32
  }
  func.func @transform_43(%arg0: i32) -> (i32, i32, i32) {
    %c0_i32 = arith.constant 0 : i32
    %c0_i32_0 = arith.constant 0 : i32
    %c0_i32_1 = arith.constant 0 : i32
    return %arg0, %c0_i32, %c0_i32_0 : i32, i32, i32
  }
}

</mosaic_0001>

<bundles_post_ra>
// kernel: tpu_custom_call.1
= control target key start
LH: loop header
LB: loop body
LE: loop exit
PB: predicated region body
PF: predicated region fallthrough
CT: control target
= control target key end

     0   :  { %s7362_s6 = smov 1   ;;  %s7363_s10 = smov 2   ;;  %s9218_s0 = inlined_call_operand.smem [shape: u32[44], index: -1, kind: input, shape index: {}] }
   0x1   :  { %s7455_s5 = sld [smem:[%s9218_s0]]   ;;  %s7364_s14 = smov 3  }
   0x2   :  { %s7460_s9 = sld [smem:[%s9218_s0 + %s7362_s6]]   ;;  %s7365_s18 = smov 4  }
   0x3   :  { %s7465_s13 = sld [smem:[%s9218_s0 + %s7363_s10]]   ;;  %s7366_s22 = smov 5  }
   0x4   :  { %s7470_s17 = sld [smem:[%s9218_s0 + %s7364_s14]]   ;;  %s7367_s26 = smov 6  }
   0x5   :  { %s7475_s21 = sld [smem:[%s9218_s0 + %s7365_s18]]   ;;  %s7368_s30 = smov 7  }
   0x6   :  { %s7480_s25 = sld [smem:[%s9218_s0 + %s7366_s22]]   ;;  %s7369_s4 = smov 8  }
   0x7   :  { %9293 = sst [smem:[#allocation72_spill]] %s7455_s5  ;;  %s7370_s10 = smov 9  }
   0x8   :  { %9294 = sst [smem:[#allocation73_spill]] %s7460_s9  ;;  %s7371_s15 = smov 10  }
   0x9   :  { %9295 = sst [smem:[#allocation74_spill]] %s7465_s13  ;;  %s7372_s20 = smov 11  }
   0xa   :  { %s7485_s29 = sld [smem:[%s9218_s0 + %s7367_s26]]   ;;  %s7373_s26 = smov 12  }
   0xb   :  { %9296 = sst [smem:[#allocation75_spill]] %s7475_s21  ;;  %s7374_s1 = smov 13  }
   0xc   :  { %9297 = sst [smem:[#allocation76_spill]] %s7480_s25  ;;  %s7375_s7 = smov 14  }
   0xd   :  { %s7490_s3 = sld [smem:[%s9218_s0 + %s7368_s30]]   ;;  %s7377_s22 = smov 16  }
   0xe   :  { %s7495_s8 = sld [smem:[%s9218_s0 + %s7369_s4]]   ;;  %s7378_s28 = smov 17  }
   0xf   :  { %s7500_s14 = sld [smem:[%s9218_s0 + %s7370_s10]]  }
  0x10   :  { %9298 = sst [smem:[#allocation77_spill]] %s7485_s29 }
  0x11   :  { %s7505_s19 = sld [smem:[%s9218_s0 + %s7371_s15]]   ;;  %s7376_s15 = smov 15  }
  0x12   :  { %s7510_s24 = sld [smem:[%s9218_s0 + %s7372_s20]]  }
  0x13   :  { %9299 = sst [smem:[#allocation78_spill]] %s7490_s3 }
  0x14   :  { %9300 = sst [smem:[#allocation79_spill]] %s7495_s8 }
  0x15   :  { %9301 = sst [smem:[#allocation80_spill]] %s7500_s14 }
  0x16   :  { %s7515_s30 = sld [smem:[%s9218_s0 + %s7373_s26]]  }
  0x17   :  { %9302 = sst [smem:[#allocation81_spill]] %s7505_s19 }
  0x18   :  { %9303 = sst [smem:[#allocation82_spill]] %s7510_s24 }
  0x19   :  { %s7520_s6 = sld [smem:[%s9218_s0 + %s7374_s1]]  }
  0x1a   :  { %s7525_s12 = sld [smem:[%s9218_s0 + %s7375_s7]]   ;;  %s7379_s7 = smov 18  }
  0x1b   :  { %s7530_s20 = sld [smem:[%s9218_s0 + %s7376_s15]]   ;;  %s7380_s15 = smov 19  }
  0x1c   :  { %s7535_s27 = sld [smem:[%s9218_s0 + %s7377_s22]]   ;;  %s7381_s22 = smov 20  }
  0x1d   :  { %s7540_s4 = sld [smem:[%s9218_s0 + %s7378_s28]]   ;;  %s7382_s28 = smov 21  }
  0x1e   :  { %s7545_s13 = sld [smem:[%s9218_s0 + %s7379_s7]]   ;;  %s7383_s7 = smov 22  }
  0x1f   :  { %9304 = sst [smem:[#allocation83_spill]] %s7520_s6 }
  0x20   :  { %9305 = sst [smem:[#allocation84_spill]] %s7525_s12 }
  0x21   :  { %9306 = sst [smem:[#allocation85_spill]] %s7530_s20 }
  0x22   :  { %s7550_s9 = sld [smem:[%s9218_s0 + %s7380_s15]]   ;;  %s7384_s15 = smov 23  }
  0x23   :  { %9307 = sst [smem:[#allocation86_spill]] %s7540_s4 }
  0x24   :  { %9308 = sst [smem:[#allocation87_spill]] %s7545_s13 }
  0x25   :  { %s7555_s21 = sld [smem:[%s9218_s0 + %s7381_s22]]   ;;  %s7385_s22 = smov 24  }
  0x26   :  { %s7560_s24 = sld [smem:[%s9218_s0 + %s7382_s28]]   ;;  %s7386_s28 = smov 25  }
  0x27   :  { %s7565_s3 = sld [smem:[%s9218_s0 + %s7383_s7]]   ;;  %s7387_s7 = smov 26  }
  0x28   :  { %9309 = sst [smem:[#allocation88_spill]] %s7550_s9 }
  0x29   :  { %s7570_s14 = sld [smem:[%s9218_s0 + %s7384_s15]]   ;;  %s7388_s15 = smov 27  }
  0x2a   :  { %s7575_s19 = sld [smem:[%s9218_s0 + %s7385_s22]]   ;;  %s7389_s22 = smov 28  }
  0x2b   :  { %s7580_s29 = sld [smem:[%s9218_s0 + %s7386_s28]]   ;;  %s7390_s28 = smov 29  }
  0x2c   :  { %9310 = sst [smem:[#allocation89_spill]] %s7560_s24 }
  0x2d   :  { %9311 = sst [smem:[#allocation90_spill]] %s7565_s3 }
  0x2e   :  { %s7585_s25 = sld [smem:[%s9218_s0 + %s7387_s7]]   ;;  %s7391_s7 = smov 30  }
  0x2f   :  { %9312 = sst [smem:[#allocation91_spill]] %s7570_s14 }
  0x30   :  { %s7590_s5 = sld [smem:[%s9218_s0 + %s7388_s15]]   ;;  %s7392_s15 = smov 31  }
  0x31   :  { %9313 = sst [smem:[#allocation92_spill]] %s7580_s29 }
  0x32   :  { %s7595_s14 = sld [smem:[%s9218_s0 + %s7389_s22]]   ;;  %s7393_s22 = smov 32  }
  0x33   :  { %s7600_s29 = sld [smem:[%s9218_s0 + %s7390_s28]]   ;;  %s7394_s28 = smov 33  }
  0x34   :  { %s7605_s24 = sld [smem:[%s9218_s0 + %s7391_s7]]   ;;  %s7395_s7 = smov 34  }
  0x35   :  { %s7615_s9 = sld [smem:[%s9218_s0 + %s7393_s22]]   ;;  %s7397_s22 = smov 36  }
  0x36   :  { %9314 = sst [smem:[#allocation93_spill]] %s7590_s5 }
  0x37   :  { %s7610_s5 = sld [smem:[%s9218_s0 + %s7392_s15]]   ;;  %s7396_s15 = smov 35  }
  0x38   :  { %s7625_s4 = sld [smem:[%s9218_s0 + %s7395_s7]]   ;;  %s7399_s7 = smov 38  }
  0x39   :  { %9315 = sst [smem:[#allocation94_spill]] %s7600_s29 }
  0x3a   :  { %s7620_s29 = sld [smem:[%s9218_s0 + %s7394_s28]]   ;;  %s7398_s28 = smov 37  }
  0x3b   :  { %9317 = sst [smem:[#allocation96_spill]] %s7615_s9 }
  0x3c   :  { %s7635_s20 = sld [smem:[%s9218_s0 + %s7397_s22]]   ;;  %s7401_s22 = smov 40  }
  0x3d   :  { %9316 = sst [smem:[#allocation95_spill]] %s7610_s5 }
  0x3e   :  { %9319 = sst [smem:[#allocation98_spill]] %s7625_s4 }
  0x3f   :  { %s7630_s5 = sld [smem:[%s9218_s0 + %s7396_s15]]   ;;  %s7400_s15 = smov 39  }
  0x40   :  { %9318 = sst [smem:[#allocation97_spill]] %s7620_s29 }
  0x41   :  { %s7640_s29 = sld [smem:[%s9218_s0 + %s7398_s28]]   ;;  %s7402_s28 = smov 41  }
  0x42   :  { %s7645_s6 = sld [smem:[%s9218_s0 + %s7399_s7]]   ;;  %s7403_s7 = smov 42  }
  0x43   :  { %s7655_s8 = sld [smem:[%s9218_s0 + %s7401_s22]]  }
  0x45   :  { %9320 = sst [smem:[#allocation99_spill]] %s7630_s5 }
  0x46   :  { %s7650_s5 = sld [smem:[%s9218_s0 + %s7400_s15]]   ;;  %s7404_s15 = smov 43  }
  0x47   :  { %9321 = sst [smem:[#allocation100_spill]] %s7640_s29 }
  0x48   :  { %9322 = sst [smem:[#allocation101_spill]] %s7645_s6 }
  0x49   :  { %9324 = sst [smem:[#allocation103_spill]] %s7655_s8 }
  0x4a   :  { %s7660_s29 = sld [smem:[%s9218_s0 + %s7402_s28]]  }
  0x4b   :  { %s7665_s6 = sld [smem:[%s9218_s0 + %s7403_s7]]  }
  0x4c   :  { %9323 = sst [smem:[#allocation102_spill]] %s7650_s5 }
  0x4d   :  { %s7670_s5 = sld [smem:[%s9218_s0 + %s7404_s15]]  }
  0x50   :  { %9325 = sst [smem:[#allocation104_spill]] %s7660_s29 }
  0x51   :  { %9326 = sst [smem:[#allocation105_spill]] %s7665_s6 }
  0x53   :  { %9327 = sst [smem:[#allocation106_spill]] %s7670_s5 }
  0x54   :  { %93 = vsyncpa [#allocation3], 0 }
  0x55   :  { %95 = vsyncpa [#allocation3 + $0x1], 0 }
  0x56   :  { %96 = vsyncpa [#allocation6], 0 }
  0x57   :  { %97 = vsyncpa [#allocation9], 0 }
  0x58   :  { %98 = vsyncpa [#allocation12], 0 }
  0x59   :  { %99 = vsyncpa [#allocation15], 0 }
  0x5a   :  { %100 = vsyncpa [#allocation18], 0 }
  0x5b   :  { %101 = vsyncpa [#allocation21], 0 }
  0x5c   :  { %102 = vsyncpa [#allocation24], 0 }
  0x5d   :  { %103 = vsyncpa [#allocation27], 0 }
  0x5e   :  { %104 = vsyncpa [#allocation30], 0 }
  0x5f   :  { %105 = vsyncpa [#allocation33], 0 }
  0x60   :  { %106 = vsyncpa [#allocation36], 0 }
  0x61   :  { %107 = vsyncpa [#allocation39], 0 }
  0x62   :  { %108 = vsyncpa [#allocation42], 0 }
  0x63   :  { %109 = vsyncpa [#allocation45], 0 }
  0x64   :  { %110 = vsyncpa [#allocation48], 0 }
  0x65   :  { %111 = vsyncpa [#allocation4], 0 }
  0x66   :  { %113 = vsyncpa [#allocation4 + $0x1], 0 }
  0x67   :  { %114 = vsyncpa [#allocation52], 0 }
  0x68   :  { %116 = vsyncpa [#allocation52 + $0x1], 0  ;;  %s7672_s0 = smov 0   ;;  %s7674_s22 = smov 0  }
  0x69   :  { %s7676_s23 = smov 0   ;;  %s7678_s26 = smov 0  }
  0x6a LB: > { %s9328_s8 = sld [smem:[#allocation103_spill]]  ;;  %s7693_s28 = sadd.s32 4294967295, %s7360_s26   ;;  %s7352_s22 = sphi %s7674_s22, %s9429_s22   ;;  %s7348_s0 = sphi %s7672_s0, %s9427_s0   ;;  %s7360_s26 = sphi %s7678_s26, %s9426_s26   ;;  %s7356_s23 = sphi %s7676_s23, %s9430_s23  }
  0x6b   : > { %s9329_s13 = sld [smem:[#allocation87_spill]]  ;;  %s9239_s1 = sadd.s32 4294967294, %s7360_s26  }
  0x6c   : > { %s9330_s12 = sld [smem:[#allocation84_spill]]  ;;  %s7697_s2 = sadd.s32 1, %s7360_s26  }
  0x6d   : > { %s9331_s9 = sld [smem:[#allocation96_spill]]  ;;  %s129_s7 = sadd.s32 1, %s7356_s23 }
  0x6e   : > { %s9332_s4 = sld [smem:[#allocation98_spill]]  ;;  %s126_s10 = ssub.s32 %s7360_s26, %s7697_s2 }
  0x6f   : > { %s9333_s3 = sld [smem:[#allocation90_spill]]  ;;  %p136_p0 = scmp.ne.s32.totalorder %s7356_s23, %s7352_s22 }
  0x70   : > { %9334 = sst [smem:[#allocation107_spill]] %s7348_s0  ;;  %p127_p1 = scmp.eq.s32.totalorder %s126_s10, 0 }
  0x71   : > { %9335 = sst [smem:[#allocation108_spill]] %s7352_s22  ;;  %p137_p2 = scmp.eq.s32.totalorder %s7360_s26, 0 }
  0x72   : > { %9336 = sst [smem:[#allocation109_spill]] %s7697_s2  ;;  %p142_p3 = scmp.ne.s32.totalorder %s7352_s22, %s7348_s0 }
  0x73   : > { %p9272_p4 = scmp.eq.s32.totalorder %s7693_s28, 0  ;;  %p7711_p5 = por %p137_p2, %p136_p0 }
  0x74   : > { %s7709_s11 = scalar_select %p127_p1, %s7356_s23, %s129_s7  }
  0x75   : > { %p7717_p6 = por %p9272_p4, %p142_p3  ;;  %p1021_p7 = scmp.eq.s32.totalorder %s7693_s28, 1 }
  0x76   : > { %9337 = sst [smem:[#allocation110_spill]] %s7709_s11  ;;  %p1027_p8 = scmp.eq.s32.totalorder %s9239_s1, 1 }
  0x77   : > { %s9339_s16 = scalar_select %p7717_p6, 1, 0 }
  0x78   : > { %p5720_p9 = scmp.ge.s32.totalorder %s7360_s26, 1  ;;  %p1086_p10 = scmp.lt.s32.totalorder %s7360_s26, 3 }
  0x79   : > { %9340 = sst [smem:[#allocation111_spill]] %s9339_s16  ;;  %p7726_p11 = por %p1021_p7, %p136_p0 }
  0x7a   : > { %p7730_p12 = por %p1027_p8, %p142_p3  ;;  %p7734_p13 = pnand %p5720_p9, %p1086_p10 }
  0x7b   : > { %s9341_s18 = scalar_select %p7726_p11, 1, 0 }
  0x7c   : > { %s9343_s7 = scalar_select %p7730_p12, 1, 0 }
  0x7d   : > { %9342 = sst [smem:[#allocation112_spill]] %s9341_s18  ;;  %1090 = sbr.rel (%p7734_p13) target bundleno = 519 (0x207), region = 12 }
  0x7e   : > { %9344 = sst [smem:[#allocation113_spill]] %s9343_s7  ;;  %s1098_s1 = sshll.u32 (!%p7734_p13), %s7470_s17, 4  ;;  %s1099_s1 = int_to_ptr.hbm [resolvable:$true] %s1098_s1 }
  0x7f   : > { %s7405_s11 = smov (!%p7734_p13), [#allocation5]   ;;  %s1142_s0 = sshll.u32 (!%p7734_p13), %s7515_s30, 4  ;;  %s7742_s0 = int_to_ptr.hbm [resolvable:$true] %s1142_s0 }
  0x80   : > { %s1100_s2 = sshll.u32 (!%p7734_p13), %s7405_s11, 4  ;;  %s6304_s7 = sshra.s32 (!%p7734_p13), %s1099_s1, 4  ;;  %s1101_s2 = int_to_ptr.vmem [resolvable:$true] %s1100_s2  ;;  %s6305_s7 = int_to_ptr.hbm [resolvable:$true] %s6304_s7 }
  0x81   : > { %s6306_s29 = scalar_lea.hbm (!%p7734_p13), %s6305_s7, 8  ;;  %s6310_s5 = scalar_lea.hbm (!%p7734_p13), %s7470_s17, 8 }
  0x82   : > { %p6307_p0 = scmp.ne.s32.totalorder %s6305_s7, %s6306_s29  ;;  %p6311_p3 = scmp.lt.s32.totalorder %s6305_s7, %s7470_s17 }
  0x83   : > { %p6312_p7 = scmp.lt.s32.totalorder %s6310_s5, %s6306_s29 }
  0x84   : > { %p6308_p1 = pnand %p6307_p0, %p9272_p4 }
  0x85   : > { %p6313_p8 = por %p6312_p7, %p6311_p3 }
  0x86   : > { %p6309_p2 = pneg %p6308_p1 }
  0x88   : > { %p6314_p9 = pnand %p6313_p8, %p6309_p2 }
  0x8a   : > { %6317 = shalt.err (!%p6314_p9)
}
  0x8b   : > { %5866 = dma.hbm_to_vmem [thread:$0]  (%p9272_p4), %s1099_s1, 128, %s1101_s2, [#allocation6]  }
  0x8c   : > { %s7406_s11 = smov [#allocation8]   ;;  %s1167_s6 = sshll.u32 %s9330_s12, 4  ;;  %s1168_s6 = int_to_ptr.hbm [resolvable:$true] %s1167_s6 }
  0x8d   : > { %s1144_s18 = sshll.u32 %s7406_s11, 4  ;;  %s6332_s16 = sshra.s32 %s7742_s0, 4  ;;  %s1145_s18 = int_to_ptr.vmem [resolvable:$true] %s1144_s18  ;;  %s6333_s16 = int_to_ptr.hbm [resolvable:$true] %s6332_s16 }
  0x8e   : > { %s6334_s22 = scalar_lea.hbm %s6333_s16, 1  ;;  %s6338_s5 = scalar_lea.hbm %s7515_s30, 1 }
  0x8f   : > { %p6335_p10 = scmp.ne.s32.totalorder %s6333_s16, %s6334_s22  ;;  %p6339_p2 = scmp.lt.s32.totalorder %s6333_s16, %s7515_s30 }
  0x90   : > { %p6340_p3 = scmp.lt.s32.totalorder %s6338_s5, %s6334_s22 }
  0x91   : > { %p6336_p0 = pnand %p6335_p10, %p9272_p4 }
  0x92   : > { %p6341_p7 = por %p6340_p3, %p6339_p2 }
  0x93   : > { %p6337_p1 = pneg %p6336_p0 }
  0x95   : > { %p6342_p8 = pnand %p6341_p7, %p6337_p1 }
  0x97   : > { %6345 = shalt.err (!%p6342_p8)
}
  0x98   : > { %5870 = dma.hbm_to_vmem [thread:$0]  (%p9272_p4), %s7742_s0, 16, %s1145_s18, [#allocation9]  }
  0x99   : > { %s7407_s29 = smov [#allocation11]   ;;  %s1195_s2 = sshll.u32 %s7535_s27, 4  ;;  %s7760_s2 = int_to_ptr.hbm [resolvable:$true] %s1195_s2 }
  0x9a   : > { %s1169_s1 = sshll.u32 %s7407_s29, 4  ;;  %s6360_s16 = sshra.s32 %s1168_s6, 4  ;;  %s1170_s1 = int_to_ptr.vmem [resolvable:$true] %s1169_s1  ;;  %s6361_s16 = int_to_ptr.hbm [resolvable:$true] %s6360_s16 }
  0x9b   : > { %s6362_s22 = scalar_lea.hbm %s6361_s16, 32  ;;  %s6366_s7 = scalar_lea.hbm %s9330_s12, 32 }
  0x9c   : > { %p6363_p9 = scmp.ne.s32.totalorder %s6361_s16, %s6362_s22  ;;  %p6367_p1 = scmp.lt.s32.totalorder %s6361_s16, %s9330_s12 }
  0x9d   : > { %p6368_p2 = scmp.lt.s32.totalorder %s6366_s7, %s6362_s22 }
  0x9e   : > { %p6364_p10 = pnand %p6363_p9, %p9272_p4 }
  0x9f   : > { %p6369_p3 = por %p6368_p2, %p6367_p1 }
  0xa0   : > { %p6365_p0 = pneg %p6364_p10 }
  0xa2   : > { %p6370_p7 = pnand %p6369_p3, %p6365_p0 }
  0xa4   : > { %6373 = shalt.err (!%p6370_p7)
}
  0xa5   : > { %s9252_s0 = smov 128   ;;  %s9254_s18 = smov 8  }
  0xa6   : > { %5874 = dma.hbm_to_vmem [thread:$0]  (%p9272_p4), %s1168_s6, 512, %s1170_s1, [#allocation12], %s9252_s0, %s9252_s0, %s9254_s18  }
  0xa7   : > { %s1222_s11 = sshll.u32 %s9329_s13, 4  ;;  %s7410_s5 = smov [#allocation14]   ;;  %s7772_s11 = int_to_ptr.hbm [resolvable:$true] %s1222_s11 }
  0xa8   : > { %s1197_s29 = sshll.u32 %s7410_s5, 4  ;;  %s6388_s16 = sshra.s32 %s7760_s2, 4  ;;  %s1198_s29 = int_to_ptr.vmem [resolvable:$true] %s1197_s29  ;;  %s6389_s16 = int_to_ptr.hbm [resolvable:$true] %s6388_s16 }
  0xa9   : > { %s6390_s22 = scalar_lea.hbm %s6389_s16, 32  ;;  %s6394_s7 = scalar_lea.hbm %s7535_s27, 32 }
  0xaa   : > { %p6391_p8 = scmp.ne.s32.totalorder %s6389_s16, %s6390_s22  ;;  %p6395_p0 = scmp.lt.s32.totalorder %s6389_s16, %s7535_s27 }
  0xab   : > { %p6396_p1 = scmp.lt.s32.totalorder %s6394_s7, %s6390_s22 }
  0xac   : > { %p6392_p9 = pnand %p6391_p8, %p9272_p4 }
  0xad   : > { %p6397_p2 = por %p6396_p1, %p6395_p0 }
  0xae   : > { %p6393_p10 = pneg %p6392_p9 }
  0xb0   : > { %p6398_p3 = pnand %p6397_p2, %p6393_p10 }
  0xb2   : > { %6401 = shalt.err (!%p6398_p3)
}
  0xb3   : > { %5878 = dma.hbm_to_vmem [thread:$0]  (%p9272_p4), %s7760_s2, 512, %s1198_s29, [#allocation15], %s9252_s0, %s9252_s0, %s9254_s18  }
  0xb4   : > { %s7411_s6 = smov [#allocation17]   ;;  %s1246_s5 = sshll.u32 %s7555_s21, 4  ;;  %s7786_s5 = int_to_ptr.hbm [resolvable:$true] %s1246_s5 }
  0xb5   : > { %s1224_s1 = sshll.u32 %s7411_s6, 4  ;;  %s6416_s16 = sshra.s32 %s7772_s11, 4  ;;  %s1225_s1 = int_to_ptr.vmem [resolvable:$true] %s1224_s1  ;;  %s6417_s16 = int_to_ptr.hbm [resolvable:$true] %s6416_s16 }
  0xb6   : > { %s6418_s22 = scalar_lea.hbm %s6417_s16, 1  ;;  %s6422_s7 = scalar_lea.hbm %s9329_s13, 1 }
  0xb7   : > { %p6419_p7 = scmp.ne.s32.totalorder %s6417_s16, %s6418_s22  ;;  %p6423_p10 = scmp.lt.s32.totalorder %s6417_s16, %s9329_s13 }
  0xb8   : > { %p6424_p0 = scmp.lt.s32.totalorder %s6422_s7, %s6418_s22 }
  0xb9   : > { %p6420_p8 = pnand %p6419_p7, %p9272_p4 }
  0xba   : > { %p6425_p1 = por %p6424_p0, %p6423_p10 }
  0xbb   : > { %p6421_p9 = pneg %p6420_p8 }
  0xbd   : > { %p6426_p2 = pnand %p6425_p1, %p6421_p9 }
  0xbf   : > { %6429 = shalt.err (!%p6426_p2)
}
  0xc0   : > { %5882 = dma.hbm_to_vmem [thread:$0]  (%p9272_p4), %s7772_s11, 16, %s1225_s1, [#allocation18]  }
  0xc1   : > { %s1271_s2 = sshll.u32 %s9333_s3, 4  ;;  %s7412_s29 = smov [#allocation20]   ;;  %s7797_s2 = int_to_ptr.hbm [resolvable:$true] %s1271_s2 }
  0xc2   : > { %s1248_s6 = sshll.u32 %s7412_s29, 4  ;;  %s6444_s16 = sshra.s32 %s7786_s5, 4  ;;  %s1249_s6 = int_to_ptr.vmem [resolvable:$true] %s1248_s6  ;;  %s6445_s16 = int_to_ptr.hbm [resolvable:$true] %s6444_s16 }
  0xc3   : > { %s6446_s22 = scalar_lea.hbm %s6445_s16, 1  ;;  %s6450_s7 = scalar_lea.hbm %s7555_s21, 1 }
  0xc4   : > { %p6447_p3 = scmp.ne.s32.totalorder %s6445_s16, %s6446_s22  ;;  %p6451_p9 = scmp.lt.s32.totalorder %s6445_s16, %s7555_s21 }
  0xc5   : > { %p6452_p10 = scmp.lt.s32.totalorder %s6450_s7, %s6446_s22 }
  0xc6   : > { %p6448_p7 = pnand %p6447_p3, %p9272_p4 }
  0xc7   : > { %p6453_p0 = por %p6452_p10, %p6451_p9 }
  0xc8   : > { %p6449_p8 = pneg %p6448_p7 }
  0xca   : > { %p6454_p1 = pnand %p6453_p0, %p6449_p8 }
  0xcc   : > { %6457 = shalt.err (!%p6454_p1)
}
  0xcd   : > { %5886 = dma.hbm_to_vmem [thread:$0]  (%p9272_p4), %s7786_s5, 16, %s1249_s6, [#allocation21]  }
  0xce   : > { %s7413_s11 = smov [#allocation23]   ;;  %s1299_s29 = sshll.u32 %s7575_s19, 4  ;;  %s7808_s29 = int_to_ptr.hbm [resolvable:$true] %s1299_s29 }
  0xcf   : > { %s1273_s1 = sshll.u32 %s7413_s11, 4  ;;  %s6472_s16 = sshra.s32 %s7797_s2, 4  ;;  %s1274_s1 = int_to_ptr.vmem [resolvable:$true] %s1273_s1  ;;  %s6473_s16 = int_to_ptr.hbm [resolvable:$true] %s6472_s16 }
  0xd0   : > { %s6474_s22 = scalar_lea.hbm %s6473_s16, 32  ;;  %s6478_s7 = scalar_lea.hbm %s9333_s3, 32 }
  0xd1   : > { %p6475_p2 = scmp.ne.s32.totalorder %s6473_s16, %s6474_s22  ;;  %p6479_p8 = scmp.lt.s32.totalorder %s6473_s16, %s9333_s3 }
  0xd2   : > { %p6480_p9 = scmp.lt.s32.totalorder %s6478_s7, %s6474_s22 }
  0xd3   : > { %p6476_p3 = pnand %p6475_p2, %p9272_p4 }
  0xd4   : > { %p6481_p10 = por %p6480_p9, %p6479_p8 }
  0xd5   : > { %p6477_p7 = pneg %p6476_p3 }
  0xd7   : > { %p6482_p0 = pnand %p6481_p10, %p6477_p7 }
  0xd9   : > { %6485 = shalt.err (!%p6482_p0)
}
  0xda   : > { %5890 = dma.hbm_to_vmem [thread:$0]  (%p9272_p4), %s7797_s2, 512, %s1274_s1, [#allocation24], %s9252_s0, %s9252_s0, %s9254_s18  }
  0xdb   : > { %s1326_s5 = sshll.u32 %s7585_s25, 4  ;;  %s7414_s6 = smov [#allocation26]   ;;  %s7822_s5 = int_to_ptr.hbm [resolvable:$true] %s1326_s5 }
  0xdc   : > { %s1301_s11 = sshll.u32 %s7414_s6, 4  ;;  %s6500_s16 = sshra.s32 %s7808_s29, 4  ;;  %s1302_s11 = int_to_ptr.vmem [resolvable:$true] %s1301_s11  ;;  %s6501_s16 = int_to_ptr.hbm [resolvable:$true] %s6500_s16 }
  0xdd   : > { %s6502_s22 = scalar_lea.hbm %s6501_s16, 32  ;;  %s6506_s7 = scalar_lea.hbm %s7575_s19, 32 }
  0xde   : > { %p6503_p1 = scmp.ne.s32.totalorder %s6501_s16, %s6502_s22  ;;  %p6507_p7 = scmp.lt.s32.totalorder %s6501_s16, %s7575_s19 }
  0xdf   : > { %p6508_p8 = scmp.lt.s32.totalorder %s6506_s7, %s6502_s22 }
  0xe0   : > { %p6504_p2 = pnand %p6503_p1, %p9272_p4 }
  0xe1   : > { %p6509_p9 = por %p6508_p8, %p6507_p7 }
  0xe2   : > { %p6505_p3 = pneg %p6504_p2 }
  0xe4   : > { %p6510_p10 = pnand %p6509_p9, %p6505_p3 }
  0xe6   : > { %6513 = shalt.err (!%p6510_p10)
}
  0xe7   : > { %5894 = dma.hbm_to_vmem [thread:$0]  (%p9272_p4), %s7808_s29, 512, %s1302_s11, [#allocation27], %s9252_s0, %s9252_s0, %s9254_s18  }
  0xe8   : > { %s7415_s2 = smov [#allocation29]   ;;  %s1350_s6 = sshll.u32 %s7595_s14, 4  ;;  %s7836_s6 = int_to_ptr.hbm [resolvable:$true] %s1350_s6 }
  0xe9   : > { %s1328_s1 = sshll.u32 %s7415_s2, 4  ;;  %s6528_s16 = sshra.s32 %s7822_s5, 4  ;;  %s1329_s1 = int_to_ptr.vmem [resolvable:$true] %s1328_s1  ;;  %s6529_s16 = int_to_ptr.hbm [resolvable:$true] %s6528_s16 }
  0xea   : > { %s6530_s22 = scalar_lea.hbm %s6529_s16, 1  ;;  %s6534_s7 = scalar_lea.hbm %s7585_s25, 1 }
  0xeb   : > { %p6531_p0 = scmp.ne.s32.totalorder %s6529_s16, %s6530_s22  ;;  %p6535_p3 = scmp.lt.s32.totalorder %s6529_s16, %s7585_s25 }
  0xec   : > { %p6536_p7 = scmp.lt.s32.totalorder %s6534_s7, %s6530_s22 }
  0xed   : > { %p6532_p1 = pnand %p6531_p0, %p9272_p4 }
  0xee   : > { %p6537_p8 = por %p6536_p7, %p6535_p3 }
  0xef   : > { %p6533_p2 = pneg %p6532_p1 }
  0xf1   : > { %p6538_p9 = pnand %p6537_p8, %p6533_p2 }
  0xf3   : > { %6541 = shalt.err (!%p6538_p9)
}
  0xf4   : > { %5898 = dma.hbm_to_vmem [thread:$0]  (%p9272_p4), %s7822_s5, 16, %s1329_s1, [#allocation30]  }
  0xf5   : > { %s1374_s29 = sshll.u32 %s7605_s24, 4  ;;  %s7416_s11 = smov [#allocation32]   ;;  %s7847_s29 = int_to_ptr.hbm [resolvable:$true] %s1374_s29 }
  0xf6   : > { %s1352_s2 = sshll.u32 %s7416_s11, 4  ;;  %s6556_s16 = sshra.s32 %s7836_s6, 4  ;;  %s1353_s2 = int_to_ptr.vmem [resolvable:$true] %s1352_s2  ;;  %s6557_s16 = int_to_ptr.hbm [resolvable:$true] %s6556_s16 }
  0xf7   : > { %s6558_s22 = scalar_lea.hbm %s6557_s16, 1  ;;  %s6562_s7 = scalar_lea.hbm %s7595_s14, 1 }
  0xf8   : > { %p6559_p10 = scmp.ne.s32.totalorder %s6557_s16, %s6558_s22  ;;  %p6563_p2 = scmp.lt.s32.totalorder %s6557_s16, %s7595_s14 }
  0xf9   : > { %p6564_p3 = scmp.lt.s32.totalorder %s6562_s7, %s6558_s22 }
  0xfa   : > { %p6560_p0 = pnand %p6559_p10, %p9272_p4 }
  0xfb   : > { %p6565_p7 = por %p6564_p3, %p6563_p2 }
  0xfc   : > { %p6561_p1 = pneg %p6560_p0 }
  0xfe   : > { %p6566_p8 = pnand %p6565_p7, %p6561_p1 }
 0x100   : > { %6569 = shalt.err (!%p6566_p8)
}
 0x101   : > { %5902 = dma.hbm_to_vmem [thread:$0]  (%p9272_p4), %s7836_s6, 16, %s1353_s2, [#allocation33]  }
 0x102   : > { %s7417_s5 = smov [#allocation35]   ;;  %s1398_s11 = sshll.u32 %s9331_s9, 4  ;;  %s7858_s11 = int_to_ptr.hbm [resolvable:$true] %s1398_s11 }
 0x103   : > { %s1376_s1 = sshll.u32 %s7417_s5, 4  ;;  %s6584_s16 = sshra.s32 %s7847_s29, 4  ;;  %s1377_s1 = int_to_ptr.vmem [resolvable:$true] %s1376_s1  ;;  %s6585_s16 = int_to_ptr.hbm [resolvable:$true] %s6584_s16 }
 0x104   : > { %s6586_s22 = scalar_lea.hbm %s6585_s16, 1  ;;  %s6590_s7 = scalar_lea.hbm %s7605_s24, 1 }
 0x105   : > { %p6587_p9 = scmp.ne.s32.totalorder %s6585_s16, %s6586_s22  ;;  %p6591_p1 = scmp.lt.s32.totalorder %s6585_s16, %s7605_s24 }
 0x106   : > { %p6592_p2 = scmp.lt.s32.totalorder %s6590_s7, %s6586_s22 }
 0x107   : > { %p6588_p10 = pnand %p6587_p9, %p9272_p4 }
 0x108   : > { %p6593_p3 = por %p6592_p2, %p6591_p1 }
 0x109   : > { %p6589_p0 = pneg %p6588_p10 }
 0x10b   : > { %p6594_p7 = pnand %p6593_p3, %p6589_p0 }
 0x10d   : > { %6597 = shalt.err (!%p6594_p7)
}
 0x10e   : > { %5906 = dma.hbm_to_vmem [thread:$0]  (%p9272_p4), %s7847_s29, 16, %s1377_s1, [#allocation36]  }
 0x10f   : > { %s1422_s6 = sshll.u32 %s9332_s4, 4  ;;  %s7418_s2 = smov [#allocation38]   ;;  %s7869_s6 = int_to_ptr.hbm [resolvable:$true] %s1422_s6 }
 0x110   : > { %s1400_s5 = sshll.u32 %s7418_s2, 4  ;;  %s6612_s16 = sshra.s32 %s7858_s11, 4  ;;  %s1401_s5 = int_to_ptr.vmem [resolvable:$true] %s1400_s5  ;;  %s6613_s16 = int_to_ptr.hbm [resolvable:$true] %s6612_s16 }
 0x111   : > { %s6614_s22 = scalar_lea.hbm %s6613_s16, 1  ;;  %s6618_s7 = scalar_lea.hbm %s9331_s9, 1 }
 0x112   : > { %p6615_p8 = scmp.ne.s32.totalorder %s6613_s16, %s6614_s22  ;;  %p6619_p0 = scmp.lt.s32.totalorder %s6613_s16, %s9331_s9 }
 0x113   : > { %p6620_p1 = scmp.lt.s32.totalorder %s6618_s7, %s6614_s22 }
 0x114   : > { %p6616_p9 = pnand %p6615_p8, %p9272_p4 }
 0x115   : > { %p6621_p2 = por %p6620_p1, %p6619_p0 }
 0x116   : > { %p6617_p10 = pneg %p6616_p9 }
 0x118   : > { %p6622_p3 = pnand %p6621_p2, %p6617_p10 }
 0x11a   : > { %6625 = shalt.err (!%p6622_p3)
}
 0x11b   : > { %5910 = dma.hbm_to_vmem [thread:$0]  (%p9272_p4), %s7858_s11, 16, %s1401_s5, [#allocation39]  }
 0x11c   : > { %s7419_s29 = smov [#allocation41]   ;;  %s1446_s2 = sshll.u32 %s7635_s20, 4  ;;  %s7880_s2 = int_to_ptr.hbm [resolvable:$true] %s1446_s2 }
 0x11d   : > { %s1424_s1 = sshll.u32 %s7419_s29, 4  ;;  %s6640_s16 = sshra.s32 %s7869_s6, 4  ;;  %s1425_s1 = int_to_ptr.vmem [resolvable:$true] %s1424_s1  ;;  %s6641_s16 = int_to_ptr.hbm [resolvable:$true] %s6640_s16 }
 0x11e   : > { %s6642_s22 = scalar_lea.hbm %s6641_s16, 1  ;;  %s6646_s7 = scalar_lea.hbm %s9332_s4, 1 }
 0x11f   : > { %p6643_p7 = scmp.ne.s32.totalorder %s6641_s16, %s6642_s22  ;;  %p6647_p10 = scmp.lt.s32.totalorder %s6641_s16, %s9332_s4 }
 0x120   : > { %p6648_p0 = scmp.lt.s32.totalorder %s6646_s7, %s6642_s22 }
 0x121   : > { %p6644_p8 = pnand %p6643_p7, %p9272_p4 }
 0x122   : > { %p6649_p1 = por %p6648_p0, %p6647_p10 }
 0x123   : > { %p6645_p9 = pneg %p6644_p8 }
 0x125   : > { %p6650_p2 = pnand %p6649_p1, %p6645_p9 }
 0x127   : > { %6653 = shalt.err (!%p6650_p2)
}
 0x128   : > { %s9346_s11 = sld [smem:[#allocation101_spill]]  ;;  %s7420_s29 = smov [#allocation44]  }
 0x129   : > { %5914 = dma.hbm_to_vmem [thread:$0]  (%p9272_p4), %s7869_s6, 16, %s1425_s1, [#allocation42]  }
 0x12a   : > { %s1448_s0 = sshll.u32 %s7420_s29, 4  ;;  %s6668_s16 = sshra.s32 %s7880_s2, 4  ;;  %s1449_s0 = int_to_ptr.vmem [resolvable:$true] %s1448_s0  ;;  %s6669_s16 = int_to_ptr.hbm [resolvable:$true] %s6668_s16 }
 0x12b   : > { %s6670_s22 = scalar_lea.hbm %s6669_s16, 1  ;;  %s6674_s7 = scalar_lea.hbm %s7635_s20, 1 }
 0x12c   : > { %p6671_p3 = scmp.ne.s32.totalorder %s6669_s16, %s6670_s22  ;;  %p6675_p9 = scmp.lt.s32.totalorder %s6669_s16, %s7635_s20 }
 0x12d   : > { %p6676_p10 = scmp.lt.s32.totalorder %s6674_s7, %s6670_s22 }
 0x12e   : > { %s1472_s5 = sshll.u32 %s9346_s11, 4  ;;  %p6672_p7 = pnand %p6671_p3, %p9272_p4  ;;  %s7891_s5 = int_to_ptr.hbm [resolvable:$true] %s1472_s5 }
 0x12f   : > { %p6677_p0 = por %p6676_p10, %p6675_p9 }
 0x130   : > { %p6673_p8 = pneg %p6672_p7 }
 0x132   : > { %p6678_p1 = pnand %p6677_p0, %p6673_p8 }
 0x134   : > { %6681 = shalt.err (!%p6678_p1)
}
 0x135   : > { %s9347_s6 = sld [smem:[#allocation79_spill]]  ;;  %s7421_s1 = smov [#allocation47]  }
 0x136   : > { %5918 = dma.hbm_to_vmem [thread:$0]  (%p9272_p4), %s7880_s2, 16, %s1449_s0, [#allocation45]  }
 0x137   : > { %s1474_s29 = sshll.u32 %s7421_s1, 4  ;;  %s6696_s16 = sshra.s32 %s7891_s5, 4  ;;  %s1475_s29 = int_to_ptr.vmem [resolvable:$true] %s1474_s29  ;;  %s6697_s16 = int_to_ptr.hbm [resolvable:$true] %s6696_s16 }
 0x138   : > { %s6698_s22 = scalar_lea.hbm %s6697_s16, 1  ;;  %s6702_s7 = scalar_lea.hbm %s9346_s11, 1 }
 0x139   : > { %p6699_p2 = scmp.ne.s32.totalorder %s6697_s16, %s6698_s22  ;;  %p6703_p8 = scmp.lt.s32.totalorder %s6697_s16, %s9346_s11 }
 0x13a   : > { %p6704_p9 = scmp.lt.s32.totalorder %s6702_s7, %s6698_s22 }
 0x13b   : > { %s1118_s18 = sshll.u32 %s9347_s6, 4  ;;  %p6700_p3 = pnand %p6699_p2, %p9272_p4  ;;  %s7902_s18 = int_to_ptr.hbm [resolvable:$true] %s1118_s18 }
 0x13c   : > { %p6705_p10 = por %p6704_p9, %p6703_p8 }
 0x13d   : > { %p6701_p7 = pneg %p6700_p3 }
 0x13f   : > { %p6706_p0 = pnand %p6705_p10, %p6701_p7 }
 0x141   : > { %6709 = shalt.err (!%p6706_p0)
}
 0x142   : > { %s9348_s0 = sld [smem:[#allocation83_spill]]  ;;  %s7422_s3 = smov [#allocation7]  }
 0x143   : > { %5922 = dma.hbm_to_vmem [thread:$0]  (%p9272_p4), %s7891_s5, 16, %s1475_s29, [#allocation48]  }
 0x144   : > { %s1120_s4 = sshll.u32 %s7422_s3, 4  ;;  %s6724_s16 = sshra.s32 %s7902_s18, 4  ;;  %s1121_s4 = int_to_ptr.vmem [resolvable:$true] %s1120_s4  ;;  %s6725_s16 = int_to_ptr.hbm [resolvable:$true] %s6724_s16 }
 0x145   : > { %s6726_s22 = scalar_lea.hbm %s6725_s16, 32  ;;  %s6730_s7 = scalar_lea.hbm %s9347_s6, 32 }
 0x146   : > { %p6727_p1 = scmp.ne.s32.totalorder %s6725_s16, %s6726_s22  ;;  %p6731_p7 = scmp.lt.s32.totalorder %s6725_s16, %s9347_s6 }
 0x147   : > { %p6732_p8 = scmp.lt.s32.totalorder %s6730_s7, %s6726_s22 }
 0x148   : > { %s9349_s2 = smov %s9348_s0  ;;  %s1153_s1 = sshll.u32 %s9348_s0, 4  ;;  %s7913_s1 = int_to_ptr.hbm [resolvable:$true] %s1153_s1 }
 0x149   : > { %p6728_p2 = pnand %p6727_p1, %p9272_p4  ;;  %p6733_p9 = por %p6732_p8, %p6731_p7 }
 0x14b   : > { %p6729_p3 = pneg %p6728_p2 }
 0x14d   : > { %p6734_p10 = pnand %p6733_p9, %p6729_p3 }
 0x14f   : > { %6737 = shalt.err (!%p6734_p10)
}
 0x150   : > { %s9350_s5 = smov 8   ;;  %s9351_s3 = smov 128  }
 0x151   : > { %s9352_s29 = sld [smem:[#allocation85_spill]]  ;;  %s7423_s0 = smov [#allocation10]  }
 0x152   : > { %5868 = dma.hbm_to_vmem [thread:$0]  (%p9272_p4), %s7902_s18, 512, %s1121_s4, [#allocation6], %s9351_s3, %s9351_s3, %s9350_s5  }
 0x153   : > { %s1155_s9 = sshll.u32 %s7423_s0, 4  ;;  %s6752_s16 = sshra.s32 %s7913_s1, 4  ;;  %s1156_s9 = int_to_ptr.vmem [resolvable:$true] %s1155_s9  ;;  %s6753_s16 = int_to_ptr.hbm [resolvable:$true] %s6752_s16 }
 0x154   : > { %s6754_s22 = scalar_lea.hbm %s6753_s16, 32  ;;  %s6758_s7 = scalar_lea.hbm %s9349_s2, 32 }
 0x155   : > { %p6755_p0 = scmp.ne.s32.totalorder %s6753_s16, %s6754_s22  ;;  %p6759_p3 = scmp.lt.s32.totalorder %s6753_s16, %s9349_s2 }
 0x156   : > { %p6760_p7 = scmp.lt.s32.totalorder %s6758_s7, %s6754_s22 }
 0x157   : > { %s1181_s11 = sshll.u32 %s9352_s29, 4  ;;  %p6756_p1 = pnand %p6755_p0, %p9272_p4  ;;  %s7927_s11 = int_to_ptr.hbm [resolvable:$true] %s1181_s11 }
 0x158   : > { %p6761_p8 = por %p6760_p7, %p6759_p3 }
 0x159   : > { %p6757_p2 = pneg %p6756_p1 }
 0x15b   : > { %p6762_p9 = pnand %p6761_p8, %p6757_p2 }
 0x15d   : > { %6765 = shalt.err (!%p6762_p9)
}
 0x15e   : > { %s9353_s4 = sld [smem:[#allocation86_spill]]  ;;  %s7424_s0 = smov [#allocation13]  }
 0x15f   : > { %5872 = dma.hbm_to_vmem [thread:$0]  (%p9272_p4), %s7913_s1, 512, %s1156_s9, [#allocation9], %s9351_s3, %s9351_s3, %s9350_s5  }
 0x160   : > { %s1183_s6 = sshll.u32 %s7424_s0, 4  ;;  %s6780_s16 = sshra.s32 %s7927_s11, 4  ;;  %s1184_s6 = int_to_ptr.vmem [resolvable:$true] %s1183_s6  ;;  %s6781_s16 = int_to_ptr.hbm [resolvable:$true] %s6780_s16 }
 0x161   : > { %s6782_s22 = scalar_lea.hbm %s6781_s16, 32  ;;  %s6786_s7 = scalar_lea.hbm %s9352_s29, 32 }
 0x162   : > { %p6783_p10 = scmp.ne.s32.totalorder %s6781_s16, %s6782_s22  ;;  %p6787_p2 = scmp.lt.s32.totalorder %s6781_s16, %s9352_s29 }
 0x163   : > { %p6788_p3 = scmp.lt.s32.totalorder %s6786_s7, %s6782_s22 }
 0x164   : > { %s1210_s18 = sshll.u32 %s9353_s4, 4  ;;  %p6784_p0 = pnand %p6783_p10, %p9272_p4  ;;  %s7941_s18 = int_to_ptr.hbm [resolvable:$true] %s1210_s18 }
 0x165   : > { %p6789_p7 = por %p6788_p3, %p6787_p2 }
 0x166   : > { %p6785_p1 = pneg %p6784_p0 }
 0x168   : > { %p6790_p8 = pnand %p6789_p7, %p6785_p1 }
 0x16a   : > { %6793 = shalt.err (!%p6790_p8)
}
 0x16b   : > { %s9354_s9 = sld [smem:[#allocation88_spill]]  ;;  %s7425_s1 = smov [#allocation16]  }
 0x16c   : > { %5876 = dma.hbm_to_vmem [thread:$0]  (%p9272_p4), %s7927_s11, 512, %s1184_s6, [#allocation12], %s9351_s3, %s9351_s3, %s9350_s5  }
 0x16d   : > { %s1212_s0 = sshll.u32 %s7425_s1, 4  ;;  %s6808_s16 = sshra.s32 %s7941_s18, 4  ;;  %s1213_s0 = int_to_ptr.vmem [resolvable:$true] %s1212_s0  ;;  %s6809_s16 = int_to_ptr.hbm [resolvable:$true] %s6808_s16 }
 0x16e   : > { %s6810_s22 = scalar_lea.hbm %s6809_s16, 1  ;;  %s6814_s7 = scalar_lea.hbm %s9353_s4, 1 }
 0x16f   : > { %p6811_p9 = scmp.ne.s32.totalorder %s6809_s16, %s6810_s22  ;;  %p6815_p1 = scmp.lt.s32.totalorder %s6809_s16, %s9353_s4 }
 0x170   : > { %p6816_p2 = scmp.lt.s32.totalorder %s6814_s7, %s6810_s22 }
 0x171   : > { %s1234_s2 = sshll.u32 %s9354_s9, 4  ;;  %p6812_p10 = pnand %p6811_p9, %p9272_p4  ;;  %s7955_s2 = int_to_ptr.hbm [resolvable:$true] %s1234_s2 }
 0x172   : > { %p6817_p3 = por %p6816_p2, %p6815_p1 }
 0x173   : > { %p6813_p0 = pneg %p6812_p10 }
 0x175   : > { %p6818_p7 = pnand %p6817_p3, %p6813_p0 }
 0x177   : > { %6821 = shalt.err (!%p6818_p7)
}
 0x178   : > { %s9355_s11 = sld [smem:[#allocation89_spill]]  ;;  %s7426_s1 = smov [#allocation19]  }
 0x179   : > { %5880 = dma.hbm_to_vmem [thread:$0]  (%p9272_p4), %s7941_s18, 16, %s1213_s0, [#allocation15]  }
 0x17a   : > { %s1236_s12 = sshll.u32 %s7426_s1, 4  ;;  %s6836_s16 = sshra.s32 %s7955_s2, 4  ;;  %s1237_s12 = int_to_ptr.vmem [resolvable:$true] %s1236_s12  ;;  %s6837_s16 = int_to_ptr.hbm [resolvable:$true] %s6836_s16 }
 0x17b   : > { %s6838_s22 = scalar_lea.hbm %s6837_s16, 1  ;;  %s6842_s7 = scalar_lea.hbm %s9354_s9, 1 }
 0x17c   : > { %p6839_p8 = scmp.ne.s32.totalorder %s6837_s16, %s6838_s22  ;;  %p6843_p0 = scmp.lt.s32.totalorder %s6837_s16, %s9354_s9 }
 0x17d   : > { %p6844_p1 = scmp.lt.s32.totalorder %s6842_s7, %s6838_s22 }
 0x17e   : > { %s1257_s6 = sshll.u32 %s9355_s11, 4  ;;  %p6840_p9 = pnand %p6839_p8, %p9272_p4  ;;  %s7966_s6 = int_to_ptr.hbm [resolvable:$true] %s1257_s6 }
 0x17f   : > { %p6845_p2 = por %p6844_p1, %p6843_p0 }
 0x180   : > { %p6841_p10 = pneg %p6840_p9 }
 0x182   : > { %p6846_p3 = pnand %p6845_p2, %p6841_p10 }
 0x184   : > { %6849 = shalt.err (!%p6846_p3)
}
 0x185   : > { %s9356_s18 = sld [smem:[#allocation91_spill]]  ;;  %s7427_s0 = smov [#allocation22]  }
 0x186   : > { %5884 = dma.hbm_to_vmem [thread:$0]  (%p9272_p4), %s7955_s2, 16, %s1237_s12, [#allocation18]  }
 0x187   : > { %s1259_s1 = sshll.u32 %s7427_s0, 4  ;;  %s6864_s16 = sshra.s32 %s7966_s6, 4  ;;  %s1260_s1 = int_to_ptr.vmem [resolvable:$true] %s1259_s1  ;;  %s6865_s16 = int_to_ptr.hbm [resolvable:$true] %s6864_s16 }
 0x188   : > { %s6866_s22 = scalar_lea.hbm %s6865_s16, 32  ;;  %s6870_s7 = scalar_lea.hbm %s9355_s11, 32 }
 0x189   : > { %p6867_p7 = scmp.ne.s32.totalorder %s6865_s16, %s6866_s22  ;;  %p6871_p10 = scmp.lt.s32.totalorder %s6865_s16, %s9355_s11 }
 0x18a   : > { %p6872_p0 = scmp.lt.s32.totalorder %s6870_s7, %s6866_s22 }
 0x18b   : > { %s1285_s4 = sshll.u32 %s9356_s18, 4  ;;  %p6868_p8 = pnand %p6867_p7, %p9272_p4  ;;  %s7977_s4 = int_to_ptr.hbm [resolvable:$true] %s1285_s4 }
 0x18c   : > { %p6873_p1 = por %p6872_p0, %p6871_p10 }
 0x18d   : > { %p6869_p9 = pneg %p6868_p8 }
 0x18f   : > { %p6874_p2 = pnand %p6873_p1, %p6869_p9 }
 0x191   : > { %6877 = shalt.err (!%p6874_p2)
}
 0x192   : > { %s9357_s12 = sld [smem:[#allocation92_spill]]  ;;  %s7428_s0 = smov [#allocation25]  }
 0x193   : > { %5888 = dma.hbm_to_vmem [thread:$0]  (%p9272_p4), %s7966_s6, 512, %s1260_s1, [#allocation21], %s9351_s3, %s9351_s3, %s9350_s5  }
 0x194   : > { %s1287_s9 = sshll.u32 %s7428_s0, 4  ;;  %s6892_s16 = sshra.s32 %s7977_s4, 4  ;;  %s1288_s9 = int_to_ptr.vmem [resolvable:$true] %s1287_s9  ;;  %s6893_s16 = int_to_ptr.hbm [resolvable:$true] %s6892_s16 }
 0x195   : > { %s6894_s22 = scalar_lea.hbm %s6893_s16, 32  ;;  %s6898_s7 = scalar_lea.hbm %s9356_s18, 32 }
 0x196   : > { %p6895_p3 = scmp.ne.s32.totalorder %s6893_s16, %s6894_s22  ;;  %p6899_p9 = scmp.lt.s32.totalorder %s6893_s16, %s9356_s18 }
 0x197   : > { %p6900_p10 = scmp.lt.s32.totalorder %s6898_s7, %s6894_s22 }
 0x198   : > { %s1314_s2 = sshll.u32 %s9357_s12, 4  ;;  %p6896_p7 = pnand %p6895_p3, %p9272_p4  ;;  %s7991_s2 = int_to_ptr.hbm [resolvable:$true] %s1314_s2 }
 0x199   : > { %p6901_p0 = por %p6900_p10, %p6899_p9 }
 0x19a   : > { %p6897_p8 = pneg %p6896_p7 }
 0x19c   : > { %p6902_p1 = pnand %p6901_p0, %p6897_p8 }
 0x19e   : > { %6905 = shalt.err (!%p6902_p1)
}
 0x19f   : > { %s9358_s6 = sld [smem:[#allocation93_spill]]  ;;  %s7429_s1 = smov [#allocation28]  }
 0x1a0   : > { %5892 = dma.hbm_to_vmem [thread:$0]  (%p9272_p4), %s7977_s4, 512, %s1288_s9, [#allocation24], %s9351_s3, %s9351_s3, %s9350_s5  }
 0x1a1   : > { %s1316_s0 = sshll.u32 %s7429_s1, 4  ;;  %s6920_s16 = sshra.s32 %s7991_s2, 4  ;;  %s1317_s0 = int_to_ptr.vmem [resolvable:$true] %s1316_s0  ;;  %s6921_s16 = int_to_ptr.hbm [resolvable:$true] %s6920_s16 }
 0x1a2   : > { %s6922_s22 = scalar_lea.hbm %s6921_s16, 1  ;;  %s6926_s7 = scalar_lea.hbm %s9357_s12, 1 }
 0x1a3   : > { %p6923_p2 = scmp.ne.s32.totalorder %s6921_s16, %s6922_s22  ;;  %p6927_p8 = scmp.lt.s32.totalorder %s6921_s16, %s9357_s12 }
 0x1a4   : > { %p6928_p9 = scmp.lt.s32.totalorder %s6926_s7, %s6922_s22 }
 0x1a5   : > { %s1338_s11 = sshll.u32 %s9358_s6, 4  ;;  %p6924_p3 = pnand %p6923_p2, %p9272_p4  ;;  %s8005_s11 = int_to_ptr.hbm [resolvable:$true] %s1338_s11 }
 0x1a6   : > { %p6929_p10 = por %p6928_p9, %p6927_p8 }
 0x1a7   : > { %p6925_p7 = pneg %p6924_p3 }
 0x1a9   : > { %p6930_p0 = pnand %p6929_p10, %p6925_p7 }
 0x1ab   : > { %6933 = shalt.err (!%p6930_p0)
}
 0x1ac   : > { %s9359_s4 = sld [smem:[#allocation94_spill]]  ;;  %s7430_s1 = smov [#allocation31]  }
 0x1ad   : > { %5896 = dma.hbm_to_vmem [thread:$0]  (%p9272_p4), %s7991_s2, 16, %s1317_s0, [#allocation27]  }
 0x1ae   : > { %s1340_s13 = sshll.u32 %s7430_s1, 4  ;;  %s6948_s16 = sshra.s32 %s8005_s11, 4  ;;  %s1341_s13 = int_to_ptr.vmem [resolvable:$true] %s1340_s13  ;;  %s6949_s16 = int_to_ptr.hbm [resolvable:$true] %s6948_s16 }
 0x1af   : > { %s6950_s22 = scalar_lea.hbm %s6949_s16, 1  ;;  %s6954_s7 = scalar_lea.hbm %s9358_s6, 1 }
 0x1b0   : > { %p6951_p1 = scmp.ne.s32.totalorder %s6949_s16, %s6950_s22  ;;  %p6955_p7 = scmp.lt.s32.totalorder %s6949_s16, %s9358_s6 }
 0x1b1   : > { %p6956_p8 = scmp.lt.s32.totalorder %s6954_s7, %s6950_s22 }
 0x1b2   : > { %s1362_s9 = sshll.u32 %s9359_s4, 4  ;;  %p6952_p2 = pnand %p6951_p1, %p9272_p4  ;;  %s8016_s9 = int_to_ptr.hbm [resolvable:$true] %s1362_s9 }
 0x1b3   : > { %p6957_p9 = por %p6956_p8, %p6955_p7 }
 0x1b4   : > { %p6953_p3 = pneg %p6952_p2 }
 0x1b6   : > { %p6958_p10 = pnand %p6957_p9, %p6953_p3 }
 0x1b8   : > { %6961 = shalt.err (!%p6958_p10)
}
 0x1b9   : > { %s9360_s2 = sld [smem:[#allocation95_spill]]  ;;  %s7431_s0 = smov [#allocation34]  }
 0x1ba   : > { %5900 = dma.hbm_to_vmem [thread:$0]  (%p9272_p4), %s8005_s11, 16, %s1341_s13, [#allocation30]  }
 0x1bb   : > { %s1364_s1 = sshll.u32 %s7431_s0, 4  ;;  %s6976_s16 = sshra.s32 %s8016_s9, 4  ;;  %s1365_s1 = int_to_ptr.vmem [resolvable:$true] %s1364_s1  ;;  %s6977_s16 = int_to_ptr.hbm [resolvable:$true] %s6976_s16 }
 0x1bc   : > { %s6978_s22 = scalar_lea.hbm %s6977_s16, 1  ;;  %s6982_s7 = scalar_lea.hbm %s9359_s4, 1 }
 0x1bd   : > { %p6979_p0 = scmp.ne.s32.totalorder %s6977_s16, %s6978_s22  ;;  %p6983_p3 = scmp.lt.s32.totalorder %s6977_s16, %s9359_s4 }
 0x1be   : > { %p6984_p7 = scmp.lt.s32.totalorder %s6982_s7, %s6978_s22 }
 0x1bf   : > { %s1386_s12 = sshll.u32 %s9360_s2, 4  ;;  %p6980_p1 = pnand %p6979_p0, %p9272_p4  ;;  %s8027_s12 = int_to_ptr.hbm [resolvable:$true] %s1386_s12 }
 0x1c0   : > { %p6985_p8 = por %p6984_p7, %p6983_p3 }
 0x1c1   : > { %p6981_p2 = pneg %p6980_p1 }
 0x1c3   : > { %p6986_p9 = pnand %p6985_p8, %p6981_p2 }
 0x1c5   : > { %6989 = shalt.err (!%p6986_p9)
}
 0x1c6   : > { %s9361_s13 = sld [smem:[#allocation97_spill]]  ;;  %s7432_s0 = smov [#allocation37]  }
 0x1c7   : > { %5904 = dma.hbm_to_vmem [thread:$0]  (%p9272_p4), %s8016_s9, 16, %s1365_s1, [#allocation33]  }
 0x1c8   : > { %s1388_s6 = sshll.u32 %s7432_s0, 4  ;;  %s7004_s16 = sshra.s32 %s8027_s12, 4  ;;  %s1389_s6 = int_to_ptr.vmem [resolvable:$true] %s1388_s6  ;;  %s7005_s16 = int_to_ptr.hbm [resolvable:$true] %s7004_s16 }
 0x1c9   : > { %s7006_s22 = scalar_lea.hbm %s7005_s16, 1  ;;  %s7010_s7 = scalar_lea.hbm %s9360_s2, 1 }
 0x1ca   : > { %p7007_p10 = scmp.ne.s32.totalorder %s7005_s16, %s7006_s22  ;;  %p7011_p2 = scmp.lt.s32.totalorder %s7005_s16, %s9360_s2 }
 0x1cb   : > { %p7012_p3 = scmp.lt.s32.totalorder %s7010_s7, %s7006_s22 }
 0x1cc   : > { %s1410_s11 = sshll.u32 %s9361_s13, 4  ;;  %p7008_p0 = pnand %p7007_p10, %p9272_p4  ;;  %s8038_s11 = int_to_ptr.hbm [resolvable:$true] %s1410_s11 }
 0x1cd   : > { %p7013_p7 = por %p7012_p3, %p7011_p2 }
 0x1ce   : > { %p7009_p1 = pneg %p7008_p0 }
 0x1d0   : > { %p7014_p8 = pnand %p7013_p7, %p7009_p1 }
 0x1d2   : > { %7017 = shalt.err (!%p7014_p8)
}
 0x1d3   : > { %s9362_s9 = sld [smem:[#allocation99_spill]]  ;;  %s7433_s1 = smov [#allocation40]  }
 0x1d4   : > { %5908 = dma.hbm_to_vmem [thread:$0]  (%p9272_p4), %s8027_s12, 16, %s1389_s6, [#allocation36]  }
 0x1d5   : > { %s1412_s0 = sshll.u32 %s7433_s1, 4  ;;  %s7032_s16 = sshra.s32 %s8038_s11, 4  ;;  %s1413_s0 = int_to_ptr.vmem [resolvable:$true] %s1412_s0  ;;  %s7033_s16 = int_to_ptr.hbm [resolvable:$true] %s7032_s16 }
 0x1d6   : > { %s7034_s22 = scalar_lea.hbm %s7033_s16, 1  ;;  %s7038_s7 = scalar_lea.hbm %s9361_s13, 1 }
 0x1d7   : > { %p7035_p9 = scmp.ne.s32.totalorder %s7033_s16, %s7034_s22  ;;  %p7039_p1 = scmp.lt.s32.totalorder %s7033_s16, %s9361_s13 }
 0x1d8   : > { %p7040_p2 = scmp.lt.s32.totalorder %s7038_s7, %s7034_s22 }
 0x1d9   : > { %s1434_s4 = sshll.u32 %s9362_s9, 4  ;;  %p7036_p10 = pnand %p7035_p9, %p9272_p4  ;;  %s8049_s4 = int_to_ptr.hbm [resolvable:$true] %s1434_s4 }
 0x1da   : > { %p7041_p3 = por %p7040_p2, %p7039_p1 }
 0x1db   : > { %p7037_p0 = pneg %p7036_p10 }
 0x1dd   : > { %p7042_p7 = pnand %p7041_p3, %p7037_p0 }
 0x1df   : > { %7045 = shalt.err (!%p7042_p7)
}
 0x1e0   : > { %s9363_s12 = sld [smem:[#allocation100_spill]]  ;;  %s7434_s1 = smov [#allocation43]  }
 0x1e1   : > { %5912 = dma.hbm_to_vmem [thread:$0]  (%p9272_p4), %s8038_s11, 16, %s1413_s0, [#allocation39]  }
 0x1e2   : > { %s1436_s2 = sshll.u32 %s7434_s1, 4  ;;  %s7060_s16 = sshra.s32 %s8049_s4, 4  ;;  %s1437_s2 = int_to_ptr.vmem [resolvable:$true] %s1436_s2  ;;  %s7061_s16 = int_to_ptr.hbm [resolvable:$true] %s7060_s16 }
 0x1e3   : > { %s7062_s22 = scalar_lea.hbm %s7061_s16, 1  ;;  %s7066_s7 = scalar_lea.hbm %s9362_s9, 1 }
 0x1e4   : > { %p7063_p8 = scmp.ne.s32.totalorder %s7061_s16, %s7062_s22  ;;  %p7067_p0 = scmp.lt.s32.totalorder %s7061_s16, %s9362_s9 }
 0x1e5   : > { %p7068_p1 = scmp.lt.s32.totalorder %s7066_s7, %s7062_s22 }
 0x1e6   : > { %s1457_s6 = sshll.u32 %s9363_s12, 4  ;;  %p7064_p9 = pnand %p7063_p8, %p9272_p4  ;;  %s8060_s6 = int_to_ptr.hbm [resolvable:$true] %s1457_s6 }
 0x1e7   : > { %p7069_p2 = por %p7068_p1, %p7067_p0 }
 0x1e8   : > { %p7065_p10 = pneg %p7064_p9 }
 0x1ea   : > { %p7070_p3 = pnand %p7069_p2, %p7065_p10 }
 0x1ec   : > { %7073 = shalt.err (!%p7070_p3)
}
 0x1ed   : > { %5916 = dma.hbm_to_vmem [thread:$0]  (%p9272_p4), %s8049_s4, 16, %s1437_s2, [#allocation42]  }
 0x1ee   : > { %s7435_s11 = smov [#allocation46]   ;;  %s1487_s1 = sshll.u32 %s9328_s8, 4  ;;  %s1488_s1 = int_to_ptr.hbm [resolvable:$true] %s1487_s1 }
 0x1ef   : > { %s1459_s0 = sshll.u32 %s7435_s11, 4  ;;  %s7088_s13 = sshra.s32 %s8060_s6, 4  ;;  %s1460_s0 = int_to_ptr.vmem [resolvable:$true] %s1459_s0  ;;  %s7089_s13 = int_to_ptr.hbm [resolvable:$true] %s7088_s13 }
 0x1f0   : > { %s7090_s16 = scalar_lea.hbm %s7089_s13, 32  ;;  %s7094_s22 = scalar_lea.hbm %s9363_s12, 32 }
 0x1f1   : > { %p7091_p7 = scmp.ne.s32.totalorder %s7089_s13, %s7090_s16  ;;  %p7095_p10 = scmp.lt.s32.totalorder %s7089_s13, %s9363_s12 }
 0x1f2   : > { %p7096_p0 = scmp.lt.s32.totalorder %s7094_s22, %s7090_s16 }
 0x1f3   : > { %p7092_p8 = pnand %p7091_p7, %p9272_p4 }
 0x1f4   : > { %p7097_p1 = por %p7096_p0, %p7095_p10 }
 0x1f5   : > { %p7093_p9 = pneg %p7092_p8 }
 0x1f7   : > { %p7098_p2 = pnand %p7097_p1, %p7093_p9 }
 0x1f9   : > { %7101 = shalt.err (!%p7098_p2)
}
 0x1fa   : > { %5920 = dma.hbm_to_vmem [thread:$0]  (%p9272_p4), %s8060_s6, 512, %s1460_s0, [#allocation45], %s9351_s3, %s9351_s3, %s9350_s5  }
 0x1fb   : > { %s7436_s4 = smov [#allocation49]   ;;  %s7116_s7 = sshra.s32 %s1488_s1, 4  ;;  %s7117_s7 = int_to_ptr.hbm [resolvable:$true] %s7116_s7 }
 0x1fc   : > { %s1489_s2 = sshll.u32 %s7436_s4, 4  ;;  %s7118_s13 = scalar_lea.hbm %s7117_s7, 1  ;;  %s1490_s2 = int_to_ptr.vmem [resolvable:$true] %s1489_s2 }
 0x1fd   : > { %p7119_p3 = scmp.ne.s32.totalorder %s7117_s7, %s7118_s13  ;;  %s7122_s11 = scalar_lea.hbm %s9328_s8, 1 }
 0x1fe   : > { %p7123_p9 = scmp.lt.s32.totalorder %s7117_s7, %s9328_s8  ;;  %p7124_p10 = scmp.lt.s32.totalorder %s7122_s11, %s7118_s13 }
 0x1ff   : > { %p7120_p7 = pnand %p7119_p3, %p9272_p4 }
 0x200   : > { %p7125_p0 = por %p7124_p10, %p7123_p9 }
 0x201   : > { %p7121_p8 = pneg %p7120_p7 }
 0x203   : > { %p7126_p1 = pnand %p7125_p0, %p7121_p8 }
 0x205   : > { %7129 = shalt.err (!%p7126_p1)
}
 0x206   : > { %5924 = dma.hbm_to_vmem [thread:$0]  (%p9272_p4), %s1488_s1, 16, %s1490_s2, [#allocation48]  }
 0x207 PF: > { %s9364_s5 = sld [smem:[#allocation72_spill]]  ;;  %s1500_s3 = sand.u32 1, %s7356_s23  }
 0x208   : > { %s5753_s6 = sshll.u32 %s7360_s26, 3  ;;  %p6037_p3 = scmp.lt.s32.totalorder %s7360_s26, 2 }
 0x209   : > { %s5752_s0 = sshll.u32 %s1500_s3, 3  ;;  %s1501_s2 = scalar_lea.sflag [#allocation3], %s1500_s3 }
 0x20a   : > { %s1504_s4 = scalar_lea.vmem [#allocation2], %s5752_s0  ;;  %p8095_p7 = pnand %p6037_p3, %p7711_p5 }
 0x20b   : > { %s1512_s7 = sshll.u32 %s1504_s4, 4  ;;  %s1513_s7 = int_to_ptr.vmem [resolvable:$true] %s1512_s7 }
 0x20c   : > { %p7148_p9 = pneg %p8095_p7 }
 0x20d   : > { %s1508_s16 = scalar_lea.hbm %s9364_s5, %s5753_s6  ;;  %s7151_s6 = scalar_lea.hbm %s9364_s5, 16 }
 0x20e   : > { %s1510_s22 = sshll.u32 %s1508_s16, 4  ;;  %s1511_s22 = int_to_ptr.hbm [resolvable:$true] %s1510_s22 }
 0x20f   : > { %s7144_s13 = sshra.s32 %s1511_s22, 4  ;;  %s7145_s13 = int_to_ptr.hbm [resolvable:$true] %s7144_s13 }
 0x210   : > { %s7146_s11 = scalar_lea.hbm %s7145_s13, 8  ;;  %p7152_p1 = scmp.lt.s32.totalorder %s7145_s13, %s9364_s5 }
 0x211   : > { %p7147_p8 = scmp.ne.s32.totalorder %s7145_s13, %s7146_s11  ;;  %p7153_p2 = scmp.lt.s32.totalorder %s7151_s6, %s7146_s11 }
 0x213   : > { %p7149_p10 = pnand %p7148_p9, %p7147_p8  ;;  %p7154_p4 = por %p7153_p2, %p7152_p1 }
 0x215   : > { %p7150_p0 = pneg %p7149_p10 }
 0x217   : > { %p7155_p12 = pnand %p7154_p4, %p7150_p0 }
 0x219   : > { %7158 = shalt.err (!%p7155_p12)
}
 0x21a   : > { %5996 = dma.hbm_to_vmem [thread:$0]  (!%p8095_p7), %s1511_s22, 128, %s1513_s7, %s1501_s2  }
 0x21b   : > { %1543 = sbr.rel (%p7734_p13) target bundleno = 5213 (0x145d), region = 184  ;;  %s9366_s15 = sld [smem:[#allocation108_spill]] (!%p7734_p13) }
 0x221   : > { %s8108_s0 = sand.u32 1, %s9366_s15  }
 0x222   : > { %s8111_s16 = sshll.u32 %s8108_s0, 3  ;;  %s1546_s4 = scalar_lea.sflag [#allocation3], %s8108_s0 }
 0x223   : > { %s1549_s13 = scalar_lea.vmem [#allocation2], %s8111_s16 }
 0x224   : > { %7275 = dma.done.wait (%p7717_p6), %s1546_s4, 128  }
 0x225   : > { %7277 = vsyncadd (%p7717_p6), %s1546_s4, 4294967168  ;;  %p9368_p4 = scmp.eq.s32.totalorder %s7693_s28, 0 }
 0x227   : > { %7279 = dma.done.wait (%p9368_p4), [#allocation6], 640   ;;  %p9369_p5 = pmov %p9368_p4 }
 0x228   : > { %p9370_p12 = pmov %p9368_p4 }
 0x229   : > { %7281 = vsyncadd (%p9369_p5), [#allocation6], 4294966656 }
 0x22a   : > { %7283 = dma.done.wait (%p9370_p12), [#allocation9], 528   ;;  %p9371_p13 = pmov %p9368_p4 }
 0x22b   : > { %p9372_p2 = pmov %p9368_p4 }
 0x22c   : > { %7285 = vsyncadd (%p9371_p13), [#allocation9], 4294966768 }
 0x22d   : > { %7287 = dma.done.wait (%p9372_p2), [#allocation12], 1024   ;;  %p9373_p3 = pmov %p9372_p2 }
 0x22e   : > { %p9374_p6 = pmov %p9372_p2 }
 0x22f   : > { %7289 = vsyncadd (%p9373_p3), [#allocation12], 4294966272 }
 0x230   : > { %7291 = dma.done.wait (%p9374_p6), [#allocation15], 528   ;;  %p9375_p7 = pmov %p9372_p2 }
 0x231   : > { %p9376_p8 = pmov %p9372_p2 }
 0x232   : > { %7293 = vsyncadd (%p9375_p7), [#allocation15], 4294966768 }
 0x233   : > { %7295 = dma.done.wait (%p9376_p8), [#allocation18], 32   ;;  %p9377_p9 = pmov %p9372_p2 }
 0x234   : > { %p9378_p10 = pmov %p9372_p2 }
 0x235   : > { %7297 = vsyncadd (%p9377_p9), [#allocation18], 4294967264 }
 0x236   : > { %7299 = dma.done.wait (%p9378_p10), [#allocation21], 528   ;;  %p9379_p0 = pmov %p9372_p2 }
 0x238   : > { %7301 = vsyncadd (%p9379_p0), [#allocation21], 4294966768  ;;  %p9380_p1 = pmov %p9379_p0 }
 0x239   : > { %p9381_p4 = pmov %p9379_p0 }
 0x23a   : > { %7303 = dma.done.wait (%p9380_p1), [#allocation24], 1024  }
 0x23b   : > { %7305 = vsyncadd (%p9381_p4), [#allocation24], 4294966272  ;;  %p9382_p5 = pmov %p9379_p0 }
 0x23c   : > { %p9383_p12 = pmov %p9379_p0 }
 0x23d   : > { %7307 = dma.done.wait (%p9382_p5), [#allocation27], 528  }
 0x23e   : > { %7309 = vsyncadd (%p9383_p12), [#allocation27], 4294966768  ;;  %p9384_p13 = pmov %p9379_p0 }
 0x23f   : > { %p9385_p2 = pmov %p9379_p0 }
 0x240   : > { %7311 = dma.done.wait (%p9384_p13), [#allocation30], 32  }
 0x241   : > { %7313 = vsyncadd (%p9385_p2), [#allocation30], 4294967264  ;;  %p9386_p3 = pmov %p9379_p0 }
 0x242   : > { %p9387_p6 = pmov %p9379_p0 }
 0x243   : > { %7315 = dma.done.wait (%p9386_p3), [#allocation33], 32  }
 0x244   : > { %7317 = vsyncadd (%p9387_p6), [#allocation33], 4294967264  ;;  %p9388_p7 = pmov %p9379_p0 }
 0x245   : > { %p9389_p8 = pmov %p9379_p0 }
 0x246   : > { %7319 = dma.done.wait (%p9388_p7), [#allocation36], 32  }
 0x247   : > { %7321 = vsyncadd (%p9389_p8), [#allocation36], 4294967264  ;;  %p9390_p9 = pmov %p9379_p0 }
 0x248   : > { %p9391_p10 = pmov %p9379_p0 }
 0x249   : > { %7323 = dma.done.wait (%p9390_p9), [#allocation39], 32  }
 0x24a   : > { %7325 = vsyncadd (%p9391_p10), [#allocation39], 4294967264 }
 0x24b   : > { %7327 = dma.done.wait (%p9379_p0), [#allocation42], 32   ;;  %p9392_p1 = pmov %p9379_p0 }
 0x24c   : > { %p9393_p4 = pmov %p9379_p0 }
 0x24d   : > { %7329 = vsyncadd (%p9392_p1), [#allocation42], 4294967264 }
 0x24e   : > { %7331 = dma.done.wait (%p9393_p4), [#allocation45], 528   ;;  %p9394_p5 = pmov %p9379_p0 }
 0x24f   : > { %p9395_p12 = pmov %p9379_p0 }
 0x250   : > { %7333 = vsyncadd (%p9394_p5), [#allocation45], 4294966768 }
 0x251   : > { %7335 = dma.done.wait (%p9395_p12), [#allocation48], 32   ;;  %p9396_p13 = pmov %p9379_p0 }
 0x252   : > { %s9397_s10 = sld [smem:[#allocation76_spill]]  ;;  %v8189_v8 = vld [vmem:[%s1549_s13] sm:$0xff]  ;;  %vm1854_vm0 = vcmask 261120   ;;  %s9284_s11 = smov 104   ;;  %v7440_v17 = vmov 1983009808  }
 0x253   : > { %7337 = vsyncadd (%p9396_p13), [#allocation48], 4294967264  ;;  %s9398_s22 = sld [smem:[#allocation77_spill]]  ;;  %s9282_s6 = smov 120   ;;  %v1951_v18 = vunpack.c.l.s4 %v7440_v17  ;;  %vm1946_vm1 = vcmask 1047556   ;;  %vm2296_vm2 = vcmask 64512  }
 0x254   : > { %s9400_s1 = sld [smem:[#allocation81_spill]]  ;;  %s9279_s15 = smov 112   ;;  %v7441_v32 = vmov 1934713408   ;;  %vm2660_vm3 = vcmask 130048   ;;  %vm2662_vm4 = vcmask 195584  }
 0x255   : > { %s9401_s2 = sld [smem:[#allocation80_spill]]  ;;  %v8203_v23 = vunpack.c.0.s8 %v1951_v18  ;;  %v1975_v33 = vunpack.c.l.s4 %v7441_v32  ;;  %s9277_s13 = smov 24  }
 0x256   : > { %s9402_s3 = sld [smem:[#allocation78_spill]]  ;;  %p1826_p2 = scmp.lt.s32.totalorder %s7693_s28, 1 }
 0x257   : > { %v8213_v41 = vunpack.c.0.s8 %v1975_v33  ;;  %s9403_s4 = sld [smem:[#allocation82_spill]] }
 0x258   : > { %v1849_v0 = vld [vmem:[%s9397_s10 + $0x18] sm:$0xff]  ;;  %v1848_v2 = vld [vmem:[%s9397_s10 + $0x10] sm:$0xff]  ;;  %v1847_v4 = vld [vmem:[%s9397_s10 + $0x8] sm:$0xff] }
 0x259   : > { %s9399_s7 = smov %s9398_s22  ;;  %v1882_v1 = vld [vmem:[%s9398_s22 + $0x18] sm:$0xff]  ;;  %1870 = vmatpush.msra.mxu2 %v1849_v0  ;;  %v1846_v6 = vld [vmem:[%s9397_s10] sm:$0xff]  ;;  %s9275_s22 = smov 16  }
 0x25a   : > { %1899 = vmatpush.msra.mxu1 %v1882_v1  ;;  %v1881_v3 = vld [vmem:[%s9399_s7 + $0x10] sm:$0xff]  ;;  %v1880_v5 = vld [vmem:[%s9399_s7 + $0x8] sm:$0xff]  ;;  %v1879_v7 = vld [vmem:[%s9399_s7] sm:$0xff] }
 0x25b   : > { %1871 = vmatpush.msra.mxu2 %v1848_v2  ;;  %v6216_v9 = vld [vmem:[%s9400_s1] ss:$0 sm:$0xff]  ;;  %s9273_s1 = smov 8  }
 0x25c   : > { %1900 = vmatpush.msra.mxu1 %v1881_v3  ;;  %v6217_v12 = vld [vmem:[%s9401_s2] ss:$0 sm:$0xff]  ;;  %s9404_s2 = sld [smem:[#allocation75_spill]] }
 0x25d   : > { %1872 = vmatpush.msra.mxu2 %v1847_v4 }
 0x25e   : > { %1901 = vmatpush.msra.mxu1 %v1880_v5  ;;  %v1910_v5 = vld [vmem:[%s9402_s3 + $0x18] sm:$0xff] }
 0x25f   : > { %1873 = vmatpush.msra.mxu2 %v1846_v6  ;;  %v1909_v6 = vld [vmem:[%s9402_s3 + $0x10] sm:$0xff] }
 0x260   : > { %1902 = vmatpush.msra.mxu1 %v1879_v7  ;;  %5793 = vmatmul.msk.f32.vlgmr.msra.gmra.mxu2 %vm1854_vm0, %v8189_v8 }
 0x261   : > { %5794 = vmatmul.msk.f32.vlgmr.msra.gmra.mxu1 %vm1854_vm0, %v8189_v8  ;;  %1927 = vmatpush.msrb.mxu2 %v1910_v5 }
 0x263   : > { %1928 = vmatpush.msrb.mxu2 %v1909_v6 }
 0x2de   : > { %v1904_v10 = vpop.f32.mrf.mxu1 }
 0x2df   : > { %v1905_v11 = vadd.f32 %v6216_v9, %v1904_v10 }
 0x2e1   : > { %2063 = vrot.lane.b32.xlu1 %v1905_v11, %s9284_s11  ;;  %2057 = vrot.lane.b32.xlu0 %v1905_v11, %s9282_s6  ;;  %v2068_v37 = vrot.slane %v1905_v11, 4 }
 0x2e3   : > { %v1875_v13 = vpop.f32.mrf.mxu2 }
 0x2e4   : > { %v1876_v14 = vadd.f32 %v6217_v12, %v1875_v13 }
 0x2e6   : > { %v1878_v15 = vmul.f32 0.35355338, %v1876_v14 }
 0x2e8   : > { %1939 = vrot.lane.b32.xlu2 %v1878_v15, %s9279_s15  ;;  %v1948_v20 = vrot.slane %v1878_v15, 4 }
 0x2e9   : > { %2060 = vrot.lane.b32.xlu0 %v1905_v11, %s9279_s15  ;;  %1936 = vrot.lane.b32.xlu1 %v1878_v15, %s9282_s6 }
 0x2f0   : > { %1942 = vrot.lane.b32.xlu2 %v1878_v15, %s9284_s11 }
 0x342   : > { %v1940_v16 = vpop.permute.xlu2 %1939 }
 0x343   : > { %v1945_v19 = vrot.slane %v1940_v16, 4  ;;  %v1949_v26 = vsel %vm1946_vm1, %v1940_v16, %v1948_v20  ;;  %v1908_v16 = vld [vmem:[%s9402_s3 + $0x8] sm:$0xff] }
 0x344   : > { %v1957_v30 = vperm.slane %v1949_v26, %v8203_v23  ;;  %v1907_v26 = vld [vmem:[%s9402_s3] sm:$0xff]  ;;  %1929 = vmatpush.msrb.mxu2 %v1908_v16 }
 0x345   : > { %v1947_v28 = vsel %vm1946_vm1, %v1945_v19, %v1878_v15 }
 0x346   : > { %v1953_v35 = vperm.slane %v1947_v28, %v8203_v23  ;;  %v1984_v40 = vrot.slane %v1957_v30, 4  ;;  %1930 = vmatpush.msrb.mxu2 %v1907_v26 }
 0x347   : > { %5795 = vmatmul.msk.f32.vlgmr.msrb.gmra.mxu2 %vm1854_vm0, %v8189_v8 }
 0x348   : > { %v1972_v49 = vrot.slane %v1953_v35, 4 }
 0x34a   : > { %v1943_v31 = vpop.permute.xlu2 %1942 }
 0x34b   : > { %v1958_v38 = vrot.slane %v1943_v31, 4 }
 0x353   : > { %v2064_v21 = vpop.permute.xlu1 %2063  ;;  %v2058_v22 = vpop.permute.xlu0 %2057 }
 0x354   : > { %v2078_v24 = vrot.slane %v2064_v21, 4  ;;  %v2080_v25 = vrot.slane %v2058_v22, 4 }
 0x356   : > { %v2081_v27 = vsel %vm1946_vm1, %v2064_v21, %v2080_v25  ;;  %v2079_v29 = vsel %vm1946_vm1, %v2078_v24, %v2058_v22 }
 0x357   : > { %v2089_v34 = vperm.slane %v2081_v27, %v8203_v23  ;;  %v2085_v36 = vperm.slane %v2079_v29, %v8203_v23 }
 0x359   : > { %v2102_v45 = vrot.slane %v2089_v34, 4  ;;  %v2090_v50 = vrot.slane %v2085_v36, 4 }
 0x35b   : > { %v2061_v39 = vpop.permute.xlu0 %2060  ;;  %v1937_v44 = vpop.permute.xlu1 %1936 }
 0x35c   : > { %v2066_v42 = vrot.slane %v2061_v39, 4  ;;  %v2069_v43 = vsel %vm1946_vm1, %v2061_v39, %v2068_v37  ;;  %v1959_v47 = vsel %vm1946_vm1, %v1958_v38, %v1937_v44  ;;  %v1960_v48 = vrot.slane %v1937_v44, 4 }
 0x35d   : > { %v2077_v46 = vperm.slane %v2069_v43, %v8203_v23  ;;  %v1965_v52 = vperm.slane %v1959_v47, %v8203_v23 }
 0x35e   : > { %v2067_v51 = vsel %vm1946_vm1, %v2066_v42, %v1905_v11  ;;  %v1961_v56 = vsel %vm1946_vm1, %v1943_v31, %v1960_v48 }
 0x35f   : > { %v2073_v53 = vperm.slane %v2067_v51, %v8203_v23  ;;  %v2103_v54 = vsel %vm1946_vm1, %v2102_v45, %v2077_v46  ;;  %v2104_v55 = vrot.slane %v2077_v46, 4  ;;  %v1969_v58 = vperm.slane %v1961_v56, %v8203_v23 }
 0x360   : > { %v2109_v57 = vperm.slane %v2103_v54, %v8213_v41  ;;  %v1970_v59 = vrot.slane %v1965_v52, 4  ;;  %v1973_v60 = vsel %vm1946_vm1, %v1965_v52, %v1972_v49 }
 0x361   : > { %v2091_v61 = vsel %vm1946_vm1, %v2090_v50, %v2073_v53  ;;  %v2092_v62 = vrot.slane %v2073_v53, 4  ;;  %v2105_v63 = vsel %vm1946_vm1, %v2089_v34, %v2104_v55  ;;  %v1981_v0 = vperm.slane %v1973_v60, %v8213_v41 }
 0x362   : > { %v2097_v1 = vperm.slane %v2091_v61, %v8213_v41  ;;  %v2113_v2 = vperm.slane %v2105_v63, %v8213_v41  ;;  %v2118_v3 = vrot.slane %v2109_v57, 4  ;;  %v1971_v4 = vsel %vm1946_vm1, %v1970_v59, %v1953_v35 }
 0x363   : > { %v2093_v7 = vsel %vm1946_vm1, %v2085_v36, %v2092_v62  ;;  %v1977_v9 = vperm.slane %v1971_v4, %v8213_v41  ;;  %v1982_v10 = vrot.slane %v1969_v58, 4  ;;  %v1985_v11 = vsel %vm1946_vm1, %v1969_v58, %v1984_v40 }
 0x364   : > { %v2101_v12 = vperm.slane %v2093_v7, %v8213_v41  ;;  %v2114_v13 = vrot.slane %v2097_v1, 4  ;;  %v2119_v14 = vsel %vm1946_vm1, 0.0, %v2118_v3  ;;  %v2120_v15 = vrot.slane %v2113_v2, 4 }
 0x365   : > { %v1983_v17 = vsel %vm1946_vm1, %v1982_v10, %v1957_v30  ;;  %v1993_v18 = vperm.slane %v1985_v11, %v8213_v41  ;;  %v1994_v19 = vrot.slane %v1977_v9, 4  ;;  %v1996_v20 = vrot.slane %v1981_v0, 4 }
 0x366   : > { %v2116_v21 = vrot.slane %v2101_v12, 4  ;;  %v2121_v22 = vsel %vm1946_vm1, 0.0, %v2120_v15  ;;  %v2133_v24 = vsel %vm1946_vm1, %v2120_v15, %v2109_v57  ;;  %v1989_v25 = vperm.slane %v1983_v17, %v8213_v41 }
 0x367   : > { %v2137_v27 = vperm.slane %v2133_v24, %v8203_v23  ;;  %v2138_v28 = vrot.slane %v2121_v22, 4  ;;  %v1995_v29 = vsel %vm1946_vm1, 0.0, %v1994_v19  ;;  %v1997_v30 = vsel %vm1946_vm1, 0.0, %v1996_v20 }
 0x368   : > { %v1998_v31 = vrot.slane %v1989_v25, 4  ;;  %v2000_v32 = vrot.slane %v1993_v18, 4  ;;  %v2002_v33 = vsel %vm1946_vm1, %v1996_v20, %v1977_v9  ;;  %v2007_v34 = vrot.slane %v1997_v30, 4 }
 0x369   : > { %v2115_v35 = vsel %vm1946_vm1, 0.0, %v2114_v13  ;;  %v2117_v36 = vsel %vm1946_vm1, 0.0, %v2116_v21  ;;  %v2122_v37 = vsel %vm1946_vm1, %v2116_v21, %v2097_v1  ;;  %v2139_v38 = vsel %vm1946_vm1, %v2138_v28, %v2119_v14 }
 0x36a   : > { %v2001_v39 = vsel %vm1946_vm1, 0.0, %v2000_v32  ;;  %v2126_v40 = vperm.slane %v2122_v37, %v8203_v23  ;;  %v2127_v42 = vrot.slane %v2117_v36, 4  ;;  %v2143_v43 = vperm.slane %v2139_v38, %v8203_v23 }
 0x36b   : > { %v2018_v44 = vrot.slane %v2001_v39, 4  ;;  %v2158_v45 = vrot.slane %v2137_v27, 4  ;;  %v1999_v46 = vsel %vm1946_vm1, 0.0, %v1998_v31  ;;  %v2006_v47 = vperm.slane %v2002_v33, %v8203_v23  ;;  %v1844_v33 = vld [vmem:[#allocation5] sm:$0xff] }
 0x36c   : > { %v2128_v48 = vsel %vm1946_vm1, %v2127_v42, %v2115_v35  ;;  %v2146_v49 = vrot.slane %v2126_v40, 4  ;;  %v2156_v50 = vrot.slane %v2143_v43, 4  ;;  %v2008_v51 = vsel %vm1946_vm1, %v2007_v34, %v1995_v29 }
 0x36d   : > { %v2132_v52 = vperm.slane %v2128_v48, %v8203_v23  ;;  %v2159_v53 = vsel %vm1946_vm1, %v2143_v43, %v2158_v45  ;;  %v2012_v54 = vperm.slane %v2008_v51, %v8203_v23  ;;  %v2013_v55 = vsel %vm1946_vm1, %v2000_v32, %v1989_v25 }
 0x36e   : > { %v2167_v56 = vperm.slane %v2159_v53, %v8213_v41  ;;  %v2157_v57 = vsel %vm1946_vm1, %v2156_v50, %v2137_v27  ;;  %v2017_v58 = vperm.slane %v2013_v55, %v8203_v23  ;;  %v2019_v59 = vsel %vm1946_vm1, %v2018_v44, %v1999_v46 }
 0x36f   : > { %v2147_v60 = vsel %vm1946_vm1, %v2132_v52, %v2146_v49  ;;  %v2144_v61 = vrot.slane %v2132_v52, 4  ;;  %v2163_v62 = vperm.slane %v2157_v57, %v8213_v41  ;;  %v2023_v63 = vperm.slane %v2019_v59, %v8203_v23 }
 0x370   : > { %v2155_v0 = vperm.slane %v2147_v60, %v8213_v41  ;;  %v2172_v1 = vrot.slane %v2167_v56, 4  ;;  %v2026_v2 = vrot.slane %v2006_v47, 4  ;;  %v2038_v3 = vrot.slane %v2017_v58, 4 }
 0x371   : > { %v2145_v4 = vsel %vm1946_vm1, %v2144_v61, %v2126_v40  ;;  %v2168_v5 = vrot.slane %v2163_v62, 4  ;;  %v2024_v6 = vrot.slane %v2012_v54, 4  ;;  %v2036_v7 = vrot.slane %v2023_v63, 4 }
 0x372   : > { %v2173_v9 = vsel %vm1946_vm1, %v2172_v1, %v2155_v0  ;;  %v2151_v10 = vperm.slane %v2145_v4, %v8213_v41  ;;  %v2174_v11 = vrot.slane %v2155_v0, 4  ;;  %v2027_v12 = vsel %vm1946_vm1, %v2012_v54, %v2026_v2 }
 0x373   : > { %5800 = vmatpush.xpose.msk.msra.mxu0 %vm2296_vm2, %v2173_v9  ;;  %v2039_v13 = vsel %vm1946_vm1, %v2023_v63, %v2038_v3  ;;  %v2025_v14 = vsel %vm1946_vm1, %v2024_v6, %v2006_v47  ;;  %v2037_v15 = vsel %vm1946_vm1, %v2036_v7, %v2017_v58  ;;  %v2035_v21 = vperm.slane %v2027_v12, %v8213_v41  ;;  %v6218_v47 = vld [vmem:[%s9403_s4] ss:$0 sm:$0xff]  ;;  %s9405_s4 = sld [smem:[#allocation73_spill]] }
 0x374   : > { %v2169_v16 = vsel %vm1946_vm1, %v2168_v5, %v2151_v10  ;;  %v2175_v17 = vsel %vm1946_vm1, %v2167_v56, %v2174_v11  ;;  %v2047_v18 = vperm.slane %v2039_v13, %v8213_v41  ;;  %v2170_v19 = vrot.slane %v2151_v10, 4 }
 0x375   : > { %5796 = vmatpush.xpose.msk.msra.mxu3 %vm2296_vm2, %v2169_v16  ;;  %v2043_v20 = vperm.slane %v2037_v15, %v8213_v41  ;;  %v2031_v25 = vperm.slane %v2025_v14, %v8213_v41  ;;  %v2054_v29 = vrot.slane %v2035_v21, 4 }
 0x376   : > { %v2052_v22 = vrot.slane %v2047_v18, 4  ;;  %v2171_v24 = vsel %vm1946_vm1, %v2163_v62, %v2170_v19 }
 0x377   : > { %5802 = vmatpush.xpose.msk.msrb.mxu0 %vm2296_vm2, %v2175_v17  ;;  %v2048_v26 = vrot.slane %v2043_v20, 4  ;;  %v2050_v30 = vrot.slane %v2031_v25, 4  ;;  %v2055_v31 = vsel %vm1946_vm1, %v2047_v18, %v2054_v29 }
 0x378   : > { %v2053_v27 = vsel %vm1946_vm1, %v2052_v22, %v2035_v21 }
 0x379   : > { %5798 = vmatpush.xpose.msk.msrb.mxu3 %vm2296_vm2, %v2171_v24  ;;  %5801 = vmatmul.msk.f32.vlgmr.msra.gmra.mxu0 %vm2296_vm2, %v2053_v27  ;;  %v2049_v28 = vsel %vm1946_vm1, %v2048_v26, %v2031_v25  ;;  %v2051_v32 = vsel %vm1946_vm1, %v2043_v20, %v2050_v30 }
 0x37a   : > { %5797 = vmatmul.msk.f32.vlgmr.msra.gmra.mxu3 %vm2296_vm2, %v2049_v28 }
 0x381   : > { %5803 = vmatmul.msk.f32.vlgmr.msrb.gmra.mxu0 %vm2296_vm2, %v2055_v31 }
 0x382   : > { %5799 = vmatmul.msk.f32.vlgmr.msrb.gmra.mxu3 %vm2296_vm2, %v2051_v32 }
 0x3ca   : > { %v1932_v48 = vpop.f32.mrf.mxu2 }
 0x3cb   : > { %v1933_v49 = vadd.f32 %v6218_v47, %v1932_v48 }
 0x3cd   : > { %v2188_v15 = vrot.slane %v1933_v49, 4 }
 0x3f6   : > { %v2372_v34 = vpop.f32.mrf.mxu0 }
 0x3f7   : > { %v2373_v35 = vadd.f32 %v2372_v34, %v1844_v33 }
 0x3f9   : > { %v2407_v36 = vsel %vm2296_vm2, %v2373_v35, -inf }
 0x3fa   : > { %2408 = vmax.xlane.f32.xlu2 %v2407_v36 }
 0x3fd   : > { %v2320_v37 = vpop.f32.mrf.mxu3 }
 0x3fe   : > { %v2321_v38 = vadd.f32 %v2320_v37, %v1844_v33  ;;  %v2398_v39 = vpop.f32.mrf.mxu0 }
 0x3ff   : > { %v2399_v40 = vadd.f32 %v2398_v39, %v1844_v33 }
 0x400   : > { %v2401_v42 = vsel %vm2296_vm2, %v2321_v38, -inf }
 0x401   : > { %v2410_v43 = vsel %vm2296_vm2, %v2399_v40, -inf  ;;  %2402 = vmax.xlane.f32.xlu0 %v2401_v42 }
 0x402   : > { %2411 = vmax.xlane.f32.xlu2 %v2410_v43 }
 0x405   : > { %v2346_v44 = vpop.f32.mrf.mxu3 }
 0x406   : > { %v2347_v45 = vadd.f32 %v2346_v44, %v1844_v33 }
 0x408   : > { %v2404_v46 = vsel %vm2296_vm2, %v2347_v45, -inf }
 0x409   : > { %2405 = vmax.xlane.f32.xlu1 %v2404_v46 }
 0x415   : > { %2177 = vrot.lane.b32.xlu0 %v1933_v49, %s9282_s6 }
 0x41a   : > { %2183 = vrot.lane.b32.xlu2 %v1933_v49, %s9284_s11 }
 0x422   : > { %2180 = vrot.lane.b32.xlu1 %v1933_v49, %s9279_s15 }
 0x46d   : > { %v2409_v50 = vpop.xlane.xlu2 %2408 }
 0x46e   : > { %v2415_v51 = vsub.f32 %v2373_v35, %v2409_v50 }
 0x470   : > { %v2421_v52 = vmul.f32 1.442695, %v2415_v51 }
 0x472   : > { %6239 = vpow2.f32 %v2421_v52 }
 0x474   : > { %v2403_v53 = vpop.xlane.xlu0 %2402 }
 0x475   : > { %v2412_v54 = vpop.xlane.xlu2 %2411  ;;  %v2413_v55 = vsub.f32 %v2321_v38, %v2403_v53 }
 0x476   : > { %v2416_v56 = vsub.f32 %v2399_v40, %v2412_v54 }
 0x477   : > { %v2417_v57 = vmul.f32 1.442695, %v2413_v55 }
 0x478   : > { %v8309_v58 = vpop.eup %6239  ;;  %v2423_v60 = vmul.f32 1.442695, %v2416_v56 }
 0x479   : > { %6241 = vpow2.f32 %v2417_v57  ;;  %v2431_v59 = vsel %vm2296_vm2, %v8309_v58, 0.0 }
 0x47a   : > { %2432 = vadd.xlane.f32.xlu2 %v2431_v59  ;;  %6243 = vpow2.f32 %v2423_v60 }
 0x47c   : > { %v2406_v61 = vpop.xlane.xlu1 %2405 }
 0x47d   : > { %v2414_v62 = vsub.f32 %v2347_v45, %v2406_v61  ;;  %v2184_v7 = vpop.permute.xlu2 %2183 }
 0x47e   : > { %v2198_v10 = vrot.slane %v2184_v7, 4 }
 0x47f   : > { %v8313_v63 = vpop.eup %6241  ;;  %v2419_v0 = vmul.f32 1.442695, %v2414_v62 }
 0x480   : > { %v2425_v1 = vsel %vm2296_vm2, %v8313_v63, 0.0  ;;  %v8317_v2 = vpop.eup %6243 }
 0x481   : > { %6245 = vpow2.f32 %v2419_v0  ;;  %2426 = vadd.xlane.f32.xlu0 %v2425_v1  ;;  %v2434_v6 = vsel %vm2296_vm2, %v8317_v2, 0.0 }
 0x487   : > { %v8319_v3 = vpop.eup %6245  ;;  %v2178_v4 = vpop.permute.xlu0 %2177 }
 0x488   : > { %v2428_v5 = vsel %vm2296_vm2, %v8319_v3, 0.0  ;;  %v2200_v9 = vrot.slane %v2178_v4, 4  ;;  %v2199_v12 = vsel %vm1946_vm1, %v2198_v10, %v2178_v4 }
 0x489   : > { %2429 = vadd.xlane.f32.xlu1 %v2428_v5  ;;  %2435 = vadd.xlane.f32.xlu0 %v2434_v6  ;;  %v2205_v14 = vperm.slane %v2199_v12, %v8203_v23 }
 0x48a   : > { %v2201_v11 = vsel %vm1946_vm1, %v2184_v7, %v2200_v9 }
 0x48b   : > { %v2209_v13 = vperm.slane %v2201_v11, %v8203_v23  ;;  %v2210_v20 = vrot.slane %v2205_v14, 4 }
 0x48d   : > { %v2222_v16 = vrot.slane %v2209_v13, 4 }
 0x494   : > { %v2181_v17 = vpop.permute.xlu1 %2180 }
 0x495   : > { %v2186_v18 = vrot.slane %v2181_v17, 4  ;;  %v2189_v19 = vsel %vm1946_vm1, %v2181_v17, %v2188_v15 }
 0x496   : > { %v2197_v21 = vperm.slane %v2189_v19, %v8203_v23 }
 0x497   : > { %v2187_v22 = vsel %vm1946_vm1, %v2186_v18, %v1933_v49 }
 0x498   : > { %v2193_v24 = vperm.slane %v2187_v22, %v8203_v23  ;;  %v2223_v25 = vsel %vm1946_vm1, %v2222_v16, %v2197_v21  ;;  %v2224_v26 = vrot.slane %v2197_v21, 4 }
 0x499   : > { %v2229_v27 = vperm.slane %v2223_v25, %v8213_v41 }
 0x49a   : > { %v2211_v28 = vsel %vm1946_vm1, %v2210_v20, %v2193_v24  ;;  %v2212_v29 = vrot.slane %v2193_v24, 4  ;;  %v2225_v30 = vsel %vm1946_vm1, %v2209_v13, %v2224_v26 }
 0x49b   : > { %v2217_v31 = vperm.slane %v2211_v28, %v8213_v41  ;;  %v2233_v32 = vperm.slane %v2225_v30, %v8213_v41  ;;  %v2238_v35 = vrot.slane %v2229_v27, 4 }
 0x49c   : > { %v2213_v33 = vsel %vm1946_vm1, %v2205_v14, %v2212_v29 }
 0x49d   : > { %v2221_v34 = vperm.slane %v2213_v33, %v8213_v41  ;;  %v2240_v36 = vrot.slane %v2233_v32, 4  ;;  %v2234_v37 = vrot.slane %v2217_v31, 4  ;;  %v2239_v45 = vsel %vm1946_vm1, 0.0, %v2238_v35 }
 0x49f   : > { %v2236_v38 = vrot.slane %v2221_v34, 4  ;;  %v2241_v39 = vsel %vm1946_vm1, 0.0, %v2240_v36  ;;  %v2253_v40 = vsel %vm1946_vm1, %v2240_v36, %v2229_v27  ;;  %v2235_v51 = vsel %vm1946_vm1, 0.0, %v2234_v37 }
 0x4a0   : > { %v2257_v42 = vperm.slane %v2253_v40, %v8203_v23  ;;  %v2258_v43 = vrot.slane %v2241_v39, 4 }
 0x4a1   : > { %v2237_v44 = vsel %vm1946_vm1, 0.0, %v2236_v38  ;;  %v2242_v46 = vsel %vm1946_vm1, %v2236_v38, %v2217_v31 }
 0x4a2   : > { %v2247_v47 = vrot.slane %v2237_v44, 4  ;;  %v2259_v48 = vsel %vm1946_vm1, %v2258_v43, %v2239_v45  ;;  %v2246_v49 = vperm.slane %v2242_v46, %v8203_v23  ;;  %v2278_v50 = vrot.slane %v2257_v42, 4 }
 0x4a3   : > { %v2263_v52 = vperm.slane %v2259_v48, %v8203_v23 }
 0x4a4   : > { %v2248_v53 = vsel %vm1946_vm1, %v2247_v47, %v2235_v51  ;;  %v2266_v54 = vrot.slane %v2246_v49, 4 }
 0x4a5   : > { %v2252_v55 = vperm.slane %v2248_v53, %v8203_v23  ;;  %v2279_v56 = vsel %vm1946_vm1, %v2263_v52, %v2278_v50  ;;  %v2276_v57 = vrot.slane %v2263_v52, 4 }
 0x4a6   : > { %v2287_v59 = vperm.slane %v2279_v56, %v8213_v41 }
 0x4a7   : > { %v2267_v60 = vsel %vm1946_vm1, %v2252_v55, %v2266_v54  ;;  %v2264_v61 = vrot.slane %v2252_v55, 4  ;;  %v2277_v62 = vsel %vm1946_vm1, %v2276_v57, %v2257_v42 }
 0x4a8   : > { %v2275_v0 = vperm.slane %v2267_v60, %v8213_v41  ;;  %v2292_v1 = vrot.slane %v2287_v59, 4  ;;  %v2283_v4 = vperm.slane %v2277_v62, %v8213_v41 }
 0x4a9   : > { %v2265_v5 = vsel %vm1946_vm1, %v2264_v61, %v2246_v49 }
 0x4aa   : > { %v2293_v6 = vsel %vm1946_vm1, %v2292_v1, %v2275_v0  ;;  %v2271_v7 = vperm.slane %v2265_v5, %v8213_v41  ;;  %v2288_v9 = vrot.slane %v2283_v4, 4  ;;  %v2294_v10 = vrot.slane %v2275_v0, 4 }
 0x4ab   : > { %2509 = vmatpush.msra.mxu0 %v2293_v6 }
 0x4ac   : > { %v2289_v11 = vsel %vm1946_vm1, %v2288_v9, %v2271_v7  ;;  %v2295_v12 = vsel %vm1946_vm1, %v2287_v59, %v2294_v10  ;;  %v2290_v13 = vrot.slane %v2271_v7, 4 }
 0x4ad   : > { %2463 = vmatpush.msra.mxu2 %v2289_v11  ;;  %2532 = vmatpush.msrb.mxu1 %v2295_v12 }
 0x4ae   : > { %v2291_v14 = vsel %vm1946_vm1, %v2283_v4, %v2290_v13 }
 0x4af   : > { %2486 = vmatpush.msra.mxu3 %v2291_v14 }
 0x4ed   : > { %v2433_v15 = vpop.xlane.xlu2 %2432 }
 0x4ee   : > { %6247 = vrcp.f32 %v2433_v15 }
 0x4f4   : > { %v6248_v16 = vpop.eup %6247  ;;  %v2427_v17 = vpop.xlane.xlu0 %2426 }
 0x4f5   : > { %v2443_v18 = vmul.f32 %v6248_v16, %v8309_v58  ;;  %6249 = vrcp.f32 %v2427_v17 }
 0x4f7   : > { %5806 = vmatmul.msk.f32.vlgmr.msra.gmra.mxu0 %vm2296_vm2, %v2443_v18 }
 0x4fb   : > { %v6250_v19 = vpop.eup %6249 }
 0x4fc   : > { %v2441_v20 = vmul.f32 %v6250_v19, %v8313_v63  ;;  %v2430_v21 = vpop.xlane.xlu1 %2429  ;;  %v2436_v22 = vpop.xlane.xlu0 %2435 }
 0x4fd   : > { %6251 = vrcp.f32 %v2430_v21 }
 0x4fe   : > { %6253 = vrcp.f32 %v2436_v22  ;;  %5804 = vmatmul.msk.f32.vlgmr.msra.gmra.mxu2 %vm2296_vm2, %v2441_v20 }
 0x503   : > { %v6252_v24 = vpop.eup %6251 }
 0x504   : > { %v6254_v25 = vpop.eup %6253  ;;  %v2442_v26 = vmul.f32 %v6252_v24, %v8319_v3 }
 0x505   : > { %v2444_v27 = vmul.f32 %v6254_v25, %v8317_v2 }
 0x506   : > { %5805 = vmatmul.msk.f32.vlgmr.msra.gmra.mxu3 %vm2296_vm2, %v2442_v26 }
 0x507   : > { %5807 = vmatmul.msk.f32.vlgmr.msrb.gmra.mxu1 %vm2296_vm2, %v2444_v27 }
 0x574   : > { %v2511_v58 = vpop.f32.mrf.mxu0 }
 0x575   : > { %v2537_v29 = vrot.slane %v2511_v58, 4 }
 0x581   : > { %v2465_v28 = vpop.f32.mrf.mxu2 }
 0x582   : > { %v2539_v63 = vrot.slane %v2465_v28, 4  ;;  %v2538_v30 = vsel %vm1946_vm1, %v2537_v29, %v2465_v28 }
 0x583   : > { %v2544_v33 = vperm.slane %v2538_v30, %v8203_v23 }
 0x584   : > { %v2534_v31 = vpop.f32.mrf.mxu1  ;;  %v2540_v32 = vsel %vm1946_vm1, %v2511_v58, %v2539_v63 }
 0x585   : > { %v2549_v34 = vrot.slane %v2534_v31, 4  ;;  %v2548_v3 = vperm.slane %v2540_v32, %v8203_v23  ;;  %v2563_v37 = vrot.slane %v2544_v33, 4  ;;  %v2666_v32 = vld [vmem:[#allocation7 + $0x10] sm:$0xff] }
 0x587   : > { %v2575_v40 = vrot.slane %v2548_v3, 4 }
 0x589   : > { %v2488_v35 = vpop.f32.mrf.mxu3 }
 0x58a   : > { %v2550_v2 = vsel %vm1946_vm1, %v2549_v34, %v2488_v35  ;;  %v2551_v36 = vrot.slane %v2488_v35, 4  ;;  %v2664_v34 = vld [vmem:[#allocation7] sm:$0xff] }
 0x58b   : > { %v2556_v38 = vperm.slane %v2550_v2, %v8203_v23 }
 0x58c   : > { %v2552_v39 = vsel %vm1946_vm1, %v2534_v31, %v2551_v36  ;;  %v2667_v31 = vld [vmem:[#allocation7 + $0x18] sm:$0xff] }
 0x58d   : > { %v2560_v42 = vperm.slane %v2552_v39, %v8203_v23  ;;  %v2561_v43 = vrot.slane %v2556_v38, 4  ;;  %v2564_v44 = vsel %vm1946_vm1, %v2556_v38, %v2563_v37  ;;  %2687 = vmatpush.msrb.mxu2 %v2667_v31  ;;  %v2770_v39 = vld [vmem:[#allocation11 + $0x18] sm:$0xff] }
 0x58e   : > { %v2572_v45 = vperm.slane %v2564_v44, %v8213_v41  ;;  %2793 = vmatpush.msra.mxu1 %v2770_v39 }
 0x58f   : > { %v2562_v46 = vsel %vm1946_vm1, %v2561_v43, %v2544_v33  ;;  %v2573_v47 = vrot.slane %v2560_v42, 4  ;;  %v2576_v48 = vsel %vm1946_vm1, %v2560_v42, %v2575_v40  ;;  %v2665_v33 = vld [vmem:[#allocation7 + $0x8] sm:$0xff]  ;;  %2688 = vmatpush.msrb.mxu2 %v2666_v32  ;;  %v2769_v40 = vld [vmem:[#allocation11 + $0x10] sm:$0xff] }
 0x590   : > { %v2568_v49 = vperm.slane %v2562_v46, %v8213_v41  ;;  %v2584_v50 = vperm.slane %v2576_v48, %v8213_v41  ;;  %v2587_v51 = vrot.slane %v2572_v45, 4  ;;  %v2768_v42 = vld [vmem:[#allocation11 + $0x8] sm:$0xff]  ;;  %2794 = vmatpush.msra.mxu1 %v2769_v40  ;;  %v2767_v43 = vld [vmem:[#allocation11] sm:$0xff]  ;;  %v6219_v46 = vld [vmem:[#allocation8] ss:$0 sm:$0xff] }
 0x591   : > { %v2574_v52 = vsel %vm1946_vm1, %v2573_v47, %v2548_v3  ;;  %2689 = vmatpush.msrb.mxu2 %v2665_v33 }
 0x592   : > { %v2580_v53 = vperm.slane %v2574_v52, %v8213_v41  ;;  %v2585_v54 = vrot.slane %v2568_v49, 4  ;;  %v2588_v55 = vsel %vm1946_vm1, 0.0, %v2587_v51  ;;  %v2591_v56 = vrot.slane %v2584_v50, 4  ;;  %2795 = vmatpush.msra.mxu1 %v2768_v42 }
 0x593   : > { %v2593_v57 = vsel %vm1946_vm1, %v2587_v51, %v2568_v49  ;;  %v2598_v59 = vrot.slane %v2588_v55, 4  ;;  %2690 = vmatpush.msrb.mxu2 %v2664_v34  ;;  %v7445_v51 = vmov 32.0  }
 0x594   : > { %v2586_v60 = vsel %vm1946_vm1, 0.0, %v2585_v54  ;;  %v2589_v61 = vrot.slane %v2580_v53, 4  ;;  %v2592_v62 = vsel %vm1946_vm1, 0.0, %v2591_v56  ;;  %v2597_v0 = vperm.slane %v2593_v57, %v8203_v23  ;;  %2796 = vmatpush.msra.mxu1 %v2767_v43  ;;  %v6221_v54 = vld [vmem:[#allocation17] ss:$0 sm:$0xff] }
 0x595   : > { %v2609_v1 = vrot.slane %v2592_v62, 4  ;;  %v2599_v4 = vsel %vm1946_vm1, %v2598_v59, %v2586_v60  ;;  %v2604_v5 = vsel %vm1946_vm1, %v2591_v56, %v2580_v53  ;;  %6255 = vrcp.f32 %v7445_v51 }
 0x596   : > { %v2590_v6 = vsel %vm1946_vm1, 0.0, %v2589_v61  ;;  %v2603_v7 = vperm.slane %v2599_v4, %v8203_v23  ;;  %v2608_v9 = vperm.slane %v2604_v5, %v8203_v23  ;;  %v2617_v10 = vrot.slane %v2597_v0, 4 }
 0x597   : > { %v2610_v11 = vsel %vm1946_vm1, %v2609_v1, %v2590_v6 }
 0x598   : > { %v2614_v12 = vperm.slane %v2610_v11, %v8203_v23  ;;  %v2618_v13 = vsel %vm1946_vm1, %v2603_v7, %v2617_v10  ;;  %v2629_v14 = vrot.slane %v2608_v9, 4  ;;  %v2615_v15 = vrot.slane %v2603_v7, 4  ;;  %v2738_v7 = vld [vmem:[#allocation10 + $0x18] sm:$0xff]  ;;  %v2736_v10 = vld [vmem:[#allocation10 + $0x8] sm:$0xff]  ;;  %v2735_v11 = vld [vmem:[#allocation10] sm:$0xff] }
 0x599   : > { %v2626_v16 = vperm.slane %v2618_v13, %v8213_v41  ;;  %2758 = vmatpush.msrb.mxu3 %v2738_v7 }
 0x59a   : > { %v2630_v17 = vsel %vm1946_vm1, %v2614_v12, %v2629_v14  ;;  %v2616_v18 = vsel %vm1946_vm1, %v2615_v15, %v2597_v0  ;;  %v2627_v19 = vrot.slane %v2614_v12, 4 }
 0x59b   : > { %v2638_v20 = vperm.slane %v2630_v17, %v8213_v41  ;;  %v2645_v21 = vrot.slane %v2626_v16, 4  ;;  %v2622_v22 = vperm.slane %v2616_v18, %v8213_v41  ;;  %v6256_v52 = vpop.eup %6255 }
 0x59c   : > { %v2628_v24 = vsel %vm1946_vm1, %v2627_v19, %v2608_v9  ;;  %v2700_v53 = vmul.f32 32.0, %v6256_v52  ;;  %vm2704_vm5 = vweird.f32 %v6256_v52  ;;  %v2737_v9 = vld [vmem:[#allocation10 + $0x10] sm:$0xff] }
 0x59d   : > { %v2646_v25 = vsel %vm1946_vm1, %v2638_v20, %v2645_v21  ;;  %v2643_v26 = vrot.slane %v2638_v20, 4  ;;  %v2634_v27 = vperm.slane %v2628_v24, %v8213_v41  ;;  %v2641_v58 = vrot.slane %v2622_v22, 4  ;;  %2759 = vmatpush.msrb.mxu3 %v2737_v9 }
 0x59e   : > { %2656 = vrot.lane.b32.xlu2 %v2646_v25, %s9277_s13  ;;  %v2701_v55 = vsub.f32 1.0, %v2700_v53 }
 0x59f   : > { %v2644_v28 = vsel %vm1946_vm1, %v2643_v26, %v2626_v16  ;;  %v2639_v29 = vrot.slane %v2634_v27, 4  ;;  %v2642_v63 = vsel %vm1946_vm1, %v2634_v27, %v2641_v58  ;;  %2760 = vmatpush.msrb.mxu3 %v2736_v10 }
 0x5a0   : > { %2652 = vrot.lane.b32.xlu0 %v2644_v28, %s9275_s22  ;;  %2648 = vrot.lane.b32.xlu1 %v2642_v63, %s9273_s1  ;;  %s8422_s1 = scalar_select %p1826_p2, %s7693_s28, 1  ;;  %v2702_v59 = vmul.f32 %v6256_v52, %v2701_v55 }
 0x5a1   : > { %v2640_v30 = vsel %vm1946_vm1, %v2639_v29, %v2622_v22  ;;  %2761 = vmatpush.msrb.mxu3 %v2735_v11 }
 0x5a2   : > { %s8426_s22 = scalar_lea.vmem %s9404_s2, %s8422_s1  ;;  %s5863_s13 = sshll.u32 %s8422_s1, 4  ;;  %v2703_v60 = vadd.f32 %v6256_v52, %v2702_v59  ;;  %v6223_v59 = vld [vmem:[#allocation35] ss:$0 sm:$0xff] }
 0x5a3   : > { %s1830_s15 = scalar_lea.vmem %s9405_s4, %s5863_s13  ;;  %s9281_s2 = scalar_lea.vmem [#allocation51], %s8111_s16 }
 0x5a4   : > { %v8432_v44 = vld [vmem:[%s1830_s15] sm:$0xff]  ;;  %v8436_v45 = vld [vmem:[%s1830_s15 + $0x8] sm:$0xff]  ;;  %v8447_v62 = vsel %vm2704_vm5, %v6256_v52, %v2703_v60  ;;  %s9406_s15 = smov 112   ;;  %s9407_s4 = smov 24  }
 0x5a5   : > { %5810 = vmatmul.msk.f32.vlgmr.msra.gmra.mxu1 %vm1854_vm0, %v8432_v44 }
 0x5ad   : > { %5811 = vmatmul.msk.f32.gmra.mxu1 %vm1854_vm0, %v8436_v45 }
 0x5f8   : > { %v2657_v36 = vpop.permute.xlu2 %2656 }
 0x612   : > { %v2653_v3 = vpop.permute.xlu0 %2652  ;;  %v2649_v35 = vpop.permute.xlu1 %2648 }
 0x613   : > { %v2659_v2 = vsel %vm2296_vm2, %v2640_v30, %v2649_v35 }
 0x614   : > { %v2661_v37 = vsel %vm2660_vm3, %v2659_v2, %v2653_v3 }
 0x615   : > { %v2663_v38 = vsel %vm2662_vm4, %v2661_v37, %v2657_v36 }
 0x616   : > { %5808 = vmatmul.msk.f32.vlgmr.msrb.gmra.mxu2 %vm1854_vm0, %v2663_v38 }
 0x622   : > { %v2798_v56 = vpop.f32.mrf.mxu1 }
 0x623   : > { %v8442_v57 = vadd.f32 %v6221_v54, %v2798_v56 }
 0x62a   : > { %v2801_v61 = vpop.f32.mrf.mxu1 }
 0x699   : > { %v2692_v47 = vpop.f32.mrf.mxu2 }
 0x69a   : > { %v2693_v48 = vadd.f32 %v6219_v46, %v2692_v47 }
 0x69c   : > { %v2695_v49 = vadd.f32 %v2693_v48, %v8189_v8  ;;  %v2802_v8 = vadd.f32 %v6221_v54, %v2801_v61  ;;  %v6222_v48 = vld [vmem:[#allocation34] ss:$0 sm:$0xff] }
 0x69e   : > { %v2696_v50 = vsel %vm1854_vm0, %v2695_v49, 0.0  ;;  %2959 = vrot.lane.b32.xlu2 %v2802_v8, %s9282_s6  ;;  %v3033_v15 = vrot.slane %v2802_v8, 4 }
 0x69f   : > { %2697 = vadd.xlane.f32.xlu0 %v2696_v50 }
 0x6a6   : > { %2965 = vrot.lane.b32.xlu2 %v2802_v8, %s9406_s15 }
 0x6ae   : > { %2971 = vrot.lane.b32.xlu2 %v2802_v8, %s9284_s11 }
 0x6b3   : > { %2969 = vrot.lane.b32.xlu0 %v8442_v57, %s9284_s11 }
 0x6b6   : > { %2957 = vrot.lane.b32.xlu2 %v8442_v57, %s9282_s6 }
 0x6be   : > { %2963 = vrot.lane.b32.xlu2 %v8442_v57, %s9406_s15 }
 0x6f8   : > { %v2960_v12 = vpop.permute.xlu2 %2959 }
 0x6f9   : > { %v3045_v22 = vrot.slane %v2960_v12, 4 }
 0x700   : > { %v2966_v17 = vpop.permute.xlu2 %2965 }
 0x701   : > { %v3031_v18 = vrot.slane %v2966_v17, 4  ;;  %v3034_v19 = vsel %vm1946_vm1, %v2966_v17, %v3033_v15 }
 0x702   : > { %v3042_v21 = vperm.slane %v3034_v19, %v8203_v23 }
 0x703   : > { %v3032_v20 = vsel %vm1946_vm1, %v3031_v18, %v2802_v8 }
 0x704   : > { %v3038_v25 = vperm.slane %v3032_v20, %v8203_v23  ;;  %v3069_v27 = vrot.slane %v3042_v21, 4 }
 0x706   : > { %v3057_v30 = vrot.slane %v3038_v25, 4 }
 0x708   : > { %v2972_v58 = vpop.permute.xlu2 %2971 }
 0x709   : > { %v3043_v29 = vrot.slane %v2972_v58, 4  ;;  %v3046_v63 = vsel %vm1946_vm1, %v2972_v58, %v3045_v22 }
 0x70a   : > { %v3054_v31 = vperm.slane %v3046_v63, %v8203_v23 }
 0x70b   : > { %v3044_v33 = vsel %vm1946_vm1, %v3043_v29, %v2960_v12 }
 0x70c   : > { %v3050_v34 = vperm.slane %v3044_v33, %v8203_v23  ;;  %v3067_v3 = vrot.slane %v3054_v31, 4  ;;  %v3070_v35 = vsel %vm1946_vm1, %v3054_v31, %v3069_v27 }
 0x70d   : > { %v3078_v36 = vperm.slane %v3070_v35, %v8213_v41 }
 0x70e   : > { %v3055_v38 = vrot.slane %v3050_v34, 4  ;;  %v3058_v39 = vsel %vm1946_vm1, %v3050_v34, %v3057_v30  ;;  %v3068_v40 = vsel %vm1946_vm1, %v3067_v3, %v3042_v21 }
 0x70f   : > { %v3066_v43 = vperm.slane %v3058_v39, %v8213_v41  ;;  %v3074_v46 = vperm.slane %v3068_v40, %v8213_v41  ;;  %v3085_v47 = vrot.slane %v3078_v36, 4 }
 0x710   : > { %v2958_v50 = vpop.permute.xlu2 %2957 }
 0x711   : > { %v3081_v54 = vrot.slane %v3066_v43, 4  ;;  %v3083_v55 = vrot.slane %v3074_v46, 4  ;;  %v3086_v60 = vsel %vm1946_vm1, 0.0, %v3085_v47  ;;  %v2989_v61 = vrot.slane %v2958_v50, 4 }
 0x712   : > { %v2698_v0 = vpop.xlane.xlu0 %2697  ;;  %v3157_v9 = vrot.slane %v3086_v60, 4 }
 0x713   : > { %v2706_v1 = vmul.f32 %v8447_v62, %v2698_v0  ;;  %v3082_v0 = vsel %vm1946_vm1, 0.0, %v3081_v54 }
 0x714   : > { %v3146_v7 = vrot.slane %v3082_v0, 4 }
 0x715   : > { %v8450_v4 = vsub.f32 %v2695_v49, %v2706_v1  ;;  %v3056_v49 = vsel %vm1946_vm1, %v3055_v38, %v3038_v25  ;;  %v3084_v1 = vsel %vm1946_vm1, 0.0, %v3083_v55 }
 0x716   : > { %v3062_v53 = vperm.slane %v3056_v49, %v8213_v41  ;;  %v3158_v15 = vsel %vm1946_vm1, %v3157_v9, %v3084_v1 }
 0x717   : > { %v2708_v5 = vmul.f32 %v8450_v4, %v8450_v4  ;;  %v3162_v19 = vperm.slane %v3158_v15, %v8203_v23 }
 0x718   : > { %v3079_v8 = vrot.slane %v3062_v53, 4  ;;  %v3141_v17 = vsel %vm1946_vm1, %v3081_v54, %v3062_v53  ;;  %v2964_v21 = vpop.permute.xlu2 %2963 }
 0x719   : > { %v2709_v6 = vsel %vm1854_vm0, %v2708_v5, 0.0  ;;  %v3152_v5 = vsel %vm1946_vm1, %v3085_v47, %v3074_v46  ;;  %v3175_v58 = vrot.slane %v3162_v19, 4 }
 0x71a   : > { %2710 = vadd.xlane.f32.xlu1 %v2709_v6  ;;  %v3080_v11 = vsel %vm1946_vm1, 0.0, %v3079_v8  ;;  %v3156_v18 = vperm.slane %v3152_v5, %v8203_v23 }
 0x71b   : > { %v3147_v20 = vsel %vm1946_vm1, %v3146_v7, %v3080_v11 }
 0x71c   : > { %v3151_v25 = vperm.slane %v3147_v20, %v8203_v23  ;;  %v3176_v31 = vsel %vm1946_vm1, %v3175_v58, %v3156_v18 }
 0x71d   : > { %v3182_v36 = vperm.slane %v3176_v31, %v8213_v41 }
 0x71e   : > { %v3163_v63 = vrot.slane %v3151_v25, 4 }
 0x71f   : > { %v3187_v46 = vrot.slane %v3182_v36, 4 }
 0x725   : > { %v2970_v37 = vpop.permute.xlu0 %2969 }
 0x726   : > { %v2987_v51 = vrot.slane %v2970_v37, 4  ;;  %v2990_v12 = vsel %vm1946_vm1, %v2970_v37, %v2989_v61  ;;  %v3177_v37 = vrot.slane %v3156_v18, 4 }
 0x728   : > { %v2988_v10 = vsel %vm1946_vm1, %v2987_v51, %v2958_v50  ;;  %v3178_v55 = vsel %vm1946_vm1, %v3162_v19, %v3177_v37 }
 0x729   : > { %v3186_v9 = vperm.slane %v3178_v55, %v8213_v41 }
 0x78d   : > { %v2711_v13 = vpop.xlane.xlu1 %2710 }
 0x78e   : > { %v2712_v14 = vmul.f32 %v2711_v13, %v8447_v62  ;;  %v2994_v13 = vperm.slane %v2988_v10, %v8203_v23 }
 0x790   : > { %v2713_v16 = vadd.f32 1e-05, %v2712_v14  ;;  %v2999_v29 = vrot.slane %v2994_v13, 4 }
 0x792   : > { %6257 = vrsqrt.f32 %v2713_v16  ;;  %vm2720_vm7 = vweird.f32 %v2713_v16 }
 0x798   : > { %v6258_v24 = vpop.eup %6257 }
 0x799   : > { %v2715_v26 = vmul.f32 %v6258_v24, %v2713_v16  ;;  %vm2721_vm6 = vweird.f32 %v6258_v24  ;;  %v2998_v16 = vperm.slane %v2990_v12, %v8203_v23 }
 0x79a   : > { %vm2722_vm8 = vmor %vm2720_vm7, %vm2721_vm6 }
 0x79b   : > { %v2716_v28 = vmul.f32 %v6258_v24, %v2715_v26  ;;  %v3011_v22 = vrot.slane %v2998_v16, 4  ;;  %v2975_v26 = vrot.slane %v2964_v21, 4 }
 0x79d   : > { %v2717_v32 = vmul.f32 0.5, %v2716_v28  ;;  %v2976_v30 = vsel %vm1946_vm1, %v2975_v26, %v8442_v57 }
 0x79f   : > { %v2718_v2 = vsub.f32 1.5, %v2717_v32  ;;  %v2982_v32 = vperm.slane %v2976_v30, %v8203_v23 }
 0x7a1   : > { %v2719_v42 = vmul.f32 %v6258_v24, %v2718_v2  ;;  %v3001_v38 = vrot.slane %v2982_v32, 4  ;;  %v3000_v39 = vsel %vm1946_vm1, %v2999_v29, %v2982_v32 }
 0x7a2   : > { %v3006_v40 = vperm.slane %v3000_v39, %v8213_v41 }
 0x7a3   : > { %v2723_v52 = vsel %vm2722_vm8, %v6258_v24, %v2719_v42  ;;  %v3145_v24 = vperm.slane %v3141_v17, %v8203_v23  ;;  %v3002_v47 = vsel %vm1946_vm1, %v2994_v13, %v3001_v38  ;;  %v6224_v38 = vld [vmem:[#allocation16] ss:$0 sm:$0xff] }
 0x7a4   : > { %v2724_v56 = vmul.f32 %v2723_v52, %v8450_v4  ;;  %v2977_v4 = vrot.slane %v8442_v57, 4  ;;  %v3010_v50 = vperm.slane %v3002_v47, %v8213_v41  ;;  %v3023_v51 = vrot.slane %v3006_v40, 4 }
 0x7a5   : > { %v3164_v3 = vsel %vm1946_vm1, %v3163_v63, %v3145_v24  ;;  %v3165_v49 = vrot.slane %v3145_v24, 4 }
 0x7a6   : > { %v2729_v6 = vmul.f32 %v6222_v48, %v2724_v56  ;;  %v2978_v27 = vsel %vm1946_vm1, %v2964_v21, %v2977_v4  ;;  %v3170_v2 = vperm.slane %v3164_v3, %v8213_v41  ;;  %v3025_v56 = vrot.slane %v3010_v50, 4 }
 0x7a7   : > { %v2986_v28 = vperm.slane %v2978_v27, %v8203_v23  ;;  %v3166_v1 = vsel %vm1946_vm1, %v3151_v25, %v3165_v49  ;;  %v3191_v21 = vrot.slane %v3186_v9, 4 }
 0x7a8   : > { %v8488_v14 = vadd.f32 %v6223_v59, %v2729_v6  ;;  %v3189_v48 = vrot.slane %v3170_v2, 4  ;;  %v3188_v53 = vsel %vm1946_vm1, %v3187_v46, %v3170_v2  ;;  %v3026_v5 = vsel %vm1946_vm1, 0.0, %v3025_v56 }
 0x7a9   : > { %v3013_v33 = vrot.slane %v2986_v28, 4  ;;  %v3012_v34 = vsel %vm1946_vm1, %v3011_v22, %v2986_v28  ;;  %5814 = vmatpush.xpose.msk.msra.mxu2 %vm2296_vm2, %v3188_v53  ;;  %v3024_v6 = vsel %vm1946_vm1, 0.0, %v3023_v51  ;;  %v3087_v7 = vsel %vm1946_vm1, %v3025_v56, %v3006_v40  ;;  %v2807_v56 = vld [vmem:[#allocation13 + $0x18] sm:$0xff] }
 0x7aa   : > { %5809 = vmatmul.msk.f32.vlgmr.msrb.gmra.mxu3 %vm1854_vm0, %v8488_v14  ;;  %v3018_v35 = vperm.slane %v3012_v34, %v8213_v41  ;;  %v3190_v54 = vsel %vm1946_vm1, %v3182_v36, %v3189_v48  ;;  %v3092_v10 = vrot.slane %v3026_v5, 4  ;;  %v3091_v4 = vperm.slane %v3087_v7, %v8203_v23  ;;  %2824 = vmatpush.msrb.mxu1 %v2807_v56 }
 0x7ab   : > { %v3014_v57 = vsel %vm1946_vm1, %v2998_v16, %v3013_v33  ;;  %5817 = vmatpush.xpose.msk.msra.mxu3 %vm2296_vm2, %v3190_v54  ;;  %v3174_v19 = vperm.slane %v3166_v1, %v8213_v41 }
 0x7ac   : > { %v3022_v42 = vperm.slane %v3014_v57, %v8213_v41  ;;  %v3027_v43 = vrot.slane %v3018_v35, 4  ;;  %v3093_v15 = vsel %vm1946_vm1, %v3092_v10, %v3024_v6  ;;  %v3111_v16 = vrot.slane %v3091_v4, 4  ;;  %v2804_v10 = vld [vmem:[#allocation13] sm:$0xff] }
 0x7ad   : > { %v3097_v17 = vperm.slane %v3093_v15, %v8203_v23  ;;  %v3193_v28 = vrot.slane %v3174_v19, 4  ;;  %v3192_v31 = vsel %vm1946_vm1, %v3191_v21, %v3174_v19 }
 0x7ae   : > { %v3029_v52 = vrot.slane %v3022_v42, 4  ;;  %v3028_v59 = vsel %vm1946_vm1, 0.0, %v3027_v43 }
 0x7af   : > { %v3109_v22 = vrot.slane %v3097_v17, 4  ;;  %v3112_v25 = vsel %vm1946_vm1, %v3097_v17, %v3111_v16  ;;  %v3194_v3 = vsel %vm1946_vm1, %v3186_v9, %v3193_v28 }
 0x7b0   : > { %v3030_v60 = vsel %vm1946_vm1, 0.0, %v3029_v52  ;;  %v3098_v61 = vsel %vm1946_vm1, %v3029_v52, %v3018_v35  ;;  %v3120_v29 = vperm.slane %v3112_v25, %v8213_v41 }
 0x7b1   : > { %v3102_v8 = vperm.slane %v3098_v61, %v8203_v23  ;;  %v3103_v0 = vrot.slane %v3030_v60, 4  ;;  %v3110_v58 = vsel %vm1946_vm1, %v3109_v22, %v3091_v4 }
 0x7b2   : > { %v3116_v63 = vperm.slane %v3110_v58, %v8213_v41  ;;  %v3139_v35 = vrot.slane %v3120_v29, 4 }
 0x7b3   : > { %v3104_v11 = vsel %vm1946_vm1, %v3103_v0, %v3028_v59  ;;  %v3123_v12 = vrot.slane %v3102_v8, 4  ;;  %v2806_v59 = vld [vmem:[#allocation13 + $0x10] sm:$0xff]  ;;  %v2805_v0 = vld [vmem:[#allocation13 + $0x8] sm:$0xff] }
 0x7b4   : > { %v3108_v13 = vperm.slane %v3104_v11, %v8203_v23  ;;  %v3135_v34 = vrot.slane %v3116_v63, 4  ;;  %2825 = vmatpush.msrb.mxu1 %v2806_v59 }
 0x7b6   : > { %v3121_v18 = vrot.slane %v3108_v13, 4  ;;  %v3124_v20 = vsel %vm1946_vm1, %v3108_v13, %v3123_v12  ;;  %2826 = vmatpush.msrb.mxu1 %v2805_v0 }
 0x7b7   : > { %v3132_v26 = vperm.slane %v3124_v20, %v8213_v41 }
 0x7b8   : > { %v3122_v24 = vsel %vm1946_vm1, %v3121_v18, %v3102_v8  ;;  %2827 = vmatpush.msrb.mxu1 %v2804_v10  ;;  %v6225_v10 = vld [vmem:[#allocation19] ss:$0 sm:$0xff] }
 0x7b9   : > { %v3128_v27 = vperm.slane %v3122_v24, %v8213_v41  ;;  %v3137_v32 = vrot.slane %v3132_v26, 4  ;;  %v3140_v37 = vsel %vm1946_vm1, %v3132_v26, %v3139_v35  ;;  %5812 = vmatmul.msk.f32.vlgmr.msrb.gmra.mxu1 %vm1854_vm0, %v8432_v44 }
 0x7bb   : > { %v3133_v30 = vrot.slane %v3128_v27, 4  ;;  %v3136_v2 = vsel %vm1946_vm1, %v3128_v27, %v3135_v34  ;;  %v3138_v36 = vsel %vm1946_vm1, %v3137_v32, %v3120_v29 }
 0x7bc   : > { %5818 = vmatpush.xpose.msk.msra.mxu3 %vm2296_vm2, %v3136_v2 }
 0x7bd   : > { %v3134_v33 = vsel %vm1946_vm1, %v3133_v30, %v3116_v63 }
 0x7be   : > { %5815 = vmatpush.xpose.msk.msra.mxu2 %vm2296_vm2, %v3134_v33 }
 0x7c0   : > { %5823 = vmatpush.xpose.msk.msrb.mxu3 %vm2296_vm2, %v3194_v3 }
 0x7c1   : > { %5813 = vmatmul.msk.f32.gmra.mxu1 %vm1854_vm0, %v8436_v45 }
 0x7c2   : > { %5820 = vmatpush.xpose.msk.msrb.mxu2 %vm2296_vm2, %v3192_v31 }
 0x7c4   : > { %5824 = vmatpush.xpose.msk.msrb.mxu3 %vm2296_vm2, %v3140_v37 }
 0x7c6   : > { %5821 = vmatpush.xpose.msk.msrb.mxu2 %vm2296_vm2, %v3138_v36 }
 0x82d   : > { %v2763_v39 = vpop.f32.mrf.mxu3 }
 0x82e   : > { %v2764_v57 = vadd.f32 %v6224_v38, %v2763_v39 }
 0x830   : > { %v2766_v40 = vmul.f32 0.35355338, %v2764_v57 }
 0x832   : > { %2839 = vrot.lane.b32.xlu2 %v2766_v40, %s9406_s15  ;;  %2836 = vrot.lane.b32.xlu1 %v2766_v40, %s9282_s6  ;;  %v2847_v47 = vrot.slane %v2766_v40, 4 }
 0x83a   : > { %2842 = vrot.lane.b32.xlu2 %v2766_v40, %s9284_s11 }
 0x88c   : > { %v2840_v42 = vpop.permute.xlu2 %2839 }
 0x88d   : > { %v2845_v43 = vrot.slane %v2840_v42, 4  ;;  %v2848_v49 = vsel %vm1946_vm1, %v2840_v42, %v2847_v47 }
 0x88e   : > { %v2856_v52 = vperm.slane %v2848_v49, %v8203_v23 }
 0x88f   : > { %v2846_v46 = vsel %vm1946_vm1, %v2845_v43, %v2766_v40 }
 0x890   : > { %v2852_v50 = vperm.slane %v2846_v46, %v8203_v23  ;;  %v2883_v1 = vrot.slane %v2856_v52, 4 }
 0x892   : > { %v2871_v60 = vrot.slane %v2852_v50, 4 }
 0x894   : > { %v2843_v48 = vpop.permute.xlu2 %2842 }
 0x895   : > { %v2857_v51 = vrot.slane %v2843_v48, 4 }
 0x8a4   : > { %v2837_v53 = vpop.permute.xlu1 %2836 }
 0x8a5   : > { %v2858_v54 = vsel %vm1946_vm1, %v2857_v51, %v2837_v53  ;;  %v2859_v55 = vrot.slane %v2837_v53, 4  ;;  %v6220_v53 = vld [vmem:[%s8426_s22] ss:$0 sm:$0xff] }
 0x8a6   : > { %v2864_v61 = vperm.slane %v2858_v54, %v8203_v23 }
 0x8a7   : > { %v2860_v8 = vsel %vm1946_vm1, %v2843_v48, %v2859_v55 }
 0x8a8   : > { %v2868_v5 = vperm.slane %v2860_v8, %v8203_v23  ;;  %v2869_v6 = vrot.slane %v2864_v61, 4  ;;  %v2872_v7 = vsel %vm1946_vm1, %v2864_v61, %v2871_v60 }
 0x8a9   : > { %v2880_v9 = vperm.slane %v2872_v7, %v8213_v41 }
 0x8aa   : > { %v2870_v11 = vsel %vm1946_vm1, %v2869_v6, %v2852_v50  ;;  %v2881_v4 = vrot.slane %v2868_v5, 4  ;;  %v2884_v12 = vsel %vm1946_vm1, %v2868_v5, %v2883_v1  ;;  %v2829_v5 = vpop.f32.mrf.mxu1 }
 0x8ab   : > { %v2876_v13 = vperm.slane %v2870_v11, %v8213_v41  ;;  %v2892_v15 = vperm.slane %v2884_v12, %v8213_v41  ;;  %v2895_v16 = vrot.slane %v2880_v9, 4 }
 0x8ac   : > { %v2882_v17 = vsel %vm1946_vm1, %v2881_v4, %v2856_v52  ;;  %v2830_v4 = vadd.f32 %v6225_v10, %v2829_v5 }
 0x8ad   : > { %v2888_v18 = vperm.slane %v2882_v17, %v8213_v41  ;;  %v2893_v19 = vrot.slane %v2876_v13, 4  ;;  %v2896_v20 = vsel %vm1946_vm1, 0.0, %v2895_v16  ;;  %v2899_v21 = vrot.slane %v2892_v15, 4 }
 0x8ae   : > { %v2901_v22 = vsel %vm1946_vm1, %v2895_v16, %v2876_v13  ;;  %v2906_v24 = vrot.slane %v2896_v20, 4 }
 0x8af   : > { %v2894_v25 = vsel %vm1946_vm1, 0.0, %v2893_v19  ;;  %v2897_v26 = vrot.slane %v2888_v18, 4  ;;  %v2900_v27 = vsel %vm1946_vm1, 0.0, %v2899_v21  ;;  %v2905_v58 = vperm.slane %v2901_v22, %v8203_v23 }
 0x8b0   : > { %v2907_v28 = vsel %vm1946_vm1, %v2906_v24, %v2894_v25  ;;  %v2917_v29 = vrot.slane %v2900_v27, 4  ;;  %v2912_v63 = vsel %vm1946_vm1, %v2899_v21, %v2888_v18 }
 0x8b1   : > { %v2898_v30 = vsel %vm1946_vm1, 0.0, %v2897_v26  ;;  %v2911_v31 = vperm.slane %v2907_v28, %v8203_v23  ;;  %v2916_v44 = vperm.slane %v2912_v63, %v8203_v23  ;;  %v2925_v33 = vrot.slane %v2905_v58, 4 }
 0x8b2   : > { %v2918_v32 = vsel %vm1946_vm1, %v2917_v29, %v2898_v30  ;;  %v2832_v11 = vpop.f32.mrf.mxu1 }
 0x8b3   : > { %v2922_v34 = vperm.slane %v2918_v32, %v8203_v23  ;;  %v2923_v3 = vrot.slane %v2911_v31, 4  ;;  %v2937_v36 = vrot.slane %v2916_v44, 4  ;;  %v2926_v39 = vsel %vm1946_vm1, %v2911_v31, %v2925_v33 }
 0x8b4   : > { %v2934_v47 = vperm.slane %v2926_v39, %v8213_v41  ;;  %v2833_v12 = vadd.f32 %v6225_v10, %v2832_v11 }
 0x8b5   : > { %v2924_v35 = vsel %vm1946_vm1, %v2923_v3, %v2905_v58  ;;  %v2935_v2 = vrot.slane %v2922_v34, 4  ;;  %v2938_v42 = vsel %vm1946_vm1, %v2922_v34, %v2937_v36 }
 0x8b6   : > { %v2930_v37 = vperm.slane %v2924_v35, %v8213_v41  ;;  %v2946_v48 = vperm.slane %v2938_v42, %v8213_v41  ;;  %v2953_v49 = vrot.slane %v2934_v47, 4  ;;  %v6191_v13 = vpack.i.bf16 %v2830_v4, %v2833_v12 }
 0x8b7   : > { %v2936_v38 = vsel %vm1946_vm1, %v2935_v2, %v2916_v44  ;;  %v3217_v35 = vrot.slane %v2830_v4, 4  ;;  %v3273_v2 = vrot.slane %v2833_v12, 4 }
 0x8b8   : > { %v2942_v57 = vperm.slane %v2936_v38, %v8213_v41  ;;  %v2949_v40 = vrot.slane %v2930_v37, 4  ;;  %v2951_v50 = vrot.slane %v2946_v48, 4  ;;  %v2954_v51 = vsel %vm1946_vm1, %v2946_v48, %v2953_v49 }
 0x8ba   : > { %v2950_v43 = vsel %vm1946_vm1, %v2942_v57, %v2949_v40  ;;  %v2947_v46 = vrot.slane %v2942_v57, 4  ;;  %v2952_v52 = vsel %vm1946_vm1, %v2951_v50, %v2934_v47 }
 0x8bb   : > { %5819 = vmatmul.msk.f32.vlgmr.msra.gmra.mxu3 %vm2296_vm2, %v2950_v43 }
 0x8bc   : > { %v2948_v45 = vsel %vm1946_vm1, %v2947_v46, %v2930_v37 }
 0x8bd   : > { %5816 = vmatmul.msk.f32.vlgmr.msra.gmra.mxu2 %vm2296_vm2, %v2948_v45 }
 0x8c3   : > { %5825 = vmatmul.msk.f32.vlgmr.msrb.gmra.mxu3 %vm2296_vm2, %v2954_v51 }
 0x8c5   : > { %5822 = vmatmul.msk.f32.vlgmr.msrb.gmra.mxu2 %vm2296_vm2, %v2952_v52 }
 0x93e   : > { %v3493_v54 = vpop.f32.mrf.mxu3 }
 0x93f   : > { %v3494_v55 = vadd.f32 %v6220_v53, %v3493_v54 }
 0x940   : > { %v3464_v56 = vpop.f32.mrf.mxu2 }
 0x941   : > { %v3465_v59 = vadd.f32 %v6220_v53, %v3464_v56  ;;  %v3557_v60 = vsel %vm2660_vm3, %v3494_v55, -inf }
 0x942   : > { %3558 = vmax.xlane.f32.xlu2 %v3557_v60 }
 0x943   : > { %v3554_v61 = vsel %vm2660_vm3, %v3465_v59, -inf }
 0x944   : > { %3555 = vmax.xlane.f32.xlu1 %v3554_v61 }
 0x946   : > { %v3551_v8 = vpop.f32.mrf.mxu3 }
 0x947   : > { %v3552_v0 = vadd.f32 %v6220_v53, %v3551_v8 }
 0x948   : > { %v3522_v1 = vpop.f32.mrf.mxu2 }
 0x949   : > { %v3523_v6 = vadd.f32 %v6220_v53, %v3522_v1  ;;  %v3563_v7 = vsel %vm2660_vm3, %v3552_v0, -inf }
 0x94a   : > { %3564 = vmax.xlane.f32.xlu2 %v3563_v7 }
 0x94b   : > { %v3560_v9 = vsel %vm2660_vm3, %v3523_v6, -inf }
 0x94c   : > { %3561 = vmax.xlane.f32.xlu0 %v3560_v9 }
 0x95d   : > { %6192 = vrot.lane.b32.xlu1 %v6191_v13, %s9406_s15 }
 0x960   : > { %6187 = vrot.lane.b32.xlu0 %v6191_v13, %s9282_s6  ;;  %s9409_s6 = smov 8  }
 0x962   : > { %6197 = vrot.lane.b32.xlu2 %v6191_v13, %s9284_s11  ;;  %s9410_s11 = sld [smem:[#allocation74_spill]] }
 0x968   : > { %s1835_s3 = scalar_lea.vmem %s9410_s11, %s5863_s13  ;;  %s9411_s11 = smov 104  }
 0x969   : > { %s9287_s13 = scalar_lea.vmem [#allocation53], %s8111_s16 }
 0x9b5   : > { %v3559_v15 = vpop.xlane.xlu2 %3558 }
 0x9b6   : > { %v3567_v26 = vsub.f32 %v3494_v55, %v3559_v15 }
 0x9b7   : > { %v3556_v16 = vpop.xlane.xlu1 %3555 }
 0x9b8   : > { %v3566_v17 = vsub.f32 %v3465_v59, %v3556_v16  ;;  %v3572_v28 = vmul.f32 1.442695, %v3567_v26 }
 0x9ba   : > { %v3570_v18 = vmul.f32 1.442695, %v3566_v17 }
 0x9bc   : > { %6259 = vpow2.f32 %v3570_v18 }
 0x9bd   : > { %v3565_v19 = vpop.xlane.xlu2 %3564 }
 0x9be   : > { %v3569_v20 = vsub.f32 %v3552_v0, %v3565_v19 }
 0x9bf   : > { %v3562_v21 = vpop.xlane.xlu0 %3561 }
 0x9c0   : > { %v3576_v22 = vmul.f32 1.442695, %v3569_v20  ;;  %v3568_v24 = vsub.f32 %v3523_v6, %v3562_v21 }
 0x9c2   : > { %v8616_v25 = vpop.eup %6259  ;;  %6261 = vpow2.f32 %v3576_v22  ;;  %v3574_v27 = vmul.f32 1.442695, %v3568_v24 }
 0x9c3   : > { %v3578_v58 = vsel %vm2660_vm3, %v8616_v25, 0.0 }
 0x9c4   : > { %6263 = vpow2.f32 %v3574_v27  ;;  %3579 = vadd.xlane.f32.xlu1 %v3578_v58 }
 0x9c5   : > { %6265 = vpow2.f32 %v3572_v28  ;;  %v6198_v31 = vpop.permute.xlu2 %6197 }
 0x9c6   : > { %v6200_v32 = vunpack.i.h.bf16 %v6198_v31  ;;  %v6199_v33 = vunpack.i.l.bf16 %v6198_v31 }
 0x9c8   : > { %v8620_v29 = vpop.eup %6261  ;;  %v3227_v38 = vrot.slane %v6200_v32, 4  ;;  %v3283_v39 = vrot.slane %v6199_v33, 4 }
 0x9c9   : > { %v3587_v63 = vsel %vm2660_vm3, %v8620_v29, 0.0 }
 0x9ca   : > { %v8624_v30 = vpop.eup %6263  ;;  %3588 = vadd.xlane.f32.xlu2 %v3587_v63 }
 0x9cb   : > { %v3584_v44 = vsel %vm2660_vm3, %v8624_v30, 0.0  ;;  %v8628_v3 = vpop.eup %6265 }
 0x9cc   : > { %3585 = vadd.xlane.f32.xlu0 %v3584_v44  ;;  %v3581_v48 = vsel %vm2660_vm3, %v8628_v3, 0.0 }
 0x9cf   : > { %v6193_v34 = vpop.permute.xlu1 %6192 }
 0x9d0   : > { %v6195_v36 = vunpack.i.h.bf16 %v6193_v34  ;;  %v6194_v37 = vunpack.i.l.bf16 %v6193_v34 }
 0x9d2   : > { %v3215_v57 = vrot.slane %v6195_v36, 4  ;;  %v3218_v40 = vsel %vm1946_vm1, %v6195_v36, %v3217_v35  ;;  %v3271_v42 = vrot.slane %v6194_v37, 4  ;;  %v3274_v43 = vsel %vm1946_vm1, %v6194_v37, %v3273_v2  ;;  %v6188_v46 = vpop.permute.xlu0 %6187 }
 0x9d3   : > { %v6190_v47 = vunpack.i.h.bf16 %v6188_v46  ;;  %v6189_v45 = vunpack.i.l.bf16 %v6188_v46  ;;  %v3226_v50 = vperm.slane %v3218_v40, %v8203_v23  ;;  %v3282_v54 = vperm.slane %v3274_v43, %v8203_v23 }
 0x9d4   : > { %v3216_v49 = vsel %vm1946_vm1, %v3215_v57, %v2830_v4  ;;  %v3272_v51 = vsel %vm1946_vm1, %v3271_v42, %v2833_v12  ;;  %3582 = vadd.xlane.f32.xlu0 %v3581_v48 }
 0x9d5   : > { %v3222_v52 = vperm.slane %v3216_v49, %v8203_v23  ;;  %v3278_v53 = vperm.slane %v3272_v51, %v8203_v23  ;;  %v3228_v55 = vsel %vm1946_vm1, %v3227_v38, %v6190_v47  ;;  %v3229_v56 = vrot.slane %v6190_v47, 4 }
 0x9d6   : > { %v3284_v59 = vsel %vm1946_vm1, %v3283_v39, %v6189_v45  ;;  %v3285_v60 = vrot.slane %v6189_v45, 4  ;;  %v3234_v0 = vperm.slane %v3228_v55, %v8203_v23  ;;  %v3253_v5 = vrot.slane %v3226_v50, 4 }
 0x9d7   : > { %v3241_v61 = vrot.slane %v3222_v52, 4  ;;  %v3297_v8 = vrot.slane %v3278_v53, 4  ;;  %v3290_v1 = vperm.slane %v3284_v59, %v8203_v23  ;;  %v3230_v6 = vsel %vm1946_vm1, %v6200_v32, %v3229_v56 }
 0x9d8   : > { %v3286_v7 = vsel %vm1946_vm1, %v6199_v33, %v3285_v60  ;;  %v3238_v9 = vperm.slane %v3230_v6, %v8203_v23  ;;  %v3239_v10 = vrot.slane %v3234_v0, 4  ;;  %v3309_v12 = vrot.slane %v3282_v54, 4 }
 0x9d9   : > { %v3242_v11 = vsel %vm1946_vm1, %v3234_v0, %v3241_v61  ;;  %v3294_v4 = vperm.slane %v3286_v7, %v8203_v23  ;;  %v3295_v15 = vrot.slane %v3290_v1, 4  ;;  %v3298_v16 = vsel %vm1946_vm1, %v3290_v1, %v3297_v8 }
 0x9da   : > { %v3250_v13 = vperm.slane %v3242_v11, %v8213_v41  ;;  %v3251_v17 = vrot.slane %v3238_v9, 4  ;;  %v3240_v18 = vsel %vm1946_vm1, %v3239_v10, %v3222_v52  ;;  %v3254_v19 = vsel %vm1946_vm1, %v3238_v9, %v3253_v5 }
 0x9db   : > { %v3306_v20 = vperm.slane %v3298_v16, %v8213_v41  ;;  %v3246_v21 = vperm.slane %v3240_v18, %v8213_v41  ;;  %v3262_v22 = vperm.slane %v3254_v19, %v8213_v41  ;;  %v3296_v26 = vsel %vm1946_vm1, %v3295_v15, %v3278_v53 }
 0x9dc   : > { %v3265_v24 = vrot.slane %v3250_v13, 4  ;;  %v3252_v27 = vsel %vm1946_vm1, %v3251_v17, %v3226_v50  ;;  %v3302_v58 = vperm.slane %v3296_v26, %v8213_v41  ;;  %v3307_v28 = vrot.slane %v3294_v4, 4 }
 0x9dd   : > { %v3310_v63 = vsel %vm1946_vm1, %v3294_v4, %v3309_v12  ;;  %v3258_v31 = vperm.slane %v3252_v27, %v8213_v41  ;;  %v3263_v44 = vrot.slane %v3246_v21, 4  ;;  %v3269_v33 = vrot.slane %v3262_v22, 4 }
 0x9de   : > { %v3266_v32 = vsel %vm1946_vm1, 0.0, %v3265_v24  ;;  %v3308_v34 = vsel %vm1946_vm1, %v3307_v28, %v3282_v54  ;;  %v3318_v35 = vperm.slane %v3310_v63, %v8213_v41  ;;  %v3319_v2 = vrot.slane %v3302_v58, 4 }
 0x9df   : > { %v3321_v36 = vrot.slane %v3306_v20, 4  ;;  %v3270_v37 = vsel %vm1946_vm1, 0.0, %v3269_v33  ;;  %v3314_v38 = vperm.slane %v3308_v34, %v8213_v41  ;;  %v3332_v39 = vrot.slane %v3266_v32, 4 }
 0x9e0   : > { %v3264_v57 = vsel %vm1946_vm1, 0.0, %v3263_v44  ;;  %v3325_v42 = vrot.slane %v3318_v35, 4  ;;  %v3320_v46 = vsel %vm1946_vm1, 0.0, %v3319_v2  ;;  %v3267_v49 = vrot.slane %v3258_v31, 4 }
 0x9e1   : > { %v3322_v40 = vsel %vm1946_vm1, 0.0, %v3321_v36  ;;  %v3381_v43 = vsel %vm1946_vm1, %v3321_v36, %v3302_v58  ;;  %v3323_v45 = vrot.slane %v3314_v38, 4  ;;  %v3327_v52 = vsel %vm1946_vm1, %v3265_v24, %v3246_v21 }
 0x9e2   : > { %v3386_v47 = vrot.slane %v3322_v40, 4  ;;  %v3385_v48 = vperm.slane %v3381_v43, %v8203_v23  ;;  %v3326_v50 = vsel %vm1946_vm1, 0.0, %v3325_v42  ;;  %v3392_v51 = vsel %vm1946_vm1, %v3325_v42, %v3314_v38 }
 0x9e3   : > { %v3333_v53 = vsel %vm1946_vm1, %v3332_v39, %v3264_v57  ;;  %v3397_v54 = vrot.slane %v3326_v50, 4  ;;  %v3324_v55 = vsel %vm1946_vm1, 0.0, %v3323_v45  ;;  %v3396_v59 = vperm.slane %v3392_v51, %v8203_v23 }
 0x9e4   : > { %v3387_v56 = vsel %vm1946_vm1, %v3386_v47, %v3320_v46  ;;  %v3405_v61 = vrot.slane %v3385_v48, 4  ;;  %v3268_v8 = vsel %vm1946_vm1, 0.0, %v3267_v49  ;;  %v3331_v0 = vperm.slane %v3327_v52, %v8203_v23 }
 0x9e5   : > { %v3391_v60 = vperm.slane %v3387_v56, %v8203_v23  ;;  %v3398_v1 = vsel %vm1946_vm1, %v3397_v54, %v3324_v55  ;;  %v3417_v5 = vrot.slane %v3396_v59, 4  ;;  %v3337_v6 = vperm.slane %v3333_v53, %v8203_v23 }
 0x9e6   : > { %v3338_v7 = vsel %vm1946_vm1, %v3269_v33, %v3258_v31  ;;  %v3402_v9 = vperm.slane %v3398_v1, %v8203_v23  ;;  %v3343_v13 = vrot.slane %v3270_v37, 4  ;;  %v3351_v15 = vrot.slane %v3331_v0, 4 }
 0x9e7   : > { %v3406_v10 = vsel %vm1946_vm1, %v3391_v60, %v3405_v61  ;;  %v3403_v11 = vrot.slane %v3391_v60, 4  ;;  %v3342_v4 = vperm.slane %v3338_v7, %v8203_v23  ;;  %v3349_v16 = vrot.slane %v3337_v6, 4 }
 0x9e8   : > { %v3414_v12 = vperm.slane %v3406_v10, %v8213_v41  ;;  %v3418_v17 = vsel %vm1946_vm1, %v3402_v9, %v3417_v5  ;;  %v3415_v19 = vrot.slane %v3402_v9, 4  ;;  %v3344_v26 = vsel %vm1946_vm1, %v3343_v13, %v3268_v8 }
 0x9e9   : > { %v3404_v18 = vsel %vm1946_vm1, %v3403_v11, %v3385_v48  ;;  %v3363_v20 = vrot.slane %v3342_v4, 4  ;;  %v3426_v21 = vperm.slane %v3418_v17, %v8213_v41  ;;  %v3348_v58 = vperm.slane %v3344_v26, %v8203_v23 }
 0x9ea   : > { %v3433_v22 = vrot.slane %v3414_v12, 4  ;;  %v3410_v24 = vperm.slane %v3404_v18, %v8213_v41  ;;  %v3416_v27 = vsel %vm1946_vm1, %v3415_v19, %v3396_v59  ;;  %v3352_v28 = vsel %vm1946_vm1, %v3337_v6, %v3351_v15 }
 0x9eb   : > { %v3350_v63 = vsel %vm1946_vm1, %v3349_v16, %v3331_v0  ;;  %v3431_v44 = vrot.slane %v3426_v21, 4  ;;  %v3422_v32 = vperm.slane %v3416_v27, %v8213_v41  ;;  %v3360_v34 = vperm.slane %v3352_v28, %v8213_v41 }
 0x9ec   : > { %v3434_v31 = vsel %vm1946_vm1, %v3426_v21, %v3433_v22  ;;  %v3429_v33 = vrot.slane %v3410_v24, 4  ;;  %v3364_v35 = vsel %vm1946_vm1, %v3348_v58, %v3363_v20  ;;  %v3356_v2 = vperm.slane %v3350_v63, %v8213_v41 }
 0x9ed   : > { %3699 = vmatpush.msra.mxu3 %v3434_v31  ;;  %v3361_v36 = vrot.slane %v3348_v58, 4  ;;  %v3432_v37 = vsel %vm1946_vm1, %v3431_v44, %v3414_v12  ;;  %v3372_v39 = vperm.slane %v3364_v35, %v8213_v41  ;;  %v3427_v57 = vrot.slane %v3422_v32, 4 }
 0x9ee   : > { %v3430_v38 = vsel %vm1946_vm1, %v3422_v32, %v3429_v33  ;;  %3676 = vmatpush.msra.mxu2 %v3432_v37  ;;  %v3379_v40 = vrot.slane %v3360_v34, 4  ;;  %v3375_v43 = vrot.slane %v3356_v2, 4  ;;  %v7446_v54 = vmov 4.0  }
 0x9ef   : > { %3653 = vmatpush.msra.mxu1 %v3430_v38  ;;  %v3362_v42 = vsel %vm1946_vm1, %v3361_v36, %v3342_v4  ;;  %v3428_v46 = vsel %vm1946_vm1, %v3427_v57, %v3410_v24  ;;  %v3377_v47 = vrot.slane %v3372_v39, 4 }
 0x9f0   : > { %v3368_v45 = vperm.slane %v3362_v42, %v8213_v41  ;;  %v3380_v48 = vsel %vm1946_vm1, %v3372_v39, %v3379_v40  ;;  %3630 = vmatpush.msrb.mxu0 %v3428_v46 }
 0x9f1   : > { %3700 = vmatpush.msra.mxu3 %v3380_v48  ;;  %v3378_v49 = vsel %vm1946_vm1, %v3377_v47, %v3360_v34 }
 0x9f2   : > { %v3376_v50 = vsel %vm1946_vm1, %v3368_v45, %v3375_v43  ;;  %v3373_v51 = vrot.slane %v3368_v45, 4  ;;  %3677 = vmatpush.msra.mxu2 %v3378_v49 }
 0x9f3   : > { %3654 = vmatpush.msra.mxu1 %v3376_v50 }
 0x9f4   : > { %v3374_v52 = vsel %vm1946_vm1, %v3373_v51, %v3356_v2 }
 0x9f5   : > { %3631 = vmatpush.msrb.mxu0 %v3374_v52 }
 0xa37   : > { %v3580_v53 = vpop.xlane.xlu1 %3579 }
 0xa38   : > { %6267 = vrcp.f32 %v3580_v53 }
 0xa39   : > { %6269 = vrcp.f32 %v7446_v54 }
 0xa3d   : > { %v3589_v55 = vpop.xlane.xlu2 %3588 }
 0xa3e   : > { %v6268_v56 = vpop.eup %6267  ;;  %6271 = vrcp.f32 %v3589_v55 }
 0xa3f   : > { %v3594_v59 = vmul.f32 %v6268_v56, %v8616_v25  ;;  %v3586_v60 = vpop.xlane.xlu0 %3585  ;;  %v6270_v61 = vpop.eup %6269 }
 0xa40   : > { %6273 = vrcp.f32 %v3586_v60  ;;  %v3606_v1 = vmul.f32 4.0, %v6270_v61  ;;  %vm3610_vm9 = vweird.f32 %v6270_v61 }
 0xa41   : > { %5826 = vmatmul.msk.f32.vlgmr.msrb.gmra.mxu0 %vm2660_vm3, %v3594_v59  ;;  %v3598_v4 = vsel %vm2660_vm3, %v3594_v59, 0.0 }
 0xa42   : > { %v3607_v9 = vsub.f32 1.0, %v3606_v1 }
 0xa44   : > { %v6272_v8 = vpop.eup %6271  ;;  %v3608_v25 = vmul.f32 %v6270_v61, %v3607_v9 }
 0xa45   : > { %v3597_v0 = vmul.f32 %v6272_v8, %v8620_v29 }
 0xa46   : > { %v6274_v5 = vpop.eup %6273 }
 0xa47   : > { %v3596_v6 = vmul.f32 %v6274_v5, %v8624_v30  ;;  %v3583_v7 = vpop.xlane.xlu0 %3582  ;;  %5829 = vmatmul.msk.f32.vlgmr.msra.gmra.mxu3 %vm2660_vm3, %v3597_v0  ;;  %v3609_v30 = vadd.f32 %v6270_v61, %v3608_v25  ;;  %v3603_v16 = vsel %vm2660_vm3, %v3597_v0, 0.0 }
 0xa48   : > { %6275 = vrcp.f32 %v3583_v7 }
 0xa49   : > { %5828 = vmatmul.msk.f32.vlgmr.msra.gmra.mxu2 %vm2660_vm3, %v3596_v6  ;;  %v3601_v13 = vsel %vm2660_vm3, %v3596_v6, 0.0  ;;  %v8724_v17 = vsel %vm3610_vm9, %v6270_v61, %v3609_v30 }
 0xa4e   : > { %v6276_v10 = vpop.eup %6275 }
 0xa4f   : > { %v3595_v11 = vmul.f32 %v6276_v10, %v8628_v3 }
 0xa51   : > { %v3599_v29 = vsel %vm2660_vm3, %v3595_v11, 0.0  ;;  %5827 = vmatmul.msk.f32.vlgmr.msra.gmra.mxu1 %vm2660_vm3, %v3595_v11 }
 0xa52   : > { %v3600_v12 = vadd.f32 %v3599_v29, %v3598_v4 }
 0xa54   : > { %v3602_v15 = vadd.f32 %v3601_v13, %v3600_v12 }
 0xa56   : > { %v3604_v18 = vadd.f32 %v3603_v16, %v3602_v15 }
 0xa58   : > { %v3612_v19 = vmul.f32 %v8724_v17, %v3604_v18 }
 0xa5a   : > { %5169 = vst.msk [vmem:[%s9281_s2] sm:$0xff] %vm2660_vm3, %v3612_v19  ;;  %s9408_s2 = smov 16  }
 0xabe   : > { %v3633_v3 = vpop.f32.mrf.mxu0 }
 0xabf   : > { %v3707_v21 = vrot.slane %v3633_v3, 4 }
 0xaca   : > { %v3702_v20 = vpop.f32.mrf.mxu3 }
 0xacb   : > { %v3717_v24 = vrot.slane %v3702_v20, 4 }
 0xacc   : > { %v3679_v22 = vpop.f32.mrf.mxu2 }
 0xacd   : > { %v3705_v26 = vrot.slane %v3679_v22, 4  ;;  %v3708_v27 = vsel %vm1946_vm1, %v3679_v22, %v3707_v21 }
 0xace   : > { %v3716_v58 = vperm.slane %v3708_v27, %v8203_v23  ;;  %v3656_v28 = vpop.f32.mrf.mxu1 }
 0xacf   : > { %v3706_v63 = vsel %vm1946_vm1, %v3705_v26, %v3633_v3  ;;  %v3718_v31 = vsel %vm1946_vm1, %v3717_v24, %v3656_v28  ;;  %v3719_v44 = vrot.slane %v3656_v28, 4  ;;  %v3832_v28 = vld [vmem:[#allocation14 + $0x10] sm:$0xff] }
 0xad0   : > { %v3712_v32 = vperm.slane %v3706_v63, %v8203_v23  ;;  %v3724_v33 = vperm.slane %v3718_v31, %v8203_v23  ;;  %v3743_v2 = vrot.slane %v3716_v58, 4  ;;  %v3831_v63 = vld [vmem:[#allocation14 + $0x8] sm:$0xff]  ;;  %v3830_v31 = vld [vmem:[#allocation14] sm:$0xff] }
 0xad1   : > { %v3720_v34 = vsel %vm1946_vm1, %v3702_v20, %v3719_v44 }
 0xad2   : > { %v3731_v35 = vrot.slane %v3712_v32, 4  ;;  %v3728_v36 = vperm.slane %v3720_v34, %v8203_v23  ;;  %v3729_v37 = vrot.slane %v3724_v33, 4 }
 0xad4   : > { %v3730_v38 = vsel %vm1946_vm1, %v3729_v37, %v3712_v32  ;;  %v3732_v39 = vsel %vm1946_vm1, %v3724_v33, %v3731_v35  ;;  %v3741_v57 = vrot.slane %v3728_v36, 4  ;;  %v3744_v40 = vsel %vm1946_vm1, %v3728_v36, %v3743_v2  ;;  %v3929_v36 = vld [vmem:[#allocation23 + $0x18] sm:$0xff]  ;;  %v3928_v37 = vld [vmem:[#allocation23 + $0x10] sm:$0xff] }
 0xad5   : > { %v3736_v42 = vperm.slane %v3730_v38, %v8213_v41  ;;  %v3740_v43 = vperm.slane %v3732_v39, %v8213_v41  ;;  %v3752_v46 = vperm.slane %v3744_v40, %v8213_v41  ;;  %3952 = vmatpush.msrb.mxu2 %v3929_v36  ;;  %v3927_v38 = vld [vmem:[#allocation23 + $0x8] sm:$0xff]  ;;  %v3926_v39 = vld [vmem:[#allocation23] sm:$0xff] }
 0xad6   : > { %v3742_v47 = vsel %vm1946_vm1, %v3741_v57, %v3716_v58  ;;  %v3833_v58 = vld [vmem:[#allocation14 + $0x18] sm:$0xff]  ;;  %v8781_v57 = vld [vmem:[%s1835_s3] sm:$0xff]  ;;  %v8785_v40 = vld [vmem:[%s1835_s3 + $0x8] sm:$0xff]  ;;  %s9412_s3 = smov 120  }
 0xad7   : > { %v3748_v45 = vperm.slane %v3742_v47, %v8213_v41  ;;  %v3753_v48 = vrot.slane %v3736_v42, 4  ;;  %v3755_v49 = vrot.slane %v3740_v43, 4  ;;  %v3759_v50 = vrot.slane %v3752_v46, 4  ;;  %3853 = vmatpush.msra.mxu0 %v3833_v58  ;;  %3953 = vmatpush.msrb.mxu2 %v3928_v37  ;;  %v6228_v37 = vld [vmem:[#allocation37] ss:$0 sm:$0xff] }
 0xad9   : > { %v3756_v51 = vsel %vm1946_vm1, 0.0, %v3755_v49  ;;  %v3757_v52 = vrot.slane %v3748_v45, 4  ;;  %v3760_v53 = vsel %vm1946_vm1, 0.0, %v3759_v50  ;;  %v3761_v54 = vsel %vm1946_vm1, %v3755_v49, %v3736_v42  ;;  %3854 = vmatpush.msra.mxu0 %v3832_v28  ;;  %3954 = vmatpush.msrb.mxu2 %v3927_v38  ;;  %v6226_v42 = vld [vmem:[#allocation20] ss:$0 sm:$0xff] }
 0xada   : > { %v3766_v55 = vrot.slane %v3756_v51, 4  ;;  %v3777_v56 = vrot.slane %v3760_v53, 4  ;;  %v3772_v59 = vsel %vm1946_vm1, %v3759_v50, %v3748_v45  ;;  %v3754_v60 = vsel %vm1946_vm1, 0.0, %v3753_v48  ;;  %v6227_v48 = vld [vmem:[#allocation29] ss:$0 sm:$0xff] }
 0xadb   : > { %v3765_v61 = vperm.slane %v3761_v54, %v8203_v23  ;;  %v3758_v8 = vsel %vm1946_vm1, 0.0, %v3757_v52  ;;  %v3776_v0 = vperm.slane %v3772_v59, %v8203_v23  ;;  %3855 = vmatpush.msra.mxu0 %v3831_v63  ;;  %3955 = vmatpush.msrb.mxu2 %v3926_v39  ;;  %v3897_v59 = vld [vmem:[#allocation22 + $0x18] sm:$0xff] }
 0xadc   : > { %v3767_v1 = vsel %vm1946_vm1, %v3766_v55, %v3754_v60  ;;  %v3778_v5 = vsel %vm1946_vm1, %v3777_v56, %v3758_v8  ;;  %5832 = vmatmul.msk.f32.vlgmr.msrb.gmra.mxu2 %vm1854_vm0, %v8781_v57  ;;  %v3896_v60 = vld [vmem:[#allocation22 + $0x10] sm:$0xff]  ;;  %3917 = vmatpush.msrb.mxu1 %v3897_v59  ;;  %v3894_v8 = vld [vmem:[#allocation22] sm:$0xff] }
 0xadd   : > { %v3771_v6 = vperm.slane %v3767_v1, %v8203_v23  ;;  %v3782_v7 = vperm.slane %v3778_v5, %v8203_v23  ;;  %v3785_v9 = vrot.slane %v3765_v61, 4  ;;  %v3797_v25 = vrot.slane %v3776_v0, 4  ;;  %3856 = vmatpush.msra.mxu0 %v3830_v31 }
 0xade   : > { %3918 = vmatpush.msrb.mxu1 %v3896_v60 }
 0xadf   : > { %v3786_v10 = vsel %vm1946_vm1, %v3771_v6, %v3785_v9  ;;  %v3798_v11 = vsel %vm1946_vm1, %v3782_v7, %v3797_v25  ;;  %v3783_v4 = vrot.slane %v3771_v6, 4  ;;  %v3795_v29 = vrot.slane %v3782_v7, 4 }
 0xae0   : > { %v3794_v30 = vperm.slane %v3786_v10, %v8213_v41  ;;  %v3806_v12 = vperm.slane %v3798_v11, %v8213_v41 }
 0xae1   : > { %v3784_v13 = vsel %vm1946_vm1, %v3783_v4, %v3765_v61  ;;  %v3796_v15 = vsel %vm1946_vm1, %v3795_v29, %v3776_v0  ;;  %v3895_v61 = vld [vmem:[#allocation22 + $0x8] sm:$0xff] }
 0xae2   : > { %v3813_v16 = vrot.slane %v3794_v30, 4  ;;  %v3811_v18 = vrot.slane %v3806_v12, 4  ;;  %v3790_v19 = vperm.slane %v3784_v13, %v8213_v41  ;;  %v3802_v3 = vperm.slane %v3796_v15, %v8213_v41  ;;  %3919 = vmatpush.msrb.mxu1 %v3895_v61 }
 0xae4   : > { %v3814_v20 = vsel %vm1946_vm1, %v3806_v12, %v3813_v16  ;;  %v3812_v21 = vsel %vm1946_vm1, %v3811_v18, %v3794_v30  ;;  %v3807_v22 = vrot.slane %v3802_v3, 4  ;;  %v3809_v24 = vrot.slane %v3790_v19, 4  ;;  %5833 = vmatmul.msk.f32.gmra.mxu2 %vm1854_vm0, %v8785_v40  ;;  %3920 = vmatpush.msrb.mxu1 %v3894_v8 }
 0xae5   : > { %3824 = vrot.lane.b32.xlu1 %v3814_v20, %s9407_s4  ;;  %3820 = vrot.lane.b32.xlu2 %v3812_v21, %s9408_s2 }
 0xae6   : > { %v3810_v26 = vsel %vm1946_vm1, %v3802_v3, %v3809_v24  ;;  %v3808_v27 = vsel %vm1946_vm1, %v3807_v22, %v3790_v19 }
 0xae7   : > { %3816 = vrot.lane.b32.xlu0 %v3810_v26, %s9409_s6 }
 0xb3f   : > { %v3821_v32 = vpop.permute.xlu2 %3820 }
 0xb57   : > { %v3825_v34 = vpop.permute.xlu1 %3824 }
 0xb59   : > { %v3817_v44 = vpop.permute.xlu0 %3816 }
 0xb5a   : > { %v3827_v33 = vsel %vm2296_vm2, %v3808_v27, %v3817_v44 }
 0xb5b   : > { %v3828_v35 = vsel %vm2660_vm3, %v3827_v33, %v3821_v32 }
 0xb5c   : > { %v3829_v2 = vsel %vm2662_vm4, %v3828_v35, %v3825_v34 }
 0xb5d   : > { %5830 = vmatmul.msk.f32.vlgmr.msra.gmra.mxu0 %vm1854_vm0, %v3829_v2 }
 0xb5f   : > { %v3957_v49 = vpop.f32.mrf.mxu2 }
 0xb60   : > { %v8791_v50 = vadd.f32 %v6227_v48, %v3957_v49  ;;  %v6229_v49 = vld [vmem:[#allocation38] ss:$0 sm:$0xff] }
 0xb67   : > { %v3960_v52 = vpop.f32.mrf.mxu2 }
 0xb68   : > { %v3961_v54 = vadd.f32 %v6227_v48, %v3960_v52 }
 0xb6a   : > { %4118 = vrot.lane.b32.xlu1 %v3961_v54, %s9412_s3  ;;  %v4192_v6 = vrot.slane %v3961_v54, 4 }
 0xb72   : > { %4124 = vrot.lane.b32.xlu1 %v3961_v54, %s9406_s15 }
 0xb7a   : > { %4130 = vrot.lane.b32.xlu1 %v3961_v54, %s9411_s11 }
 0xb82   : > { %4116 = vrot.lane.b32.xlu1 %v8791_v50, %s9412_s3 }
 0xb8a   : > { %4122 = vrot.lane.b32.xlu1 %v8791_v50, %s9406_s15 }
 0xbda   : > { %v3858_v43 = vpop.f32.mrf.mxu0 }
 0xbdb   : > { %v3859_v46 = vadd.f32 %v6226_v42, %v3858_v43 }
 0xbdc   : > { %v4119_v0 = vpop.permute.xlu1 %4118 }
 0xbdd   : > { %v3861_v47 = vadd.f32 %v3859_v46, %v8488_v14  ;;  %v4204_v29 = vrot.slane %v4119_v0, 4 }
 0xbdf   : > { %v3862_v45 = vsel %vm1854_vm0, %v3861_v47, 0.0 }
 0xbe0   : > { %3863 = vadd.xlane.f32.xlu0 %v3862_v45 }
 0xbe4   : > { %v4125_v9 = vpop.permute.xlu1 %4124 }
 0xbe5   : > { %v4190_v25 = vrot.slane %v4125_v9, 4  ;;  %v4193_v10 = vsel %vm1946_vm1, %v4125_v9, %v4192_v6 }
 0xbe6   : > { %v4201_v4 = vperm.slane %v4193_v10, %v8203_v23 }
 0xbe7   : > { %v4191_v11 = vsel %vm1946_vm1, %v4190_v25, %v3961_v54 }
 0xbe8   : > { %v4197_v12 = vperm.slane %v4191_v11, %v8203_v23  ;;  %v4228_v15 = vrot.slane %v4201_v4, 4 }
 0xbea   : > { %v4216_v20 = vrot.slane %v4197_v12, 4 }
 0xbec   : > { %v4131_v16 = vpop.permute.xlu1 %4130 }
 0xbed   : > { %v4202_v19 = vrot.slane %v4131_v16, 4  ;;  %v4205_v3 = vsel %vm1946_vm1, %v4131_v16, %v4204_v29 }
 0xbee   : > { %v4213_v21 = vperm.slane %v4205_v3, %v8203_v23 }
 0xbef   : > { %v4203_v24 = vsel %vm1946_vm1, %v4202_v19, %v4119_v0 }
 0xbf0   : > { %v4209_v26 = vperm.slane %v4203_v24, %v8203_v23  ;;  %v4226_v27 = vrot.slane %v4213_v21, 4  ;;  %v4229_v58 = vsel %vm1946_vm1, %v4213_v21, %v4228_v15 }
 0xbf1   : > { %v4237_v63 = vperm.slane %v4229_v58, %v8213_v41 }
 0xbf2   : > { %v4214_v44 = vrot.slane %v4209_v26, 4  ;;  %v4217_v32 = vsel %vm1946_vm1, %v4209_v26, %v4216_v20  ;;  %v4227_v33 = vsel %vm1946_vm1, %v4226_v27, %v4201_v4 }
 0xbf3   : > { %v4225_v35 = vperm.slane %v4217_v32, %v8213_v41  ;;  %v4233_v2 = vperm.slane %v4227_v33, %v8213_v41  ;;  %v4244_v36 = vrot.slane %v4237_v63, 4 }
 0xbf4   : > { %4128 = vrot.lane.b32.xlu0 %v8791_v50, %s9411_s11  ;;  %v4215_v38 = vsel %vm1946_vm1, %v4214_v44, %v4197_v12  ;;  %v4117_v39 = vpop.permute.xlu1 %4116 }
 0xbf5   : > { %v4221_v46 = vperm.slane %v4215_v38, %v8213_v41  ;;  %v4242_v45 = vrot.slane %v4233_v2, 4  ;;  %v4148_v52 = vrot.slane %v4117_v39, 4 }
 0xbfc   : > { %v4123_v29 = vpop.permute.xlu1 %4122 }
 0xbfd   : > { %v4134_v15 = vrot.slane %v4123_v29, 4 }
 0xbff   : > { %v4135_v21 = vsel %vm1946_vm1, %v4134_v15, %v8791_v50 }
 0xc00   : > { %v4141_v24 = vperm.slane %v4135_v21, %v8203_v23 }
 0xc02   : > { %v4160_v32 = vrot.slane %v4141_v24, 4 }
 0xc53   : > { %v3864_v51 = vpop.xlane.xlu0 %3863 }
 0xc54   : > { %v3865_v53 = vmul.f32 %v3864_v51, %v8447_v62  ;;  %v4245_v51 = vsel %vm1946_vm1, 0.0, %v4244_v36 }
 0xc55   : > { %v4316_v61 = vrot.slane %v4245_v51, 4 }
 0xc56   : > { %v8796_v55 = vsub.f32 %v3861_v47, %v3865_v53  ;;  %v4240_v47 = vrot.slane %v4225_v35, 4  ;;  %v4238_v53 = vrot.slane %v4221_v46, 4 }
 0xc58   : > { %v3867_v14 = vmul.f32 %v8796_v55, %v8796_v55  ;;  %v4241_v54 = vsel %vm1946_vm1, 0.0, %v4240_v47  ;;  %v4239_v0 = vsel %vm1946_vm1, 0.0, %v4238_v53  ;;  %v4300_v25 = vsel %vm1946_vm1, %v4240_v47, %v4221_v46 }
 0xc59   : > { %v4305_v60 = vrot.slane %v4241_v54, 4  ;;  %v4304_v12 = vperm.slane %v4300_v25, %v8203_v23 }
 0xc5a   : > { %v3868_v56 = vsel %vm1854_vm0, %v3867_v14, 0.0  ;;  %v4243_v14 = vsel %vm1946_vm1, 0.0, %v4242_v45 }
 0xc5b   : > { %3869 = vadd.xlane.f32.xlu2 %v3868_v56  ;;  %v4311_v56 = vsel %vm1946_vm1, %v4244_v36, %v4233_v2  ;;  %v4306_v4 = vsel %vm1946_vm1, %v4305_v60, %v4239_v0 }
 0xc5c   : > { %v4315_v10 = vperm.slane %v4311_v56, %v8203_v23 }
 0xc5e   : > { %v4336_v44 = vrot.slane %v4315_v10, 4 }
 0xc66   : > { %v4129_v31 = vpop.permute.xlu0 %4128 }
 0xc67   : > { %v4146_v42 = vrot.slane %v4129_v31, 4 }
 0xc69   : > { %v4147_v8 = vsel %vm1946_vm1, %v4146_v42, %v4117_v39  ;;  %v4324_v39 = vrot.slane %v4304_v12, 4 }
 0xcce   : > { %v3870_v1 = vpop.xlane.xlu2 %3869 }
 0xccf   : > { %v3871_v5 = vmul.f32 %v3870_v1, %v8447_v62  ;;  %v4149_v1 = vsel %vm1946_vm1, %v4129_v31, %v4148_v52 }
 0xcd0   : > { %v4157_v9 = vperm.slane %v4149_v1, %v8203_v23 }
 0xcd1   : > { %v3872_v7 = vadd.f32 1e-05, %v3871_v5  ;;  %v4153_v5 = vperm.slane %v4147_v8, %v8203_v23 }
 0xcd3   : > { %6277 = vrsqrt.f32 %v3872_v7  ;;  %vm3879_vm11 = vweird.f32 %v3872_v7  ;;  %v4158_v3 = vrot.slane %v4153_v5, 4 }
 0xcd5   : > { %v4159_v33 = vsel %vm1946_vm1, %v4158_v3, %v4141_v24 }
 0xcd9   : > { %v6278_v30 = vpop.eup %6277 }
 0xcda   : > { %v3874_v13 = vmul.f32 %v6278_v30, %v3872_v7  ;;  %vm3880_vm10 = vweird.f32 %v6278_v30  ;;  %v4317_v7 = vsel %vm1946_vm1, %v4316_v61, %v4243_v14 }
 0xcdb   : > { %vm3881_vm12 = vmor %vm3879_vm11, %vm3880_vm10  ;;  %v4321_v11 = vperm.slane %v4317_v7, %v8203_v23 }
 0xcdc   : > { %v3875_v18 = vmul.f32 %v6278_v30, %v3874_v13  ;;  %v4310_v13 = vperm.slane %v4306_v4, %v8203_v23 }
 0xcde   : > { %v3876_v22 = vmul.f32 0.5, %v3875_v18  ;;  %v4334_v18 = vrot.slane %v4321_v11, 4  ;;  %v4322_v20 = vrot.slane %v4310_v13, 4  ;;  %v4325_v56 = vsel %vm1946_vm1, %v4310_v13, %v4324_v39  ;;  %v3965_v39 = vld [vmem:[#allocation25 + $0x10] sm:$0xff] }
 0xcdf   : > { %v4333_v4 = vperm.slane %v4325_v56, %v8213_v41 }
 0xce0   : > { %v3877_v28 = vsub.f32 1.5, %v3876_v22  ;;  %v4335_v22 = vsel %vm1946_vm1, %v4334_v18, %v4315_v10  ;;  %v4323_v58 = vsel %vm1946_vm1, %v4322_v20, %v4304_v12 }
 0xce1   : > { %v4329_v63 = vperm.slane %v4323_v58, %v8213_v41  ;;  %v4341_v31 = vperm.slane %v4335_v22, %v8213_v41  ;;  %v4352_v3 = vrot.slane %v4333_v4, 4 }
 0xce2   : > { %v3878_v34 = vmul.f32 %v6278_v30, %v3877_v28 }
 0xce3   : > { %v4346_v36 = vrot.slane %v4341_v31, 4  ;;  %v4348_v38 = vrot.slane %v4329_v63, 4 }
 0xce4   : > { %v3882_v43 = vsel %vm3881_vm12, %v6278_v30, %v3878_v34  ;;  %v4170_v30 = vrot.slane %v4157_v9, 4  ;;  %v4165_v34 = vperm.slane %v4159_v33, %v8213_v41  ;;  %v6230_v33 = vld [vmem:[#allocation28] ss:$0 sm:$0xff] }
 0xce5   : > { %v3883_v48 = vmul.f32 %v3882_v43, %v8796_v55  ;;  %v4136_v55 = vrot.slane %v8791_v50, 4  ;;  %v4347_v47 = vsel %vm1946_vm1, %v4346_v36, %v4329_v63  ;;  %v4349_v45 = vsel %vm1946_vm1, %v4341_v31, %v4348_v38  ;;  %v3966_v38 = vld [vmem:[#allocation25 + $0x18] sm:$0xff] }
 0xce6   : > { %v4182_v43 = vrot.slane %v4165_v34, 4  ;;  %5836 = vmatpush.xpose.msk.msrb.mxu0 %vm2296_vm2, %v4347_v47  ;;  %5839 = vmatpush.xpose.msk.msra.mxu1 %vm2296_vm2, %v4349_v45 }
 0xce7   : > { %v3888_v59 = vmul.f32 %v6228_v37, %v3883_v48  ;;  %v4137_v16 = vsel %vm1946_vm1, %v4123_v29, %v4136_v55  ;;  %v4161_v37 = vsel %vm1946_vm1, %v4153_v5, %v4160_v32  ;;  %v4337_v48 = vsel %vm1946_vm1, %v4321_v11, %v4336_v44  ;;  %3983 = vmatpush.msrb.mxu3 %v3966_v38 }
 0xce8   : > { %v4145_v19 = vperm.slane %v4137_v16, %v8203_v23  ;;  %v4169_v42 = vperm.slane %v4161_v37, %v8213_v41  ;;  %v4183_v60 = vsel %vm1946_vm1, 0.0, %v4182_v43  ;;  %v4345_v8 = vperm.slane %v4337_v48, %v8213_v41  ;;  %v3964_v48 = vld [vmem:[#allocation25 + $0x8] sm:$0xff] }
 0xce9   : > { %v8835_v6 = vadd.f32 %v6229_v49, %v3888_v59  ;;  %3984 = vmatpush.msrb.mxu3 %v3965_v39 }
 0xcea   : > { %v4172_v26 = vrot.slane %v4145_v19, 4  ;;  %v4171_v27 = vsel %vm1946_vm1, %v4170_v30, %v4145_v19  ;;  %v4184_v49 = vrot.slane %v4169_v42, 4  ;;  %v4350_v30 = vrot.slane %v4345_v8, 4 }
 0xceb   : > { %5831 = vmatmul.msk.f32.vlgmr.msrb.gmra.mxu1 %vm1854_vm0, %v8835_v6  ;;  %v4177_v28 = vperm.slane %v4171_v27, %v8213_v41  ;;  %3985 = vmatpush.msrb.mxu3 %v3964_v48 }
 0xcec   : > { %v4173_v50 = vsel %vm1946_vm1, %v4157_v9, %v4172_v26  ;;  %v4185_v59 = vsel %vm1946_vm1, 0.0, %v4184_v49  ;;  %v4246_v61 = vsel %vm1946_vm1, %v4184_v49, %v4165_v34  ;;  %v4351_v24 = vsel %vm1946_vm1, %v4350_v30, %v4333_v4 }
 0xced   : > { %v4181_v35 = vperm.slane %v4173_v50, %v8213_v41  ;;  %v4186_v2 = vrot.slane %v4177_v28, 4  ;;  %v4251_v0 = vrot.slane %v4185_v59, 4  ;;  %v4250_v1 = vperm.slane %v4246_v61, %v8203_v23 }
 0xcef   : > { %v4188_v46 = vrot.slane %v4181_v35, 4  ;;  %v4187_v51 = vsel %vm1946_vm1, 0.0, %v4186_v2  ;;  %v4252_v9 = vsel %vm1946_vm1, %v4251_v0, %v4183_v60  ;;  %v4270_v25 = vrot.slane %v4250_v1, 4 }
 0xcf0   : > { %v4256_v10 = vperm.slane %v4252_v9, %v8203_v23 }
 0xcf1   : > { %v4189_v52 = vsel %vm1946_vm1, 0.0, %v4188_v46  ;;  %v4257_v53 = vsel %vm1946_vm1, %v4188_v46, %v4177_v28  ;;  %v4353_v28 = vsel %vm1946_vm1, %v4345_v8, %v4352_v3 }
 0xcf2   : > { %v4261_v54 = vperm.slane %v4257_v53, %v8203_v23  ;;  %v4262_v14 = vrot.slane %v4189_v52, 4  ;;  %v4268_v12 = vrot.slane %v4256_v10, 4  ;;  %v4271_v15 = vsel %vm1946_vm1, %v4256_v10, %v4270_v25 }
 0xcf3   : > { %v4279_v20 = vperm.slane %v4271_v15, %v8213_v41 }
 0xcf4   : > { %v4263_v55 = vsel %vm1946_vm1, %v4262_v14, %v4187_v51  ;;  %v4282_v5 = vrot.slane %v4261_v54, 4  ;;  %v4269_v19 = vsel %vm1946_vm1, %v4268_v12, %v4250_v1 }
 0xcf5   : > { %v4267_v7 = vperm.slane %v4263_v55, %v8203_v23  ;;  %v4275_v21 = vperm.slane %v4269_v19, %v8213_v41  ;;  %v4298_v63 = vrot.slane %v4279_v20, 4 }
 0xcf7   : > { %v4280_v11 = vrot.slane %v4267_v7, 4  ;;  %v4283_v29 = vsel %vm1946_vm1, %v4267_v7, %v4282_v5  ;;  %v4294_v58 = vrot.slane %v4275_v21, 4 }
 0xcf8   : > { %v4291_v16 = vperm.slane %v4283_v29, %v8213_v41 }
 0xcf9   : > { %v4281_v13 = vsel %vm1946_vm1, %v4280_v11, %v4261_v54  ;;  %v3963_v54 = vld [vmem:[#allocation25] sm:$0xff] }
 0xcfa   : > { %v4287_v18 = vperm.slane %v4281_v13, %v8213_v41  ;;  %v4296_v26 = vrot.slane %v4291_v16, 4  ;;  %v4299_v32 = vsel %vm1946_vm1, %v4291_v16, %v4298_v63  ;;  %3986 = vmatpush.msrb.mxu3 %v3963_v54 }
 0xcfb   : > { %5834 = vmatmul.msk.f32.vlgmr.msrb.gmra.mxu3 %vm1854_vm0, %v8781_v57 }
 0xcfc   : > { %v4292_v22 = vrot.slane %v4287_v18, 4  ;;  %v4295_v31 = vsel %vm1946_vm1, %v4287_v18, %v4294_v58  ;;  %v4297_v44 = vsel %vm1946_vm1, %v4296_v26, %v4279_v20 }
 0xcfd   : > { %5840 = vmatpush.xpose.msk.msra.mxu1 %vm2296_vm2, %v4295_v31 }
 0xcfe   : > { %v4293_v27 = vsel %vm1946_vm1, %v4292_v22, %v4275_v21 }
 0xcff   : > { %5837 = vmatpush.xpose.msk.msrb.mxu0 %vm2296_vm2, %v4293_v27 }
 0xd01   : > { %5845 = vmatpush.xpose.msk.msrb.mxu1 %vm2296_vm2, %v4353_v28 }
 0xd03   : > { %5842 = vmatpush.xpose.msk.msra.mxu0 %vm2296_vm2, %v4351_v24  ;;  %5835 = vmatmul.msk.f32.gmra.mxu3 %vm1854_vm0, %v8785_v40 }
 0xd05   : > { %5846 = vmatpush.xpose.msk.msrb.mxu1 %vm2296_vm2, %v4299_v32 }
 0xd07   : > { %5843 = vmatpush.xpose.msk.msra.mxu0 %vm2296_vm2, %v4297_v44 }
 0xd68   : > { %v3922_v50 = vpop.f32.mrf.mxu1 }
 0xd69   : > { %v3923_v34 = vadd.f32 %v6230_v33, %v3922_v50 }
 0xd6b   : > { %v3925_v35 = vmul.f32 0.35355338, %v3923_v34 }
 0xd6d   : > { %3998 = vrot.lane.b32.xlu1 %v3925_v35, %s9406_s15  ;;  %3995 = vrot.lane.b32.xlu2 %v3925_v35, %s9412_s3  ;;  %v4006_v37 = vrot.slane %v3925_v35, 4 }
 0xd75   : > { %4001 = vrot.lane.b32.xlu1 %v3925_v35, %s9411_s11 }
 0xdc7   : > { %v3996_v43 = vpop.permute.xlu2 %3995 }
 0xdc8   : > { %v4018_v45 = vrot.slane %v3996_v43, 4 }
 0xddf   : > { %v3999_v2 = vpop.permute.xlu1 %3998 }
 0xde0   : > { %v4004_v36 = vrot.slane %v3999_v2, 4  ;;  %v4007_v42 = vsel %vm1946_vm1, %v3999_v2, %v4006_v37 }
 0xde1   : > { %v4015_v47 = vperm.slane %v4007_v42, %v8203_v23 }
 0xde2   : > { %v4005_v46 = vsel %vm1946_vm1, %v4004_v36, %v3925_v35 }
 0xde3   : > { %v4011_v49 = vperm.slane %v4005_v46, %v8203_v23  ;;  %v4042_v14 = vrot.slane %v4015_v47, 4 }
 0xde5   : > { %v4030_v60 = vrot.slane %v4011_v49, 4 }
 0xde7   : > { %v4002_v51 = vpop.permute.xlu1 %4001 }
 0xde8   : > { %v4016_v52 = vrot.slane %v4002_v51, 4  ;;  %v4019_v53 = vsel %vm1946_vm1, %v4002_v51, %v4018_v45 }
 0xde9   : > { %v4027_v56 = vperm.slane %v4019_v53, %v8203_v23 }
 0xdea   : > { %v4017_v59 = vsel %vm1946_vm1, %v4016_v52, %v3996_v43 }
 0xdeb   : > { %v4023_v61 = vperm.slane %v4017_v59, %v8203_v23  ;;  %v4040_v8 = vrot.slane %v4027_v56, 4  ;;  %v4043_v0 = vsel %vm1946_vm1, %v4027_v56, %v4042_v14 }
 0xdec   : > { %v4051_v55 = vperm.slane %v4043_v0, %v8213_v41 }
 0xded   : > { %v4028_v1 = vrot.slane %v4023_v61, 4  ;;  %v4031_v5 = vsel %vm1946_vm1, %v4023_v61, %v4030_v60  ;;  %v4041_v7 = vsel %vm1946_vm1, %v4040_v8, %v4015_v47  ;;  %v3988_v61 = vpop.f32.mrf.mxu3 }
 0xdee   : > { %v4039_v9 = vperm.slane %v4031_v5, %v8213_v41  ;;  %v4047_v25 = vperm.slane %v4041_v7, %v8213_v41  ;;  %v4058_v10 = vrot.slane %v4051_v55, 4 }
 0xdef   : > { %v4029_v57 = vsel %vm1946_vm1, %v4028_v1, %v4011_v49  ;;  %v6303_v49 = vld [vmem:[%s8426_s22] ss:$0 sm:$0xff]  ;;  %v6231_v1 = vld [vmem:[#allocation31] ss:$0 sm:$0xff]  ;;  %s9414_s22 = sld [smem:[#allocation105_spill]] }
 0xdf0   : > { %v4035_v11 = vperm.slane %v4029_v57, %v8213_v41  ;;  %v4054_v4 = vrot.slane %v4039_v9, 4  ;;  %v4056_v29 = vrot.slane %v4047_v25, 4  ;;  %v4059_v30 = vsel %vm1946_vm1, 0.0, %v4058_v10 }
 0xdf1   : > { %v4071_v12 = vsel %vm1946_vm1, %v4058_v10, %v4047_v25  ;;  %v4076_v13 = vrot.slane %v4059_v30, 4  ;;  %v8960_v7 = vadd.f32 %v6231_v1, %v3988_v61 }
 0xdf2   : > { %v4052_v15 = vrot.slane %v4035_v11, 4  ;;  %v4055_v16 = vsel %vm1946_vm1, 0.0, %v4054_v4  ;;  %v4057_v18 = vsel %vm1946_vm1, 0.0, %v4056_v29  ;;  %v4075_v19 = vperm.slane %v4071_v12, %v8203_v23 }
 0xdf3   : > { %v4065_v3 = vrot.slane %v4055_v16, 4  ;;  %v4077_v20 = vsel %vm1946_vm1, %v4076_v13, %v4057_v18  ;;  %v4060_v21 = vsel %vm1946_vm1, %v4054_v4, %v4035_v11 }
 0xdf4   : > { %v4053_v22 = vsel %vm1946_vm1, 0.0, %v4052_v15  ;;  %v4081_v24 = vperm.slane %v4077_v20, %v8203_v23  ;;  %v4064_v26 = vperm.slane %v4060_v21, %v8203_v23  ;;  %v4096_v58 = vrot.slane %v4075_v19, 4 }
 0xdf5   : > { %v4066_v27 = vsel %vm1946_vm1, %v4065_v3, %v4053_v22  ;;  %v3991_v5 = vpop.f32.mrf.mxu3  ;;  %s9415_s1 = smov %s9414_s22 }
 0xdf6   : > { %v4070_v28 = vperm.slane %v4066_v27, %v8203_v23  ;;  %v4094_v63 = vrot.slane %v4081_v24, 4  ;;  %v4084_v44 = vrot.slane %v4064_v26, 4  ;;  %v4097_v50 = vsel %vm1946_vm1, %v4081_v24, %v4096_v58  ;;  %s7194_s9 = scalar_lea.hbm %s9415_s1, 16 }
 0xdf7   : > { %v4105_v38 = vperm.slane %v4097_v50, %v8213_v41  ;;  %v8962_v9 = vadd.f32 %v6231_v1, %v3991_v5 }
 0xdf8   : > { %v4082_v31 = vrot.slane %v4070_v28, 4  ;;  %v4095_v40 = vsel %vm1946_vm1, %v4094_v63, %v4075_v19  ;;  %v4085_v2 = vsel %vm1946_vm1, %v4070_v28, %v4084_v44 }
 0xdf9   : > { %v4101_v32 = vperm.slane %v4095_v40, %v8213_v41  ;;  %v4093_v42 = vperm.slane %v4085_v2, %v8213_v41  ;;  %v4110_v43 = vrot.slane %v4105_v38, 4  ;;  %v6201_v25 = vpack.i.bf16 %v8960_v7, %v8962_v9 }
 0xdfa   : > { %v4083_v33 = vsel %vm1946_vm1, %v4082_v31, %v4064_v26 }
 0xdfb   : > { %v4089_v34 = vperm.slane %v4083_v33, %v8213_v41  ;;  %v4106_v35 = vrot.slane %v4101_v32, 4  ;;  %v4112_v46 = vrot.slane %v4093_v42, 4  ;;  %v4111_v47 = vsel %vm1946_vm1, %v4110_v43, %v4093_v42 }
 0xdfd   : > { %v4107_v36 = vsel %vm1946_vm1, %v4106_v35, %v4089_v34  ;;  %v4108_v37 = vrot.slane %v4089_v34, 4  ;;  %v4113_v45 = vsel %vm1946_vm1, %v4105_v38, %v4112_v46 }
 0xdfe   : > { %5838 = vmatmul.msk.f32.vlgmr.msrb.gmra.mxu0 %vm2296_vm2, %v4107_v36 }
 0xdff   : > { %v4109_v39 = vsel %vm1946_vm1, %v4101_v32, %v4108_v37 }
 0xe00   : > { %5841 = vmatmul.msk.f32.vlgmr.msra.gmra.mxu1 %vm2296_vm2, %v4109_v39 }
 0xe06   : > { %5844 = vmatmul.msk.f32.vlgmr.msra.gmra.mxu0 %vm2296_vm2, %v4111_v47 }
 0xe08   : > { %5847 = vmatmul.msk.f32.vlgmr.msrb.gmra.mxu1 %vm2296_vm2, %v4113_v45  ;;  %v4376_v45 = vrot.slane %v8960_v7, 4 }
 0xe7b   : > { %v4620_v48 = vpop.f32.mrf.mxu0 }
 0xe7c   : > { %v4621_v51 = vadd.f32 %v6303_v49, %v4620_v48  ;;  %v4432_v48 = vrot.slane %v8962_v9, 4 }
 0xe7d   : > { %v4649_v52 = vpop.f32.mrf.mxu1 }
 0xe7e   : > { %v4650_v53 = vadd.f32 %v6303_v49, %v4649_v52  ;;  %v4710_v54 = vsel %vm2660_vm3, %v4621_v51, -inf }
 0xe7f   : > { %4711 = vmax.xlane.f32.xlu0 %v4710_v54 }
 0xe80   : > { %v4713_v14 = vsel %vm2660_vm3, %v4650_v53, -inf }
 0xe81   : > { %4714 = vmax.xlane.f32.xlu1 %v4713_v14 }
 0xe83   : > { %v4678_v56 = vpop.f32.mrf.mxu0 }
 0xe84   : > { %v4679_v59 = vadd.f32 %v6303_v49, %v4678_v56 }
 0xe85   : > { %v4707_v60 = vpop.f32.mrf.mxu1 }
 0xe86   : > { %v4708_v8 = vadd.f32 %v6303_v49, %v4707_v60  ;;  %v4716_v0 = vsel %vm2660_vm3, %v4679_v59, -inf }
 0xe87   : > { %4717 = vmax.xlane.f32.xlu2 %v4716_v0 }
 0xe88   : > { %v4719_v55 = vsel %vm2660_vm3, %v4708_v8, -inf }
 0xe89   : > { %4720 = vmax.xlane.f32.xlu0 %v4719_v55 }
 0xe9a   : > { %6202 = vrot.lane.b32.xlu1 %v6201_v25, %s9412_s3  ;;  %s9417_s3 = scalar_lea.vmem [#allocation51], %s8111_s16 }
 0xe9d   : > { %6207 = vrot.lane.b32.xlu0 %v6201_v25, %s9406_s15 }
 0xe9f   : > { %6212 = vrot.lane.b32.xlu2 %v6201_v25, %s9411_s11 }
 0xef2   : > { %v4712_v10 = vpop.xlane.xlu0 %4711 }
 0xef3   : > { %v4722_v57 = vsub.f32 %v4621_v51, %v4712_v10 }
 0xef4   : > { %v4715_v11 = vpop.xlane.xlu1 %4714 }
 0xef5   : > { %v4726_v4 = vmul.f32 1.442695, %v4722_v57  ;;  %v4723_v29 = vsub.f32 %v4650_v53, %v4715_v11 }
 0xef7   : > { %6279 = vpow2.f32 %v4726_v4  ;;  %v4728_v30 = vmul.f32 1.442695, %v4723_v29 }
 0xef9   : > { %6281 = vpow2.f32 %v4728_v30 }
 0xefa   : > { %v4718_v12 = vpop.xlane.xlu2 %4717 }
 0xefb   : > { %v4724_v13 = vsub.f32 %v4679_v59, %v4718_v12 }
 0xefc   : > { %v4721_v15 = vpop.xlane.xlu0 %4720 }
 0xefd   : > { %v8969_v16 = vpop.eup %6279  ;;  %v4730_v18 = vmul.f32 1.442695, %v4724_v13  ;;  %v4725_v19 = vsub.f32 %v4708_v8, %v4721_v15 }
 0xefe   : > { %v4734_v3 = vsel %vm2660_vm3, %v8969_v16, 0.0 }
 0xeff   : > { %v8973_v20 = vpop.eup %6281  ;;  %6283 = vpow2.f32 %v4730_v18  ;;  %v4732_v21 = vmul.f32 1.442695, %v4725_v19  ;;  %4735 = vadd.xlane.f32.xlu0 %v4734_v3 }
 0xf00   : > { %v4737_v22 = vsel %vm2660_vm3, %v8973_v20, 0.0 }
 0xf01   : > { %6285 = vpow2.f32 %v4732_v21  ;;  %4738 = vadd.xlane.f32.xlu1 %v4737_v22 }
 0xf02   : > { %v6213_v24 = vpop.permute.xlu2 %6212 }
 0xf03   : > { %v6215_v28 = vunpack.i.h.bf16 %v6213_v24  ;;  %v6214_v63 = vunpack.i.l.bf16 %v6213_v24 }
 0xf05   : > { %v8977_v26 = vpop.eup %6283  ;;  %v4386_v40 = vrot.slane %v6215_v28, 4  ;;  %v4442_v44 = vrot.slane %v6214_v63, 4 }
 0xf06   : > { %v4740_v27 = vsel %vm2660_vm3, %v8977_v26, 0.0 }
 0xf07   : > { %v8981_v58 = vpop.eup %6285  ;;  %4741 = vadd.xlane.f32.xlu2 %v4740_v27 }
 0xf08   : > { %v4743_v31 = vsel %vm2660_vm3, %v8981_v58, 0.0 }
 0xf09   : > { %4744 = vadd.xlane.f32.xlu0 %v4743_v31 }
 0xf0c   : > { %v6203_v32 = vpop.permute.xlu1 %6202 }
 0xf0d   : > { %v6205_v33 = vunpack.i.h.bf16 %v6203_v32  ;;  %v6204_v50 = vunpack.i.l.bf16 %v6203_v32 }
 0xf0f   : > { %v4388_v34 = vrot.slane %v6205_v33, 4  ;;  %v4444_v35 = vrot.slane %v6204_v50, 4  ;;  %v4387_v2 = vsel %vm1946_vm1, %v4386_v40, %v6205_v33  ;;  %v4443_v36 = vsel %vm1946_vm1, %v4442_v44, %v6204_v50  ;;  %v6208_v37 = vpop.permute.xlu0 %6207 }
 0xf10   : > { %v4393_v38 = vperm.slane %v4387_v2, %v8203_v23  ;;  %v4449_v39 = vperm.slane %v4443_v36, %v8203_v23  ;;  %v6210_v42 = vunpack.i.h.bf16 %v6208_v37  ;;  %v6209_v43 = vunpack.i.l.bf16 %v6208_v37 }
 0xf11   : > { %v4389_v46 = vsel %vm1946_vm1, %v6215_v28, %v4388_v34  ;;  %v4445_v47 = vsel %vm1946_vm1, %v6214_v63, %v4444_v35 }
 0xf12   : > { %v4397_v49 = vperm.slane %v4389_v46, %v8203_v23  ;;  %v4398_v51 = vrot.slane %v4393_v38, 4  ;;  %v4453_v52 = vperm.slane %v4445_v47, %v8203_v23  ;;  %v4454_v53 = vrot.slane %v4449_v39, 4 }
 0xf13   : > { %v4374_v54 = vrot.slane %v6210_v42, 4  ;;  %v4377_v14 = vsel %vm1946_vm1, %v6210_v42, %v4376_v45  ;;  %v4430_v56 = vrot.slane %v6209_v43, 4  ;;  %v4433_v59 = vsel %vm1946_vm1, %v6209_v43, %v4432_v48 }
 0xf14   : > { %v4410_v60 = vrot.slane %v4397_v49, 4  ;;  %v4466_v61 = vrot.slane %v4453_v52, 4  ;;  %v4385_v8 = vperm.slane %v4377_v14, %v8203_v23  ;;  %v4441_v0 = vperm.slane %v4433_v59, %v8203_v23 }
 0xf15   : > { %v4375_v55 = vsel %vm1946_vm1, %v4374_v54, %v8960_v7  ;;  %v4431_v1 = vsel %vm1946_vm1, %v4430_v56, %v8962_v9 }
 0xf16   : > { %v4381_v5 = vperm.slane %v4375_v55, %v8203_v23  ;;  %v4411_v25 = vsel %vm1946_vm1, %v4410_v60, %v4385_v8  ;;  %v4412_v10 = vrot.slane %v4385_v8, 4  ;;  %v4437_v57 = vperm.slane %v4431_v1, %v8203_v23 }
 0xf17   : > { %v4417_v11 = vperm.slane %v4411_v25, %v8213_v41  ;;  %v4467_v4 = vsel %vm1946_vm1, %v4466_v61, %v4441_v0  ;;  %v4468_v29 = vrot.slane %v4441_v0, 4 }
 0xf18   : > { %v4399_v30 = vsel %vm1946_vm1, %v4398_v51, %v4381_v5  ;;  %v4400_v12 = vrot.slane %v4381_v5, 4  ;;  %v4413_v7 = vsel %vm1946_vm1, %v4397_v49, %v4412_v10  ;;  %v4455_v13 = vsel %vm1946_vm1, %v4454_v53, %v4437_v57 }
 0xf19   : > { %v4405_v9 = vperm.slane %v4399_v30, %v8213_v41  ;;  %v4421_v15 = vperm.slane %v4413_v7, %v8213_v41  ;;  %v4426_v18 = vrot.slane %v4417_v11, 4  ;;  %v4456_v19 = vrot.slane %v4437_v57, 4 }
 0xf1a   : > { %v4401_v3 = vsel %vm1946_vm1, %v4393_v38, %v4400_v12  ;;  %v4461_v21 = vperm.slane %v4455_v13, %v8213_v41  ;;  %v4469_v22 = vsel %vm1946_vm1, %v4453_v52, %v4468_v29  ;;  %v4473_v24 = vperm.slane %v4467_v4, %v8213_v41 }
 0xf1b   : > { %v4409_v27 = vperm.slane %v4401_v3, %v8213_v41  ;;  %v4422_v28 = vrot.slane %v4405_v9, 4  ;;  %v4427_v63 = vsel %vm1946_vm1, 0.0, %v4426_v18  ;;  %v4428_v31 = vrot.slane %v4421_v15, 4 }
 0xf1c   : > { %v4457_v40 = vsel %vm1946_vm1, %v4449_v39, %v4456_v19  ;;  %v4477_v44 = vperm.slane %v4469_v22, %v8213_v41  ;;  %v4478_v32 = vrot.slane %v4461_v21, 4  ;;  %v4482_v33 = vrot.slane %v4473_v24, 4 }
 0xf1d   : > { %v4424_v50 = vrot.slane %v4409_v27, 4  ;;  %v4429_v34 = vsel %vm1946_vm1, 0.0, %v4428_v31  ;;  %v4465_v35 = vperm.slane %v4457_v40, %v8213_v41  ;;  %v4423_v2 = vsel %vm1946_vm1, 0.0, %v4422_v28 }
 0xf1e   : > { %v4502_v36 = vrot.slane %v4429_v34, 4  ;;  %v4483_v37 = vsel %vm1946_vm1, 0.0, %v4482_v33  ;;  %v4484_v38 = vrot.slane %v4477_v44, 4  ;;  %v4479_v42 = vsel %vm1946_vm1, 0.0, %v4478_v32 }
 0xf1f   : > { %v4480_v43 = vrot.slane %v4465_v35, 4  ;;  %v4425_v39 = vsel %vm1946_vm1, 0.0, %v4424_v50  ;;  %v4486_v46 = vsel %vm1946_vm1, %v4424_v50, %v4405_v9  ;;  %v4497_v47 = vsel %vm1946_vm1, %v4428_v31, %v4417_v11 }
 0xf20   : > { %v4485_v45 = vsel %vm1946_vm1, 0.0, %v4484_v38  ;;  %v4551_v48 = vsel %vm1946_vm1, %v4484_v38, %v4473_v24  ;;  %v4490_v49 = vperm.slane %v4486_v46, %v8203_v23  ;;  %v4491_v51 = vrot.slane %v4425_v39, 4 }
 0xf21   : > { %v4556_v52 = vrot.slane %v4485_v45, 4  ;;  %v4481_v53 = vsel %vm1946_vm1, 0.0, %v4480_v43  ;;  %v4540_v54 = vsel %vm1946_vm1, %v4480_v43, %v4461_v21  ;;  %v4555_v14 = vperm.slane %v4551_v48, %v8203_v23 }
 0xf22   : > { %v4544_v56 = vperm.slane %v4540_v54, %v8203_v23  ;;  %v4545_v59 = vrot.slane %v4481_v53, 4  ;;  %v4492_v60 = vsel %vm1946_vm1, %v4491_v51, %v4423_v2  ;;  %v4501_v61 = vperm.slane %v4497_v47, %v8203_v23 }
 0xf23   : > { %v4557_v8 = vsel %vm1946_vm1, %v4556_v52, %v4483_v37  ;;  %v4576_v0 = vrot.slane %v4555_v14, 4  ;;  %v4496_v55 = vperm.slane %v4492_v60, %v8203_v23  ;;  %v4503_v1 = vsel %vm1946_vm1, %v4502_v36, %v4427_v63 }
 0xf24   : > { %v4546_v5 = vsel %vm1946_vm1, %v4545_v59, %v4479_v42  ;;  %v4561_v25 = vperm.slane %v4557_v8, %v8203_v23  ;;  %v4564_v10 = vrot.slane %v4544_v56, 4  ;;  %v4507_v57 = vperm.slane %v4503_v1, %v8203_v23 }
 0xf25   : > { %v4550_v11 = vperm.slane %v4546_v5, %v8203_v23  ;;  %v4510_v4 = vrot.slane %v4490_v49, 4  ;;  %v4522_v29 = vrot.slane %v4501_v61, 4  ;;  %v4508_v7 = vrot.slane %v4496_v55, 4 }
 0xf26   : > { %v4577_v30 = vsel %vm1946_vm1, %v4561_v25, %v4576_v0  ;;  %v4574_v12 = vrot.slane %v4561_v25, 4  ;;  %v4520_v13 = vrot.slane %v4507_v57, 4 }
 0xf27   : > { %v4565_v9 = vsel %vm1946_vm1, %v4550_v11, %v4564_v10  ;;  %v4585_v15 = vperm.slane %v4577_v30, %v8213_v41  ;;  %v4562_v18 = vrot.slane %v4550_v11, 4  ;;  %v4511_v19 = vsel %vm1946_vm1, %v4496_v55, %v4510_v4 }
 0xf28   : > { %v4573_v3 = vperm.slane %v4565_v9, %v8213_v41  ;;  %v4575_v21 = vsel %vm1946_vm1, %v4574_v12, %v4555_v14  ;;  %v4519_v22 = vperm.slane %v4511_v19, %v8213_v41  ;;  %v4523_v24 = vsel %vm1946_vm1, %v4507_v57, %v4522_v29 }
 0xf29   : > { %v4590_v27 = vrot.slane %v4585_v15, 4  ;;  %v4563_v28 = vsel %vm1946_vm1, %v4562_v18, %v4544_v56  ;;  %v4581_v63 = vperm.slane %v4575_v21, %v8213_v41  ;;  %v4531_v31 = vperm.slane %v4523_v24, %v8213_v41 }
 0xf2a   : > { %v4569_v40 = vperm.slane %v4563_v28, %v8213_v41  ;;  %v4592_v44 = vrot.slane %v4573_v3, 4  ;;  %v4509_v32 = vsel %vm1946_vm1, %v4508_v7, %v4490_v49  ;;  %v4521_v33 = vsel %vm1946_vm1, %v4520_v13, %v4501_v61 }
 0xf2b   : > { %v4591_v50 = vsel %vm1946_vm1, %v4590_v27, %v4573_v3  ;;  %v4586_v34 = vrot.slane %v4581_v63, 4  ;;  %v4536_v35 = vrot.slane %v4531_v31, 4  ;;  %v4515_v2 = vperm.slane %v4509_v32, %v8213_v41 }
 0xf2c   : > { %4825 = vmatpush.msrb.mxu0 %v4591_v50  ;;  %v4593_v36 = vsel %vm1946_vm1, %v4585_v15, %v4592_v44  ;;  %v4527_v37 = vperm.slane %v4521_v33, %v8213_v41  ;;  %v4588_v38 = vrot.slane %v4569_v40, 4  ;;  %v4538_v42 = vrot.slane %v4519_v22, 4 }
 0xf2d   : > { %v4587_v43 = vsel %vm1946_vm1, %v4586_v34, %v4569_v40  ;;  %v4537_v39 = vsel %vm1946_vm1, %v4536_v35, %v4519_v22  ;;  %4848 = vmatpush.msra.mxu1 %v4593_v36  ;;  %v4534_v46 = vrot.slane %v4515_v2, 4 }
 0xf2e   : > { %4779 = vmatpush.msra.mxu2 %v4587_v43  ;;  %4826 = vmatpush.msrb.mxu0 %v4537_v39  ;;  %v4532_v47 = vrot.slane %v4527_v37, 4  ;;  %v4589_v45 = vsel %vm1946_vm1, %v4581_v63, %v4588_v38  ;;  %v4539_v48 = vsel %vm1946_vm1, %v4531_v31, %v4538_v42 }
 0xf2f   : > { %4802 = vmatpush.msra.mxu3 %v4589_v45  ;;  %4849 = vmatpush.msra.mxu1 %v4539_v48  ;;  %v4535_v51 = vsel %vm1946_vm1, %v4527_v37, %v4534_v46 }
 0xf30   : > { %v4533_v49 = vsel %vm1946_vm1, %v4532_v47, %v4515_v2 }
 0xf31   : > { %4780 = vmatpush.msra.mxu2 %v4533_v49  ;;  %4803 = vmatpush.msra.mxu3 %v4535_v51 }
 0xf72   : > { %v4736_v52 = vpop.xlane.xlu0 %4735 }
 0xf73   : > { %6287 = vrcp.f32 %v4736_v52 }
 0xf74   : > { %v4739_v53 = vpop.xlane.xlu1 %4738 }
 0xf75   : > { %6289 = vrcp.f32 %v4739_v53 }
 0xf79   : > { %v6288_v54 = vpop.eup %6287 }
 0xf7a   : > { %v4750_v14 = vmul.f32 %v6288_v54, %v8969_v16  ;;  %v4742_v56 = vpop.xlane.xlu2 %4741 }
 0xf7b   : > { %v6290_v59 = vpop.eup %6289  ;;  %6291 = vrcp.f32 %v4742_v56 }
 0xf7c   : > { %v4751_v60 = vmul.f32 %v6290_v59, %v8973_v20  ;;  %v4745_v61 = vpop.xlane.xlu0 %4744  ;;  %5848 = vmatmul.msk.f32.vlgmr.msra.gmra.mxu2 %vm2660_vm3, %v4750_v14  ;;  %v4754_v55 = vsel %vm2660_vm3, %v4750_v14, 0.0 }
 0xf7d   : > { %6293 = vrcp.f32 %v4745_v61 }
 0xf7e   : > { %5849 = vmatmul.msk.f32.vlgmr.msra.gmra.mxu3 %vm2660_vm3, %v4751_v60  ;;  %v4755_v8 = vsel %vm2660_vm3, %v4751_v60, 0.0 }
 0xf7f   : > { %v4756_v5 = vadd.f32 %v4755_v8, %v4754_v55 }
 0xf81   : > { %v6292_v0 = vpop.eup %6291 }
 0xf82   : > { %v4752_v16 = vmul.f32 %v6292_v0, %v8977_v26 }
 0xf83   : > { %v6294_v1 = vpop.eup %6293 }
 0xf84   : > { %v4757_v25 = vsel %vm2660_vm3, %v4752_v16, 0.0  ;;  %v4753_v20 = vmul.f32 %v6294_v1, %v8981_v58  ;;  %5850 = vmatmul.msk.f32.vlgmr.msrb.gmra.mxu0 %vm2660_vm3, %v4752_v16 }
 0xf85   : > { %v4758_v10 = vadd.f32 %v4757_v25, %v4756_v5 }
 0xf86   : > { %v4759_v57 = vsel %vm2660_vm3, %v4753_v20, 0.0  ;;  %5851 = vmatmul.msk.f32.vlgmr.msra.gmra.mxu1 %vm2660_vm3, %v4753_v20 }
 0xf87   : > { %v4760_v11 = vadd.f32 %v4759_v57, %v4758_v10 }
 0xf89   : > { %v4761_v4 = vmul.f32 %v4760_v11, %v8724_v17 }
 0xf8b   : > { %5170 = vst.msk [vmem:[%s9287_s13] sm:$0xff] %vm2660_vm3, %v4761_v4  ;;  %s5208_s13 = sshll.u32 %s9417_s3, 4  ;;  %s5209_s13 = int_to_ptr.vmem [resolvable:$true] %s5208_s13 }
 0xfff   : > { %v4782_v26 = vpop.f32.mrf.mxu2 }
0x1000   : > { %v4856_v29 = vrot.slane %v4782_v26, 4 }
0x1001   : > { %v4805_v30 = vpop.f32.mrf.mxu3  ;;  %v4828_v12 = vpop.f32.mrf.mxu0 }
0x1002   : > { %v4868_v7 = vrot.slane %v4805_v30, 4  ;;  %v4854_v58 = vrot.slane %v4828_v12, 4  ;;  %v4857_v13 = vsel %vm1946_vm1, %v4828_v12, %v4856_v29 }
0x1003   : > { %v4865_v9 = vperm.slane %v4857_v13, %v8203_v23  ;;  %v4851_v15 = vpop.f32.mrf.mxu1  ;;  %v4981_v13 = vld [vmem:[#allocation26 + $0x10] sm:$0xff] }
0x1004   : > { %v4855_v18 = vsel %vm1946_vm1, %v4854_v58, %v4782_v26  ;;  %v4866_v19 = vrot.slane %v4851_v15, 4  ;;  %v4869_v17 = vsel %vm1946_vm1, %v4851_v15, %v4868_v7  ;;  %v4982_v58 = vld [vmem:[#allocation26 + $0x18] sm:$0xff] }
0x1005   : > { %v4861_v3 = vperm.slane %v4855_v18, %v8203_v23  ;;  %v4892_v21 = vrot.slane %v4865_v9, 4  ;;  %v4877_v22 = vperm.slane %v4869_v17, %v8203_v23  ;;  %5002 = vmatpush.msrb.mxu2 %v4982_v58 }
0x1006   : > { %v4867_v24 = vsel %vm1946_vm1, %v4866_v19, %v4805_v30 }
0x1007   : > { %v4880_v27 = vrot.slane %v4861_v3, 4  ;;  %v4873_v28 = vperm.slane %v4867_v24, %v8203_v23  ;;  %v4890_v63 = vrot.slane %v4877_v22, 4  ;;  %v4893_v31 = vsel %vm1946_vm1, %v4877_v22, %v4892_v21  ;;  %5003 = vmatpush.msrb.mxu2 %v4981_v13  ;;  %v6232_v22 = vld [vmem:[#allocation32] ss:$0 sm:$0xff] }
0x1008   : > { %v4901_v40 = vperm.slane %v4893_v31, %v8213_v41 }
0x1009   : > { %v4878_v44 = vrot.slane %v4873_v28, 4  ;;  %v4881_v32 = vsel %vm1946_vm1, %v4873_v28, %v4880_v27  ;;  %v4891_v33 = vsel %vm1946_vm1, %v4890_v63, %v4865_v9  ;;  %v4980_v9 = vld [vmem:[#allocation26 + $0x8] sm:$0xff] }
0x100a   : > { %v4889_v50 = vperm.slane %v4881_v32, %v8213_v41  ;;  %v4897_v34 = vperm.slane %v4891_v33, %v8213_v41  ;;  %v4908_v35 = vrot.slane %v4901_v40, 4  ;;  %5004 = vmatpush.msrb.mxu2 %v4980_v9 }
0x100b   : > { %v4879_v2 = vsel %vm1946_vm1, %v4878_v44, %v4861_v3 }
0x100c   : > { %v4885_v36 = vperm.slane %v4879_v2, %v8213_v41  ;;  %v4904_v37 = vrot.slane %v4889_v50, 4  ;;  %v4906_v38 = vrot.slane %v4897_v34, 4  ;;  %v4909_v42 = vsel %vm1946_vm1, 0.0, %v4908_v35  ;;  %v5046_v50 = vld [vmem:[#allocation46 + $0x18] sm:$0xff]  ;;  %v5043_v2 = vld [vmem:[#allocation46] sm:$0xff] }
0x100d   : > { %v4921_v43 = vsel %vm1946_vm1, %v4908_v35, %v4897_v34  ;;  %v4926_v39 = vrot.slane %v4909_v42, 4  ;;  %v5045_v34 = vld [vmem:[#allocation46 + $0x10] sm:$0xff]  ;;  %5066 = vmatpush.msrb.mxu3 %v5046_v50  ;;  %v5044_v35 = vld [vmem:[#allocation46 + $0x8] sm:$0xff] }
0x100e   : > { %v4902_v46 = vrot.slane %v4885_v36, 4  ;;  %v4905_v47 = vsel %vm1946_vm1, 0.0, %v4904_v37  ;;  %v4907_v45 = vsel %vm1946_vm1, 0.0, %v4906_v38  ;;  %v4925_v48 = vperm.slane %v4921_v43, %v8203_v23 }
0x100f   : > { %v4915_v49 = vrot.slane %v4905_v47, 4  ;;  %v4910_v51 = vsel %vm1946_vm1, %v4904_v37, %v4885_v36  ;;  %v4927_v52 = vsel %vm1946_vm1, %v4926_v39, %v4907_v45  ;;  %5067 = vmatpush.msrb.mxu3 %v5045_v34  ;;  %v6233_v45 = vld [vmem:[#allocation40] ss:$0 sm:$0xff] }
0x1010   : > { %v4903_v53 = vsel %vm1946_vm1, 0.0, %v4902_v46  ;;  %v4914_v54 = vperm.slane %v4910_v51, %v8203_v23  ;;  %v4931_v14 = vperm.slane %v4927_v52, %v8203_v23  ;;  %v4946_v56 = vrot.slane %v4925_v48, 4  ;;  %v6234_v51 = vld [vmem:[#allocation41] ss:$0 sm:$0xff] }
0x1011   : > { %v4916_v59 = vsel %vm1946_vm1, %v4915_v49, %v4903_v53  ;;  %5068 = vmatpush.msrb.mxu3 %v5044_v35 }
0x1012   : > { %v4920_v60 = vperm.slane %v4916_v59, %v8203_v23  ;;  %v4934_v61 = vrot.slane %v4914_v54, 4  ;;  %v4947_v8 = vsel %vm1946_vm1, %v4931_v14, %v4946_v56  ;;  %v4944_v0 = vrot.slane %v4931_v14, 4 }
0x1013   : > { %v4955_v55 = vperm.slane %v4947_v8, %v8213_v41  ;;  %5069 = vmatpush.msrb.mxu3 %v5043_v2 }
0x1014   : > { %v4935_v16 = vsel %vm1946_vm1, %v4920_v60, %v4934_v61  ;;  %v4932_v1 = vrot.slane %v4920_v60, 4  ;;  %v4945_v5 = vsel %vm1946_vm1, %v4944_v0, %v4925_v48 }
0x1015   : > { %v4943_v25 = vperm.slane %v4935_v16, %v8213_v41  ;;  %v4960_v20 = vrot.slane %v4955_v55, 4  ;;  %v4951_v10 = vperm.slane %v4945_v5, %v8213_v41  ;;  %v6235_v16 = vld [vmem:[#allocation47] ss:$0 sm:$0xff] }
0x1016   : > { %v4933_v57 = vsel %vm1946_vm1, %v4932_v1, %v4914_v54 }
0x1017   : > { %v4961_v23 = vsel %vm1946_vm1, %v4960_v20, %v4943_v25  ;;  %v4962_v11 = vrot.slane %v4943_v25, 4  ;;  %v4939_v4 = vperm.slane %v4933_v57, %v8213_v41  ;;  %v4956_v26 = vrot.slane %v4951_v10, 4  ;;  %v4979_v41 = vld [vmem:[#allocation26] sm:$0xff] }
0x1018   : > { %4969 = vrot.lane.b32.xlu2 %v4961_v23, %s9408_s2  ;;  %5005 = vmatpush.msrb.mxu2 %v4979_v41  ;;  %s5176_s2 = sand.u32 1, %s7693_s28  }
0x1019   : > { %v4963_v29 = vsel %vm1946_vm1, %v4955_v55, %v4962_v11  ;;  %v4958_v30 = vrot.slane %v4939_v4, 4  ;;  %v4957_v12 = vsel %vm1946_vm1, %v4956_v26, %v4939_v4 }
0x101a   : > { %4973 = vrot.lane.b32.xlu0 %v4963_v29, %s9407_s4  ;;  %s9160_s4 = sshll.u32 %s7693_s28, 3 }
0x101b   : > { %v4959_v7 = vsel %vm1946_vm1, %v4951_v10, %v4958_v30  ;;  %s5206_s11 = scalar_lea.hbm %s9414_s22, %s9160_s4 }
0x101c   : > { %4965 = vrot.lane.b32.xlu1 %v4959_v7, %s9409_s6  ;;  %s9413_s6 = sld [smem:[#allocation102_spill]]  ;;  %s5210_s5 = sshll.u32 %s5206_s11, 4  ;;  %s5211_s5 = int_to_ptr.hbm [resolvable:$true] %s5210_s5 }
0x101d   : > { %s7188_s7 = sshra.s32 %s5211_s5, 4  ;;  %s7189_s7 = int_to_ptr.hbm [resolvable:$true] %s7188_s7 }
0x101e   : > { %s7190_s8 = scalar_lea.hbm %s7189_s7, 8  ;;  %p7195_p8 = scmp.lt.s32.totalorder %s7189_s7, %s9415_s1 }
0x101f   : > { %p7191_p3 = scmp.ne.s32.totalorder %s7189_s7, %s7190_s8  ;;  %p7196_p9 = scmp.lt.s32.totalorder %s7194_s9, %s7190_s8 }
0x1021   : > { %p7192_p6 = pnand %p7191_p3, %p7726_p11  ;;  %p7197_p10 = por %p7196_p9, %p7195_p8 }
0x1022   : > { %v5110_v54 = vld [vmem:[%s9413_s6 + $0x78] sm:$0xff]  ;;  %v5109_v14 = vld [vmem:[%s9413_s6 + $0x70] sm:$0xff]  ;;  %v5108_v56 = vld [vmem:[%s9413_s6 + $0x68] sm:$0xff] }
0x1023   : > { %5115 = vmatpush.msra.mxu0 %v5110_v54  ;;  %v5107_v59 = vld [vmem:[%s9413_s6 + $0x60] sm:$0xff]  ;;  %v5106_v60 = vld [vmem:[%s9413_s6 + $0x58] sm:$0xff]  ;;  %v5105_v61 = vld [vmem:[%s9413_s6 + $0x50] sm:$0xff]  ;;  %p7193_p7 = pneg %p7192_p6 }
0x1024   : > { %v5104_v8 = vld [vmem:[%s9413_s6 + $0x48] sm:$0xff]  ;;  %v5103_v0 = vld [vmem:[%s9413_s6 + $0x40] sm:$0xff]  ;;  %v5102_v55 = vld [vmem:[%s9413_s6 + $0x38] sm:$0xff] }
0x1025   : > { %5116 = vmatpush.msra.mxu0 %v5109_v14  ;;  %v5101_v1 = vld [vmem:[%s9413_s6 + $0x30] sm:$0xff]  ;;  %v5100_v5 = vld [vmem:[%s9413_s6 + $0x28] sm:$0xff]  ;;  %v5099_v10 = vld [vmem:[%s9413_s6 + $0x20] sm:$0xff]  ;;  %p7198_p0 = pnand %p7197_p10, %p7193_p7 }
0x1026   : > { %v5098_v57 = vld [vmem:[%s9413_s6 + $0x18] sm:$0xff]  ;;  %v5097_v11 = vld [vmem:[%s9413_s6 + $0x10] sm:$0xff]  ;;  %v5096_v26 = vld [vmem:[%s9413_s6 + $0x8] sm:$0xff] }
0x1027   : > { %5117 = vmatpush.msra.mxu0 %v5108_v56  ;;  %v5095_v29 = vld [vmem:[%s9413_s6] sm:$0xff]  ;;  %s9166_s6 = scalar_lea.sflag [#allocation52], %s5176_s2 }
0x1029   : > { %5118 = vmatpush.msra.mxu0 %v5107_v59 }
0x102b   : > { %5119 = vmatpush.msra.mxu0 %v5106_v60 }
0x102d   : > { %5120 = vmatpush.msra.mxu0 %v5105_v61 }
0x102f   : > { %5121 = vmatpush.msra.mxu0 %v5104_v8 }
0x1031   : > { %5122 = vmatpush.msra.mxu0 %v5103_v0 }
0x1033   : > { %5123 = vmatpush.msra.mxu0 %v5102_v55 }
0x1035   : > { %5124 = vmatpush.msra.mxu0 %v5101_v1 }
0x1037   : > { %5125 = vmatpush.msra.mxu0 %v5100_v5 }
0x1039   : > { %5126 = vmatpush.msra.mxu0 %v5099_v10 }
0x103b   : > { %5127 = vmatpush.msra.mxu0 %v5098_v57 }
0x103d   : > { %5128 = vmatpush.msra.mxu0 %v5097_v11 }
0x103f   : > { %5129 = vmatpush.msra.mxu0 %v5096_v26 }
0x1041   : > { %5130 = vmatpush.msra.mxu0 %v5095_v29 }
0x1072   : > { %v4970_v18 = vpop.permute.xlu2 %4969 }
0x108c   : > { %v4974_v17 = vpop.permute.xlu0 %4973 }
0x108e   : > { %v4966_v15 = vpop.permute.xlu1 %4965 }
0x108f   : > { %v4976_v19 = vsel %vm2296_vm2, %v4957_v12, %v4966_v15 }
0x1090   : > { %v4977_v3 = vsel %vm2660_vm3, %v4976_v19, %v4970_v18 }
0x1091   : > { %v4978_v21 = vsel %vm2662_vm4, %v4977_v3, %v4974_v17 }
0x1092   : > { %5852 = vmatmul.msk.f32.vlgmr.msrb.gmra.mxu2 %vm1854_vm0, %v4978_v21 }
0x1115   : > { %v5007_v24 = vpop.f32.mrf.mxu2 }
0x1116   : > { %v5008_v27 = vadd.f32 %v6232_v22, %v5007_v24  ;;  %v6236_v22 = vld [vmem:[#allocation49] ss:$0 sm:$0xff] }
0x1118   : > { %v5010_v28 = vadd.f32 %v5008_v27, %v8835_v6 }
0x111a   : > { %v5011_v63 = vsel %vm1854_vm0, %v5010_v28, 0.0 }
0x111b   : > { %5012 = vadd.xlane.f32.xlu1 %v5011_v63 }
0x118e   : > { %v5013_v31 = vpop.xlane.xlu1 %5012 }
0x118f   : > { %v5014_v40 = vmul.f32 %v5013_v31, %v8447_v62 }
0x1191   : > { %v5015_v44 = vsub.f32 %v5010_v28, %v5014_v40 }
0x1193   : > { %v5016_v32 = vmul.f32 %v5015_v44, %v5015_v44 }
0x1195   : > { %v5017_v33 = vsel %vm1854_vm0, %v5016_v32, 0.0 }
0x1196   : > { %5018 = vadd.xlane.f32.xlu2 %v5017_v33 }
0x1209   : > { %v5019_v36 = vpop.xlane.xlu2 %5018 }
0x120a   : > { %v5020_v6 = vmul.f32 %v5019_v36, %v8447_v62 }
0x120c   : > { %v5021_v37 = vadd.f32 1e-05, %v5020_v6 }
0x120e   : > { %6295 = vrsqrt.f32 %v5021_v37  ;;  %vm5028_vm14 = vweird.f32 %v5021_v37 }
0x1214   : > { %v6296_v38 = vpop.eup %6295 }
0x1215   : > { %v5023_v42 = vmul.f32 %v6296_v38, %v5021_v37  ;;  %vm5029_vm13 = vweird.f32 %v6296_v38 }
0x1216   : > { %vm5030_vm15 = vmor %vm5028_vm14, %vm5029_vm13 }
0x1217   : > { %v5024_v43 = vmul.f32 %v6296_v38, %v5023_v42 }
0x1219   : > { %v5025_v39 = vmul.f32 0.5, %v5024_v43 }
0x121b   : > { %v5026_v46 = vsub.f32 1.5, %v5025_v39 }
0x121d   : > { %v5027_v47 = vmul.f32 %v6296_v38, %v5026_v46 }
0x121f   : > { %v5031_v48 = vsel %vm5030_vm15, %v6296_v38, %v5027_v47 }
0x1220   : > { %v5032_v49 = vmul.f32 %v5031_v48, %v5015_v44 }
0x1222   : > { %v5037_v52 = vmul.f32 %v6233_v45, %v5032_v49 }
0x1224   : > { %v5042_v53 = vadd.f32 %v6234_v51, %v5037_v52 }
0x1226   : > { %5853 = vmatmul.msk.f32.vlgmr.msrb.gmra.mxu3 %vm1854_vm0, %v5042_v53 }
0x12a9   : > { %v5071_v25 = vpop.f32.mrf.mxu3 }
0x12aa   : > { %v5072_v20 = vadd.f32 %v6235_v16, %v5071_v25 }
0x12ac   : > { %v5854_v23 = vmul.f32 -1.702, %v5072_v20 }
0x12ae   : > { %v5076_v4 = vmul.f32 1.442695, %v5854_v23 }
0x12b0   : > { %6297 = vpow2.f32 %v5076_v4 }
0x12b6   : > { %v6298_v30 = vpop.eup %6297 }
0x12b7   : > { %v5078_v12 = vadd.f32 1.0, %v6298_v30 }
0x12b9   : > { %6299 = vrcp.f32 %v5078_v12  ;;  %v5090_v9 = vand.u32 2147483648, %v5078_v12  ;;  %v5088_v15 = vand.u32 2147483647, %v5078_v12  ;;  %vm5084_vm2 = vweird.f32 %v5078_v12 }
0x12bb   : > { %v5091_v19 = vor.u32 1.1754944e-38, %v5090_v9  ;;  %vm5089_vm4 = vcmp.eq.f32.partialorder %v5088_v15, 8.507059e+37 }
0x12bf   : > { %v6300_v7 = vpop.eup %6299 }
0x12c0   : > { %v5080_v58 = vmul.f32 %v6300_v7, %v5078_v12  ;;  %vm5085_vm1 = vweird.f32 %v6300_v7 }
0x12c1   : > { %vm5086_vm3 = vmor %vm5084_vm2, %vm5085_vm1 }
0x12c2   : > { %v5081_v13 = vsub.f32 1.0, %v5080_v58 }
0x12c4   : > { %v5082_v41 = vmul.f32 %v6300_v7, %v5081_v13 }
0x12c6   : > { %v5083_v18 = vadd.f32 %v6300_v7, %v5082_v41 }
0x12c8   : > { %v5087_v17 = vsel %vm5086_vm3, %v6300_v7, %v5083_v18 }
0x12c9   : > { %v5092_v3 = vsel %vm5089_vm4, %v5091_v19, %v5087_v17 }
0x12ca   : > { %v5094_v21 = vmul.f32 %v5092_v3, %v5072_v20 }
0x12cc   : > { %5131 = vmatmul.f32.vlgmr.msra.gmra.mxu0 %v5094_v21 }
0x1349   : > { %v5132_v24 = vpop.f32.mrf.mxu0 }
0x134a   : > { %v5133_v27 = vadd.f32 %v6236_v22, %v5132_v24 }
0x134c   : > { %v5135_v28 = vadd.f32 %v5133_v27, %v5042_v53 }
0x134e   : > { %v5136_v63 = vsel %vm1854_vm0, %v5135_v28, 0.0 }
0x134f   : > { %5137 = vadd.xlane.f32.xlu0 %v5136_v63 }
0x13c2   : > { %v5138_v31 = vpop.xlane.xlu0 %5137 }
0x13c3   : > { %v5139_v40 = vmul.f32 %v5138_v31, %v8447_v62 }
0x13c5   : > { %v5140_v44 = vsub.f32 %v5135_v28, %v5139_v40 }
0x13c7   : > { %v5141_v32 = vmul.f32 %v5140_v44, %v5140_v44 }
0x13c9   : > { %v5142_v33 = vsel %vm1854_vm0, %v5141_v32, 0.0 }
0x13ca   : > { %5143 = vadd.xlane.f32.xlu1 %v5142_v33 }
0x13cb   : > { %7201 = shalt.err (!%p7198_p0)
}
0x13cc   : > { %s9418_s28 = sld [smem:[#allocation106_spill]]  ;;  %s9419_s2 = scalar_lea.vmem [#allocation53], %s8111_s16 }
0x13cd   : > { %5988 = dma.vmem_to_hbm [thread:$0]  (%p7726_p11), %s5209_s13, 128, %s5211_s5, %s9166_s6  }
0x13ce   : > { %s5222_s11 = sshll.u32 %s9419_s2, 4  ;;  %s5223_s11 = int_to_ptr.vmem [resolvable:$true] %s5222_s11 }
0x13d2   : > { %s5220_s22 = scalar_lea.hbm %s9418_s28, %s9160_s4  ;;  %s7222_s7 = scalar_lea.hbm %s9418_s28, 16 }
0x13d3   : > { %s5224_s3 = sshll.u32 %s5220_s22, 4  ;;  %s5225_s3 = int_to_ptr.hbm [resolvable:$true] %s5224_s3 }
0x13d4   : > { %s7216_s8 = sshra.s32 %s5225_s3, 4  ;;  %s7217_s8 = int_to_ptr.hbm [resolvable:$true] %s7216_s8 }
0x13d5   : > { %s7218_s9 = scalar_lea.hbm %s7217_s8, 8  ;;  %p7223_p12 = scmp.lt.s32.totalorder %s7217_s8, %s9418_s28 }
0x13d6   : > { %p7219_p1 = scmp.ne.s32.totalorder %s7217_s8, %s7218_s9  ;;  %p7224_p13 = scmp.lt.s32.totalorder %s7222_s7, %s7218_s9 }
0x13d8   : > { %p7220_p4 = pnand %p7219_p1, %p7726_p11  ;;  %p7225_p2 = por %p7224_p13, %p7223_p12 }
0x13da   : > { %p7221_p5 = pneg %p7220_p4 }
0x13dc   : > { %p7226_p3 = pnand %p7225_p2, %p7221_p5 }
0x13de   : > { %7229 = shalt.err (!%p7226_p3)
}
0x13df   : > { %s9420_s5 = sld [smem:[#allocation104_spill]]  ;;  %v6237_v43 = vld [vmem:[#allocation43] ss:$0 sm:$0xff]  ;;  %v6238_v47 = vld [vmem:[#allocation44] ss:$0 sm:$0xff] }
0x13e0   : > { %5989 = dma.vmem_to_hbm [thread:$0]  (%p7726_p11), %s5223_s11, 128, %s5225_s3, %s9166_s6  }
0x13e1   : > { %s1811_s6 = scalar_lea.vmem [#allocation50], %s8111_s16  ;;  %s5172_s11 = scalar_lea.sflag [#allocation4], %s8108_s0 }
0x13e2   : > { %s5194_s22 = sshll.u32 %s1811_s6, 4  ;;  %s5195_s22 = int_to_ptr.vmem [resolvable:$true] %s5194_s22 }
0x13e5   : > { %s5192_s13 = scalar_lea.hbm %s9420_s5, %s9160_s4  ;;  %s7250_s4 = scalar_lea.hbm %s9420_s5, 16 }
0x13e6   : > { %s5196_s2 = sshll.u32 %s5192_s13, 4  ;;  %s5197_s2 = int_to_ptr.hbm [resolvable:$true] %s5196_s2 }
0x13e7   : > { %s7244_s3 = sshra.s32 %s5197_s2, 4  ;;  %s7245_s3 = int_to_ptr.hbm [resolvable:$true] %s7244_s3 }
0x13e8   : > { %s7246_s8 = scalar_lea.hbm %s7245_s3, 8  ;;  %p7251_p9 = scmp.lt.s32.totalorder %s7245_s3, %s9420_s5 }
0x13e9   : > { %p7247_p6 = scmp.ne.s32.totalorder %s7245_s3, %s7246_s8  ;;  %p7252_p10 = scmp.lt.s32.totalorder %s7250_s4, %s7246_s8 }
0x13eb   : > { %p7248_p7 = pnand %p7247_p6, %p7726_p11  ;;  %p7253_p0 = por %p7252_p10, %p7251_p9 }
0x13ed   : > { %p7249_p8 = pneg %p7248_p7 }
0x13ef   : > { %p7254_p1 = pnand %p7253_p0, %p7249_p8 }
0x143d   : > { %v5144_v50 = vpop.xlane.xlu1 %5143 }
0x143e   : > { %v5145_v34 = vmul.f32 %v5144_v50, %v8447_v62 }
0x1440   : > { %v5146_v35 = vadd.f32 1e-05, %v5145_v34 }
0x1442   : > { %6301 = vrsqrt.f32 %v5146_v35  ;;  %vm5153_vm6 = vweird.f32 %v5146_v35 }
0x1448   : > { %v6302_v2 = vpop.eup %6301 }
0x1449   : > { %v5148_v36 = vmul.f32 %v6302_v2, %v5146_v35  ;;  %vm5154_vm5 = vweird.f32 %v6302_v2 }
0x144a   : > { %vm5155_vm7 = vmor %vm5153_vm6, %vm5154_vm5 }
0x144b   : > { %v5149_v6 = vmul.f32 %v6302_v2, %v5148_v36 }
0x144d   : > { %v5150_v37 = vmul.f32 0.5, %v5149_v6 }
0x144f   : > { %v5151_v38 = vsub.f32 1.5, %v5150_v37 }
0x1451   : > { %v5152_v42 = vmul.f32 %v6302_v2, %v5151_v38 }
0x1453   : > { %v5156_v39 = vsel %vm5155_vm7, %v6302_v2, %v5152_v42 }
0x1454   : > { %v5157_v46 = vmul.f32 %v5156_v39, %v5140_v44 }
0x1456   : > { %v5162_v62 = vmul.f32 %v6237_v43, %v5157_v46 }
0x1458   : > { %v5167_v45 = vadd.f32 %v6238_v47, %v5162_v62 }
0x145a   : > { %5168 = vst.msk [vmem:[%s1811_s6] sm:$0xff] %vm1854_vm0, %v5167_v45 }
0x145b   : > { %7257 = shalt.err (!%p7254_p1)
}
0x145c   : > { %5987 = dma.vmem_to_hbm [thread:$0]  (%p7726_p11), %s5195_s22, 128, %s5197_s2, %s5172_s11  }
0x145d PF: > { %s9421_s16 = sld [smem:[#allocation107_spill]]  ;;  %p9424_p5 = scmp.ge.s32.totalorder %s7360_s26, 2 }
0x145e   : > { %s9422_s9 = sld [smem:[#allocation113_spill]] }
0x1463   : > { %s5236_s0 = sand.u32 1, %s9421_s16  }
0x1464   : > { %p9423_p4 = scmp.ne.s32.totalorder %s9422_s9, 0  ;;  %s5237_s7 = scalar_lea.sflag [#allocation4], %s5236_s0 }
0x1466   : > { %p5998_p12 = pnand %p9424_p5, %p9423_p4 }
0x1468   : > { %p5999_p13 = pneg %p5998_p12 }
0x146a   : > { %7339 = dma.done.wait (%p5999_p13), %s5237_s7, 128  }
0x146b   : > { %7341 = vsyncadd (%p5999_p13), %s5237_s7, 4294967168  ;;  %s9425_s13 = sadd.s32 4294967294, %s7360_s26  }
0x146c   : > { %s5246_s6 = sand.u32 1, %s9425_s13  }
0x146d   : > { %s5247_s3 = scalar_lea.sflag [#allocation52], %s5246_s6 }
0x146e   : > { %7343 = dma.done.wait (%p5999_p13), %s5247_s3, 256  }
0x146f   : > { %7345 = vsyncadd (%p5999_p13), %s5247_s3, 4294967040  ;;  %s9426_s26 = sld [smem:[#allocation109_spill]]  ;;  %s9429_s22 = smov %s7356_s23 }
0x1470   : > { %s9427_s0 = sld [smem:[#allocation108_spill]] }
0x1471   : > { %s9428_s15 = sld [smem:[#allocation110_spill]] }
0x1475   : > { %p119_p11 = scmp.ge.s32.totalorder %s9426_s26, 4  }
0x1477   : > { %s9430_s23 = smov %s9428_s15  ;;  %121 = sbr.rel (!%p119_p11) target bundleno = 106 (0x6a), region = 433 }
0x147c   :  { %5263 = vsyncpa [#allocation3], 1 }
0x147d   :  { %5265 = vsyncpa [#allocation3 + $0x1], 1 }
0x147e   :  { %5266 = vsyncpa [#allocation6], 1 }
0x147f   :  { %5267 = vsyncpa [#allocation9], 1 }
0x1480   :  { %5268 = vsyncpa [#allocation12], 1 }
0x1481   :  { %5269 = vsyncpa [#allocation15], 1 }
0x1482   :  { %5270 = vsyncpa [#allocation18], 1 }
0x1483   :  { %5271 = vsyncpa [#allocation21], 1 }
0x1484   :  { %5272 = vsyncpa [#allocation24], 1 }
0x1485   :  { %5273 = vsyncpa [#allocation27], 1 }
0x1486   :  { %5274 = vsyncpa [#allocation30], 1 }
0x1487   :  { %5275 = vsyncpa [#allocation33], 1 }
0x1488   :  { %5276 = vsyncpa [#allocation36], 1 }
0x1489   :  { %5277 = vsyncpa [#allocation39], 1 }
0x148a   :  { %5278 = vsyncpa [#allocation42], 1 }
0x148b   :  { %5279 = vsyncpa [#allocation45], 1 }
0x148c   :  { %5280 = vsyncpa [#allocation48], 1 }
0x148d   :  { %5281 = vsyncpa [#allocation4], 1 }
0x148e   :  { %5283 = vsyncpa [#allocation4 + $0x1], 1 }
0x148f   :  { %5284 = vsyncpa [#allocation52], 1 }
0x1490   :  { %5286 = vsyncpa [#allocation52 + $0x1], 1 }

</bundles_post_ra>
